<compile_context>
chip_gen: v6e
topology: v6e:2x2x1
jax: 0.10.0
libtpu: 0.0.40
codegen_flags: <defaults>
</compile_context>

<pallas_src>
import jax
import jax.numpy as jnp
import numpy as np
from jax.experimental import pallas as pl
from jax.experimental.pallas import tpu as pltpu

EPS = 1e-5


# --------------------------------------------------------------------------
# in-kernel helpers
# --------------------------------------------------------------------------
def _conv3x3_im2col(x3d, w_ref, pad_ref, col_ref):
    """3x3 'SAME' conv of one (H, W, C) image as a single im2col matmul.

    x3d     : (H, W, C)      f32 value
    w_ref   : (9*C, C)       HWIO weight reshaped to (ky*kx*cin, cout)
    pad_ref : (H+2, W+2, C)  VMEM scratch; only the 1-px border is zeroed
    col_ref : (H, W, 9*C)    VMEM scratch holding the im2col operand
    returns : (H, W, C)      f32 conv output
    """
    H, W, C = x3d.shape

    # Zero ONLY the 4 border slices; the interior is fully overwritten below.
    pad_ref[0:1, :, :] = jnp.zeros((1, W + 2, C), jnp.float32)
    pad_ref[H + 1:H + 2, :, :] = jnp.zeros((1, W + 2, C), jnp.float32)
    pad_ref[1:H + 1, 0:1, :] = jnp.zeros((H, 1, C), jnp.float32)
    pad_ref[1:H + 1, W + 1:W + 2, :] = jnp.zeros((H, 1, C), jnp.float32)
    pad_ref[1:H + 1, 1:W + 1, :] = x3d

    # im2col: stack the 9 shifted windows along channels -> one K=9*C matmul.
    for ky in range(3):
        for kx in range(3):
            j = (3 * ky + kx) * C
            col_ref[:, :, j:j + C] = pad_ref[ky:ky + H, kx:kx + W, :]

    # Single MXU contraction; accumulation lives in the MXU, not the VPU.
    return jax.lax.dot_general(
        col_ref[...], w_ref[...],
        dimension_numbers=(((2,), (0,)), ((), ())),
        preferred_element_type=jnp.float32)


def _write_partial_stats(y, stats_ref):
    """Single-pass per-channel partial sums for BN: sum(x) and sum(x^2)."""
    stats_ref[:, 0:1, :] = jnp.sum(y, axis=(0, 1), keepdims=True)
    stats_ref[:, 1:2, :] = jnp.sum(y * y, axis=(0, 1), keepdims=True)


# --------------------------------------------------------------------------
# kernels (grid = (N,): one batch element per grid step, "parallel")
# --------------------------------------------------------------------------
def conv1_stats_kernel(x_ref, w_ref, y_ref, stats_ref, pad_ref, col_ref):
    y = _conv3x3_im2col(x_ref[0], w_ref, pad_ref, col_ref)
    _write_partial_stats(y, stats_ref)
    y_ref[0] = y


def bn_relu_conv2_stats_kernel(y1_ref, scale_ref, shift_ref, w_ref,
                               y2_ref, stats_ref, pad_ref, col_ref):
    # Folded BN1 (one FMA) + ReLU, then conv2.
    t = jnp.maximum(y1_ref[0] * scale_ref[...] + shift_ref[...], 0.0)
    y = _conv3x3_im2col(t, w_ref, pad_ref, col_ref)
    _write_partial_stats(y, stats_ref)
    y2_ref[0] = y


def bn_add_relu_kernel(y2_ref, x_ref, scale_ref, shift_ref, out_ref):
    # Fully lane-dense (H, W*C) elementwise: folded BN2 + residual + ReLU.
    t = y2_ref[0] * scale_ref[...] + shift_ref[...] + x_ref[0]
    out_ref[0] = jnp.maximum(t, 0.0)


# --------------------------------------------------------------------------
# host wrapper
# --------------------------------------------------------------------------
def _fold_bn(partial_stats, gamma, beta, count):
    """Fold batch stats (biased variance, training mode) + affine into
    scale/shift so the kernel applies BN as a single y*scale + shift."""
    mean = jnp.sum(partial_stats[:, 0, :], axis=0) / count
    var = jnp.sum(partial_stats[:, 1, :], axis=0) / count - mean * mean
    scale = gamma * jax.lax.rsqrt(var + EPS)
    shift = beta - mean * scale
    return scale, shift


@jax.jit
def basic_block(x, w1, g1, b1, w2, g2, b2):
    """x: (N, H, W, C) f32; w*: (3, 3, C, C) HWIO; g*/b*: (C,) BN affine."""
    N, H, W, C = x.shape
    WC = W * C
    count = float(N * H * W)

    w1_mat = w1.reshape(9 * C, C)   # (ky, kx, cin) flattened -> im2col K axis
    w2_mat = w2.reshape(9 * C, C)

    act_nhwc = pl.BlockSpec((1, H, W, C), lambda n: (n, 0, 0, 0))
    act_flat = pl.BlockSpec((1, H, WC), lambda n: (n, 0, 0))
    w_spec = pl.BlockSpec((9 * C, C), lambda n: (0, 0))
    chan_spec = pl.BlockSpec((1, C), lambda n: (0, 0))
    lane_spec = pl.BlockSpec((1, WC), lambda n: (0, 0))
    stats_spec = pl.BlockSpec((1, 2, C), lambda n: (n, 0, 0))

    conv_scratch = [pltpu.VMEM((H + 2, W + 2, C), jnp.float32),
                    pltpu.VMEM((H, W, 9 * C), jnp.float32)]

    cparams = pltpu.CompilerParams(
        dimension_semantics=("parallel",),     # batch axis -> both TCs on v7x
        vmem_limit_bytes=32 * 1024 * 1024,     # ample headroom even on v7x
    )

    # ---- pass 1: conv1 + partial BN1 statistics -----------------------------
    y1, st1 = pl.pallas_call(
        conv1_stats_kernel,
        grid=(N,),
        in_specs=[act_nhwc, w_spec],
        out_specs=(act_nhwc, stats_spec),
        out_shape=(jax.ShapeDtypeStruct((N, H, W, C), jnp.float32),
                   jax.ShapeDtypeStruct((N, 2, C), jnp.float32)),
        scratch_shapes=conv_scratch,
        compiler_params=cparams,
    )(x, w1_mat)

    scale1, shift1 = _fold_bn(st1, g1, b1, count)

    # ---- pass 2: bn1(folded) + relu + conv2 + partial BN2 statistics --------
    y2, st2 = pl.pallas_call(
        bn_relu_conv2_stats_kernel,
        grid=(N,),
        in_specs=[act_nhwc, chan_spec, chan_spec, w_spec],
        out_specs=(act_nhwc, stats_spec),
        out_shape=(jax.ShapeDtypeStruct((N, H, W, C), jnp.float32),
                   jax.ShapeDtypeStruct((N, 2, C), jnp.float32)),
        scratch_shapes=conv_scratch,
        compiler_params=cparams,
    )(y1, scale1.reshape(1, C), shift1.reshape(1, C), w2_mat)

    scale2, shift2 = _fold_bn(st2, g2, b2, count)

    # ---- pass 3: bn2(folded) + residual + relu, lane-dense (W*C = 128) ------
    out_flat = pl.pallas_call(
        bn_add_relu_kernel,
        grid=(N,),
        in_specs=[act_flat, act_flat, lane_spec, lane_spec],
        out_specs=act_flat,
        out_shape=jax.ShapeDtypeStruct((N, H, WC), jnp.float32),
        compiler_params=cparams,
    )(y2.reshape(N, H, WC), x.reshape(N, H, WC),
      jnp.tile(scale2, W).reshape(1, WC), jnp.tile(shift2, W).reshape(1, WC))

    return out_flat.reshape(N, H, W, C)


# --------------------------------------------------------------------------
# pure-JAX reference (matches the PyTorch forward, training-mode BN)
# --------------------------------------------------------------------------
def basic_block_ref(x, w1, g1, b1, w2, g2, b2):
    def conv(inp, w):
        return jax.lax.conv_general_dilated(
            inp, w, window_strides=(1, 1), padding="SAME",
            dimension_numbers=("NHWC", "HWIO", "NHWC"))

    def bn(t, g, b):
        m = t.mean(axis=(0, 1, 2))
        v = ((t - m) ** 2).mean(axis=(0, 1, 2))
        return (t - m) * jax.lax.rsqrt(v + EPS) * g + b

    t = jax.nn.relu(bn(conv(x, w1), g1, b1))
    t = bn(conv(t, w2), g2, b2) + x
    return jax.nn.relu(t)


if __name__ == "__main__":
    # NCHW (2, 8, 16, 16) in PyTorch terms -> NHWC (2, 16, 16, 8); W*C = 128.
    N, H, W, C = 2, 16, 16, 8

    key = jax.random.PRNGKey(0)
    kx, k1, k2, kg1, kb1, kg2, kb2 = jax.random.split(key, 7)

    x = jax.random.normal(kx, (N, H, W, C), dtype=jnp.float32)

    # Deterministic "norm_initialize_weights"-style init (zero-mean normal).
    w1 = jax.random.normal(k1, (3, 3, C, C), dtype=jnp.float32) * 0.1
    w2 = jax.random.normal(k2, (3, 3, C, C), dtype=jnp.float32) * 0.1

    # BN affine params (default gamma=1, beta=0; perturbed to exercise them).
    g1 = 1.0 + 0.1 * jax.random.normal(kg1, (C,), dtype=jnp.float32)
    b1 = 0.1 * jax.random.normal(kb1, (C,), dtype=jnp.float32)
    g2 = 1.0 + 0.1 * jax.random.normal(kg2, (C,), dtype=jnp.float32)
    b2 = 0.1 * jax.random.normal(kb2, (C,), dtype=jnp.float32)

    out = jax.block_until_ready(basic_block(x, w1, g1, b1, w2, g2, b2))
    ref = jax.block_until_ready(basic_block_ref(x, w1, g1, b1, w2, g2, b2))

    np.testing.assert_allclose(np.asarray(out), np.asarray(ref),
                               rtol=1e-4, atol=1e-4)
    print("KERNEL_OK")
</pallas_src>

<mosaic_0001>
module attributes {stable_mosaic.version = 11 : i64} {
  func.func @conv1_stats_kernel(%arg0: i32, %arg1: memref<1x16x16x8xf32, #tpu.memory_space<vmem>>, %arg2: memref<72x8xf32, #tpu.memory_space<vmem>>, %arg3: memref<1x16x16x8xf32, #tpu.memory_space<vmem>>, %arg4: memref<1x2x8xf32, #tpu.memory_space<vmem>>, %arg5: memref<18x18x8xf32, #tpu.memory_space<vmem>>, %arg6: memref<16x16x72xf32, #tpu.memory_space<vmem>>) attributes {dimension_semantics = [#tpu.dimension_semantics<parallel>], iteration_bounds = array<i64: 2>, scalar_prefetch = 0 : i64, scratch_operands = 2 : i64, tpu.core_type = #tpu.core_type<tc>, window_params = [{transform_indices = @transform_0, window_bounds = array<i64: 1, 16, 16, 8>}, {pipeline_mode = #tpu.pipeline_mode<synchronous>, transform_indices = @transform_1, window_bounds = array<i64: 72, 8>}, {transform_indices = @transform_2, window_bounds = array<i64: 1, 16, 16, 8>}, {transform_indices = @transform_3, window_bounds = array<i64: 1, 2, 8>}]} {
    %c0 = arith.constant 0 : index
    %c0_0 = arith.constant 0 : index
    %c0_1 = arith.constant 0 : index
    %c0_2 = arith.constant 0 : index
    %0 = vector.load %arg1[%c0, %c0_0, %c0_1, %c0_2] : memref<1x16x16x8xf32, #tpu.memory_space<vmem>>, vector<1x16x16x8xf32>
    %1 = vector.shape_cast %0 : vector<1x16x16x8xf32> to vector<16x16x8xf32>
    %cst = arith.constant 0.000000e+00 : f32
    %2 = vector.broadcast %cst : f32 to vector<1x18x8xf32>
    %c0_3 = arith.constant 0 : index
    %c0_4 = arith.constant 0 : index
    %c0_5 = arith.constant 0 : index
    %3 = vector.load %arg5[%c0_3, %c0_4, %c0_5] : memref<18x18x8xf32, #tpu.memory_space<vmem>>, vector<1x18x8xf32>
    tpu.vector_store %arg5[%c0_3, %c0_4, %c0_5], %2 {strides = array<i32>} : memref<18x18x8xf32, #tpu.memory_space<vmem>>, vector<1x18x8xf32>,
    %cst_6 = arith.constant 0.000000e+00 : f32
    %4 = vector.broadcast %cst_6 : f32 to vector<1x18x8xf32>
    %c17 = arith.constant 17 : index
    %c0_7 = arith.constant 0 : index
    %c0_8 = arith.constant 0 : index
    %5 = vector.load %arg5[%c17, %c0_7, %c0_8] : memref<18x18x8xf32, #tpu.memory_space<vmem>>, vector<1x18x8xf32>
    tpu.vector_store %arg5[%c17, %c0_7, %c0_8], %4 {strides = array<i32>} : memref<18x18x8xf32, #tpu.memory_space<vmem>>, vector<1x18x8xf32>,
    %cst_9 = arith.constant 0.000000e+00 : f32
    %6 = vector.broadcast %cst_9 : f32 to vector<16x1x8xf32>
    %c1 = arith.constant 1 : index
    %c0_10 = arith.constant 0 : index
    %c0_11 = arith.constant 0 : index
    %7 = vector.load %arg5[%c1, %c0_10, %c0_11] : memref<18x18x8xf32, #tpu.memory_space<vmem>>, vector<16x1x8xf32>
    tpu.vector_store %arg5[%c1, %c0_10, %c0_11], %6 {strides = array<i32>} : memref<18x18x8xf32, #tpu.memory_space<vmem>>, vector<16x1x8xf32>,
    %cst_12 = arith.constant 0.000000e+00 : f32
    %8 = vector.broadcast %cst_12 : f32 to vector<16x1x8xf32>
    %c1_13 = arith.constant 1 : index
    %c17_14 = arith.constant 17 : index
    %c0_15 = arith.constant 0 : index
    %9 = vector.load %arg5[%c1_13, %c17_14, %c0_15] : memref<18x18x8xf32, #tpu.memory_space<vmem>>, vector<16x1x8xf32>
    tpu.vector_store %arg5[%c1_13, %c17_14, %c0_15], %8 {strides = array<i32>} : memref<18x18x8xf32, #tpu.memory_space<vmem>>, vector<16x1x8xf32>,
    %c1_16 = arith.constant 1 : index
    %c1_17 = arith.constant 1 : index
    %c0_18 = arith.constant 0 : index
    %10 = vector.load %arg5[%c1_16, %c1_17, %c0_18] : memref<18x18x8xf32, #tpu.memory_space<vmem>>, vector<16x16x8xf32>
    tpu.vector_store %arg5[%c1_16, %c1_17, %c0_18], %1 {strides = array<i32>} : memref<18x18x8xf32, #tpu.memory_space<vmem>>, vector<16x16x8xf32>,
    %c0_19 = arith.constant 0 : index
    %c0_20 = arith.constant 0 : index
    %c0_21 = arith.constant 0 : index
    %11 = vector.load %arg5[%c0_19, %c0_20, %c0_21] : memref<18x18x8xf32, #tpu.memory_space<vmem>>, vector<16x16x8xf32>
    %c0_22 = arith.constant 0 : index
    %c0_23 = arith.constant 0 : index
    %c0_24 = arith.constant 0 : index
    %12 = vector.load %arg6[%c0_22, %c0_23, %c0_24] : memref<16x16x72xf32, #tpu.memory_space<vmem>>, vector<16x16x8xf32>
    tpu.vector_store %arg6[%c0_22, %c0_23, %c0_24], %11 {strides = array<i32>} : memref<16x16x72xf32, #tpu.memory_space<vmem>>, vector<16x16x8xf32>,
    %c0_25 = arith.constant 0 : index
    %c1_26 = arith.constant 1 : index
    %c0_27 = arith.constant 0 : index
    %13 = vector.load %arg5[%c0_25, %c1_26, %c0_27] : memref<18x18x8xf32, #tpu.memory_space<vmem>>, vector<16x16x8xf32>
    %c0_28 = arith.constant 0 : index
    %c0_29 = arith.constant 0 : index
    %c8 = arith.constant 8 : index
    %14 = vector.load %arg6[%c0_28, %c0_29, %c8] : memref<16x16x72xf32, #tpu.memory_space<vmem>>, vector<16x16x8xf32>
    tpu.vector_store %arg6[%c0_28, %c0_29, %c8], %13 {strides = array<i32>} : memref<16x16x72xf32, #tpu.memory_space<vmem>>, vector<16x16x8xf32>,
    %c0_30 = arith.constant 0 : index
    %c2 = arith.constant 2 : index
    %c0_31 = arith.constant 0 : index
    %15 = vector.load %arg5[%c0_30, %c2, %c0_31] : memref<18x18x8xf32, #tpu.memory_space<vmem>>, vector<16x16x8xf32>
    %c0_32 = arith.constant 0 : index
    %c0_33 = arith.constant 0 : index
    %c16 = arith.constant 16 : index
    %16 = vector.load %arg6[%c0_32, %c0_33, %c16] : memref<16x16x72xf32, #tpu.memory_space<vmem>>, vector<16x16x8xf32>
    tpu.vector_store %arg6[%c0_32, %c0_33, %c16], %15 {strides = array<i32>} : memref<16x16x72xf32, #tpu.memory_space<vmem>>, vector<16x16x8xf32>,
    %c1_34 = arith.constant 1 : index
    %c0_35 = arith.constant 0 : index
    %c0_36 = arith.constant 0 : index
    %17 = vector.load %arg5[%c1_34, %c0_35, %c0_36] : memref<18x18x8xf32, #tpu.memory_space<vmem>>, vector<16x16x8xf32>
    %c0_37 = arith.constant 0 : index
    %c0_38 = arith.constant 0 : index
    %c24 = arith.constant 24 : index
    %18 = vector.load %arg6[%c0_37, %c0_38, %c24] : memref<16x16x72xf32, #tpu.memory_space<vmem>>, vector<16x16x8xf32>
    tpu.vector_store %arg6[%c0_37, %c0_38, %c24], %17 {strides = array<i32>} : memref<16x16x72xf32, #tpu.memory_space<vmem>>, vector<16x16x8xf32>,
    %c1_39 = arith.constant 1 : index
    %c1_40 = arith.constant 1 : index
    %c0_41 = arith.constant 0 : index
    %19 = vector.load %arg5[%c1_39, %c1_40, %c0_41] : memref<18x18x8xf32, #tpu.memory_space<vmem>>, vector<16x16x8xf32>
    %c0_42 = arith.constant 0 : index
    %c0_43 = arith.constant 0 : index
    %c32 = arith.constant 32 : index
    %20 = vector.load %arg6[%c0_42, %c0_43, %c32] : memref<16x16x72xf32, #tpu.memory_space<vmem>>, vector<16x16x8xf32>
    tpu.vector_store %arg6[%c0_42, %c0_43, %c32], %19 {strides = array<i32>} : memref<16x16x72xf32, #tpu.memory_space<vmem>>, vector<16x16x8xf32>,
    %c1_44 = arith.constant 1 : index
    %c2_45 = arith.constant 2 : index
    %c0_46 = arith.constant 0 : index
    %21 = vector.load %arg5[%c1_44, %c2_45, %c0_46] : memref<18x18x8xf32, #tpu.memory_space<vmem>>, vector<16x16x8xf32>
    %c0_47 = arith.constant 0 : index
    %c0_48 = arith.constant 0 : index
    %c40 = arith.constant 40 : index
    %22 = vector.load %arg6[%c0_47, %c0_48, %c40] : memref<16x16x72xf32, #tpu.memory_space<vmem>>, vector<16x16x8xf32>
    tpu.vector_store %arg6[%c0_47, %c0_48, %c40], %21 {strides = array<i32>} : memref<16x16x72xf32, #tpu.memory_space<vmem>>, vector<16x16x8xf32>,
    %c2_49 = arith.constant 2 : index
    %c0_50 = arith.constant 0 : index
    %c0_51 = arith.constant 0 : index
    %23 = vector.load %arg5[%c2_49, %c0_50, %c0_51] : memref<18x18x8xf32, #tpu.memory_space<vmem>>, vector<16x16x8xf32>
    %c0_52 = arith.constant 0 : index
    %c0_53 = arith.constant 0 : index
    %c48 = arith.constant 48 : index
    %24 = vector.load %arg6[%c0_52, %c0_53, %c48] : memref<16x16x72xf32, #tpu.memory_space<vmem>>, vector<16x16x8xf32>
    tpu.vector_store %arg6[%c0_52, %c0_53, %c48], %23 {strides = array<i32>} : memref<16x16x72xf32, #tpu.memory_space<vmem>>, vector<16x16x8xf32>,
    %c2_54 = arith.constant 2 : index
    %c1_55 = arith.constant 1 : index
    %c0_56 = arith.constant 0 : index
    %25 = vector.load %arg5[%c2_54, %c1_55, %c0_56] : memref<18x18x8xf32, #tpu.memory_space<vmem>>, vector<16x16x8xf32>
    %c0_57 = arith.constant 0 : index
    %c0_58 = arith.constant 0 : index
    %c56 = arith.constant 56 : index
    %26 = vector.load %arg6[%c0_57, %c0_58, %c56] : memref<16x16x72xf32, #tpu.memory_space<vmem>>, vector<16x16x8xf32>
    tpu.vector_store %arg6[%c0_57, %c0_58, %c56], %25 {strides = array<i32>} : memref<16x16x72xf32, #tpu.memory_space<vmem>>, vector<16x16x8xf32>,
    %c2_59 = arith.constant 2 : index
    %c2_60 = arith.constant 2 : index
    %c0_61 = arith.constant 0 : index
    %27 = vector.load %arg5[%c2_59, %c2_60, %c0_61] : memref<18x18x8xf32, #tpu.memory_space<vmem>>, vector<16x16x8xf32>
    %c0_62 = arith.constant 0 : index
    %c0_63 = arith.constant 0 : index
    %c64 = arith.constant 64 : index
    %28 = vector.load %arg6[%c0_62, %c0_63, %c64] : memref<16x16x72xf32, #tpu.memory_space<vmem>>, vector<16x16x8xf32>
    tpu.vector_store %arg6[%c0_62, %c0_63, %c64], %27 {strides = array<i32>} : memref<16x16x72xf32, #tpu.memory_space<vmem>>, vector<16x16x8xf32>,
    %c0_64 = arith.constant 0 : index
    %c0_65 = arith.constant 0 : index
    %c0_66 = arith.constant 0 : index
    %29 = vector.load %arg6[%c0_64, %c0_65, %c0_66] : memref<16x16x72xf32, #tpu.memory_space<vmem>>, vector<16x16x72xf32>
    %c0_67 = arith.constant 0 : index
    %c0_68 = arith.constant 0 : index
    %30 = vector.load %arg2[%c0_67, %c0_68] : memref<72x8xf32, #tpu.memory_space<vmem>>, vector<72x8xf32>
    %cst_69 = arith.constant dense<0.000000e+00> : vector<16x16x8xf32>
    %31 = tpu.matmul %29, %30, %cst_69 {dimension_numbers = #tpu.dot_dimension_numbers<[2], [0], [0, 1], [1], [0, 0, 0, 1, 1, 1], [], []>} : vector<16x16x72xf32>, vector<72x8xf32>, vector<16x16x8xf32> -> vector<16x16x8xf32>
    %cst_70 = arith.constant dense<0.000000e+00> : vector<8xf32>
    %32 = vector.multi_reduction <add>, %31, %cst_70 [0, 1] : vector<16x16x8xf32> to vector<8xf32>
    %33 = vector.shape_cast %32 : vector<8xf32> to vector<1x1x8xf32>
    %c0_71 = arith.constant 0 : index
    %c0_72 = arith.constant 0 : index
    %c0_73 = arith.constant 0 : index
    %34 = vector.load %arg4[%c0_71, %c0_72, %c0_73] : memref<1x2x8xf32, #tpu.memory_space<vmem>>, vector<1x1x8xf32>
    tpu.vector_store %arg4[%c0_71, %c0_72, %c0_73], %33 {strides = array<i32>} : memref<1x2x8xf32, #tpu.memory_space<vmem>>, vector<1x1x8xf32>,
    %35 = arith.mulf %31, %31 : vector<16x16x8xf32>
    %cst_74 = arith.constant dense<0.000000e+00> : vector<8xf32>
    %36 = vector.multi_reduction <add>, %35, %cst_74 [0, 1] : vector<16x16x8xf32> to vector<8xf32>
    %37 = vector.shape_cast %36 : vector<8xf32> to vector<1x1x8xf32>
    %c0_75 = arith.constant 0 : index
    %c1_76 = arith.constant 1 : index
    %c0_77 = arith.constant 0 : index
    %38 = vector.load %arg4[%c0_75, %c1_76, %c0_77] : memref<1x2x8xf32, #tpu.memory_space<vmem>>, vector<1x1x8xf32>
    tpu.vector_store %arg4[%c0_75, %c1_76, %c0_77], %37 {strides = array<i32>} : memref<1x2x8xf32, #tpu.memory_space<vmem>>, vector<1x1x8xf32>,
    %c0_78 = arith.constant 0 : index
    %c0_79 = arith.constant 0 : index
    %c0_80 = arith.constant 0 : index
    %c0_81 = arith.constant 0 : index
    %39 = vector.load %arg3[%c0_78, %c0_79, %c0_80, %c0_81] : memref<1x16x16x8xf32, #tpu.memory_space<vmem>>, vector<1x16x16x8xf32>
    %40 = vector.shape_cast %39 : vector<1x16x16x8xf32> to vector<16x16x8xf32>
    %41 = vector.shape_cast %31 : vector<16x16x8xf32> to vector<1x16x16x8xf32>
    tpu.vector_store %arg3[%c0_78, %c0_79, %c0_80, %c0_81], %41 {strides = array<i32>} : memref<1x16x16x8xf32, #tpu.memory_space<vmem>>, vector<1x16x16x8xf32>,
    return
  }
  func.func @transform_0(%arg0: i32) -> (i32, i32, i32, i32) {
    %c0_i32 = arith.constant 0 : i32
    %c0_i32_0 = arith.constant 0 : i32
    %c0_i32_1 = arith.constant 0 : i32
    %c0_i32_2 = arith.constant 0 : i32
    return %arg0, %c0_i32, %c0_i32_0, %c0_i32_1 : i32, i32, i32, i32
  }
  func.func @transform_1(%arg0: i32) -> (i32, i32) {
    %c0_i32 = arith.constant 0 : i32
    %c0_i32_0 = arith.constant 0 : i32
    %c0_i32_1 = arith.constant 0 : i32
    return %c0_i32, %c0_i32_0 : i32, i32
  }
  func.func @transform_2(%arg0: i32) -> (i32, i32, i32, i32) {
    %c0_i32 = arith.constant 0 : i32
    %c0_i32_0 = arith.constant 0 : i32
    %c0_i32_1 = arith.constant 0 : i32
    %c0_i32_2 = arith.constant 0 : i32
    return %arg0, %c0_i32, %c0_i32_0, %c0_i32_1 : i32, i32, i32, i32
  }
  func.func @transform_3(%arg0: i32) -> (i32, i32, i32) {
    %c0_i32 = arith.constant 0 : i32
    %c0_i32_0 = arith.constant 0 : i32
    %c0_i32_1 = arith.constant 0 : i32
    return %arg0, %c0_i32, %c0_i32_0 : i32, i32, i32
  }
}

module attributes {stable_mosaic.version = 11 : i64} {
  func.func @bn_relu_conv2_stats_kernel(%arg0: i32, %arg1: memref<1x16x16x8xf32, #tpu.memory_space<vmem>>, %arg2: memref<1x8xf32, #tpu.memory_space<vmem>>, %arg3: memref<1x8xf32, #tpu.memory_space<vmem>>, %arg4: memref<72x8xf32, #tpu.memory_space<vmem>>, %arg5: memref<1x16x16x8xf32, #tpu.memory_space<vmem>>, %arg6: memref<1x2x8xf32, #tpu.memory_space<vmem>>, %arg7: memref<18x18x8xf32, #tpu.memory_space<vmem>>, %arg8: memref<16x16x72xf32, #tpu.memory_space<vmem>>) attributes {dimension_semantics = [#tpu.dimension_semantics<parallel>], iteration_bounds = array<i64: 2>, scalar_prefetch = 0 : i64, scratch_operands = 2 : i64, tpu.core_type = #tpu.core_type<tc>, window_params = [{transform_indices = @transform_0, window_bounds = array<i64: 1, 16, 16, 8>}, {pipeline_mode = #tpu.pipeline_mode<synchronous>, transform_indices = @transform_1, window_bounds = array<i64: 1, 8>}, {pipeline_mode = #tpu.pipeline_mode<synchronous>, transform_indices = @transform_2, window_bounds = array<i64: 1, 8>}, {pipeline_mode = #tpu.pipeline_mode<synchronous>, transform_indices = @transform_3, window_bounds = array<i64: 72, 8>}, {transform_indices = @transform_4, window_bounds = array<i64: 1, 16, 16, 8>}, {transform_indices = @transform_5, window_bounds = array<i64: 1, 2, 8>}]} {
    %c0 = arith.constant 0 : index
    %c0_0 = arith.constant 0 : index
    %c0_1 = arith.constant 0 : index
    %c0_2 = arith.constant 0 : index
    %0 = vector.load %arg1[%c0, %c0_0, %c0_1, %c0_2] : memref<1x16x16x8xf32, #tpu.memory_space<vmem>>, vector<1x16x16x8xf32>
    %1 = vector.shape_cast %0 : vector<1x16x16x8xf32> to vector<16x16x8xf32>
    %c0_3 = arith.constant 0 : index
    %c0_4 = arith.constant 0 : index
    %2 = vector.load %arg2[%c0_3, %c0_4] : memref<1x8xf32, #tpu.memory_space<vmem>>, vector<1x8xf32>
    %3 = vector.shape_cast %2 : vector<1x8xf32> to vector<1x1x8xf32>
    %4 = vector.broadcast %3 : vector<1x1x8xf32> to vector<16x16x8xf32>
    %5 = arith.mulf %1, %4 : vector<16x16x8xf32>
    %c0_5 = arith.constant 0 : index
    %c0_6 = arith.constant 0 : index
    %6 = vector.load %arg3[%c0_5, %c0_6] : memref<1x8xf32, #tpu.memory_space<vmem>>, vector<1x8xf32>
    %7 = vector.shape_cast %6 : vector<1x8xf32> to vector<1x1x8xf32>
    %8 = vector.broadcast %7 : vector<1x1x8xf32> to vector<16x16x8xf32>
    %9 = arith.addf %5, %8 : vector<16x16x8xf32>
    %cst = arith.constant 0.000000e+00 : f32
    %10 = vector.broadcast %cst : f32 to vector<16x16x8xf32>
    %11 = arith.maximumf %9, %10 : vector<16x16x8xf32>
    %cst_7 = arith.constant 0.000000e+00 : f32
    %12 = vector.broadcast %cst_7 : f32 to vector<1x18x8xf32>
    %c0_8 = arith.constant 0 : index
    %c0_9 = arith.constant 0 : index
    %c0_10 = arith.constant 0 : index
    %13 = vector.load %arg7[%c0_8, %c0_9, %c0_10] : memref<18x18x8xf32, #tpu.memory_space<vmem>>, vector<1x18x8xf32>
    tpu.vector_store %arg7[%c0_8, %c0_9, %c0_10], %12 {strides = array<i32>} : memref<18x18x8xf32, #tpu.memory_space<vmem>>, vector<1x18x8xf32>,
    %cst_11 = arith.constant 0.000000e+00 : f32
    %14 = vector.broadcast %cst_11 : f32 to vector<1x18x8xf32>
    %c17 = arith.constant 17 : index
    %c0_12 = arith.constant 0 : index
    %c0_13 = arith.constant 0 : index
    %15 = vector.load %arg7[%c17, %c0_12, %c0_13] : memref<18x18x8xf32, #tpu.memory_space<vmem>>, vector<1x18x8xf32>
    tpu.vector_store %arg7[%c17, %c0_12, %c0_13], %14 {strides = array<i32>} : memref<18x18x8xf32, #tpu.memory_space<vmem>>, vector<1x18x8xf32>,
    %cst_14 = arith.constant 0.000000e+00 : f32
    %16 = vector.broadcast %cst_14 : f32 to vector<16x1x8xf32>
    %c1 = arith.constant 1 : index
    %c0_15 = arith.constant 0 : index
    %c0_16 = arith.constant 0 : index
    %17 = vector.load %arg7[%c1, %c0_15, %c0_16] : memref<18x18x8xf32, #tpu.memory_space<vmem>>, vector<16x1x8xf32>
    tpu.vector_store %arg7[%c1, %c0_15, %c0_16], %16 {strides = array<i32>} : memref<18x18x8xf32, #tpu.memory_space<vmem>>, vector<16x1x8xf32>,
    %cst_17 = arith.constant 0.000000e+00 : f32
    %18 = vector.broadcast %cst_17 : f32 to vector<16x1x8xf32>
    %c1_18 = arith.constant 1 : index
    %c17_19 = arith.constant 17 : index
    %c0_20 = arith.constant 0 : index
    %19 = vector.load %arg7[%c1_18, %c17_19, %c0_20] : memref<18x18x8xf32, #tpu.memory_space<vmem>>, vector<16x1x8xf32>
    tpu.vector_store %arg7[%c1_18, %c17_19, %c0_20], %18 {strides = array<i32>} : memref<18x18x8xf32, #tpu.memory_space<vmem>>, vector<16x1x8xf32>,
    %c1_21 = arith.constant 1 : index
    %c1_22 = arith.constant 1 : index
    %c0_23 = arith.constant 0 : index
    %20 = vector.load %arg7[%c1_21, %c1_22, %c0_23] : memref<18x18x8xf32, #tpu.memory_space<vmem>>, vector<16x16x8xf32>
    tpu.vector_store %arg7[%c1_21, %c1_22, %c0_23], %11 {strides = array<i32>} : memref<18x18x8xf32, #tpu.memory_space<vmem>>, vector<16x16x8xf32>,
    %c0_24 = arith.constant 0 : index
    %c0_25 = arith.constant 0 : index
    %c0_26 = arith.constant 0 : index
    %21 = vector.load %arg7[%c0_24, %c0_25, %c0_26] : memref<18x18x8xf32, #tpu.memory_space<vmem>>, vector<16x16x8xf32>
    %c0_27 = arith.constant 0 : index
    %c0_28 = arith.constant 0 : index
    %c0_29 = arith.constant 0 : index
    %22 = vector.load %arg8[%c0_27, %c0_28, %c0_29] : memref<16x16x72xf32, #tpu.memory_space<vmem>>, vector<16x16x8xf32>
    tpu.vector_store %arg8[%c0_27, %c0_28, %c0_29], %21 {strides = array<i32>} : memref<16x16x72xf32, #tpu.memory_space<vmem>>, vector<16x16x8xf32>,
    %c0_30 = arith.constant 0 : index
    %c1_31 = arith.constant 1 : index
    %c0_32 = arith.constant 0 : index
    %23 = vector.load %arg7[%c0_30, %c1_31, %c0_32] : memref<18x18x8xf32, #tpu.memory_space<vmem>>, vector<16x16x8xf32>
    %c0_33 = arith.constant 0 : index
    %c0_34 = arith.constant 0 : index
    %c8 = arith.constant 8 : index
    %24 = vector.load %arg8[%c0_33, %c0_34, %c8] : memref<16x16x72xf32, #tpu.memory_space<vmem>>, vector<16x16x8xf32>
    tpu.vector_store %arg8[%c0_33, %c0_34, %c8], %23 {strides = array<i32>} : memref<16x16x72xf32, #tpu.memory_space<vmem>>, vector<16x16x8xf32>,
    %c0_35 = arith.constant 0 : index
    %c2 = arith.constant 2 : index
    %c0_36 = arith.constant 0 : index
    %25 = vector.load %arg7[%c0_35, %c2, %c0_36] : memref<18x18x8xf32, #tpu.memory_space<vmem>>, vector<16x16x8xf32>
    %c0_37 = arith.constant 0 : index
    %c0_38 = arith.constant 0 : index
    %c16 = arith.constant 16 : index
    %26 = vector.load %arg8[%c0_37, %c0_38, %c16] : memref<16x16x72xf32, #tpu.memory_space<vmem>>, vector<16x16x8xf32>
    tpu.vector_store %arg8[%c0_37, %c0_38, %c16], %25 {strides = array<i32>} : memref<16x16x72xf32, #tpu.memory_space<vmem>>, vector<16x16x8xf32>,
    %c1_39 = arith.constant 1 : index
    %c0_40 = arith.constant 0 : index
    %c0_41 = arith.constant 0 : index
    %27 = vector.load %arg7[%c1_39, %c0_40, %c0_41] : memref<18x18x8xf32, #tpu.memory_space<vmem>>, vector<16x16x8xf32>
    %c0_42 = arith.constant 0 : index
    %c0_43 = arith.constant 0 : index
    %c24 = arith.constant 24 : index
    %28 = vector.load %arg8[%c0_42, %c0_43, %c24] : memref<16x16x72xf32, #tpu.memory_space<vmem>>, vector<16x16x8xf32>
    tpu.vector_store %arg8[%c0_42, %c0_43, %c24], %27 {strides = array<i32>} : memref<16x16x72xf32, #tpu.memory_space<vmem>>, vector<16x16x8xf32>,
    %c1_44 = arith.constant 1 : index
    %c1_45 = arith.constant 1 : index
    %c0_46 = arith.constant 0 : index
    %29 = vector.load %arg7[%c1_44, %c1_45, %c0_46] : memref<18x18x8xf32, #tpu.memory_space<vmem>>, vector<16x16x8xf32>
    %c0_47 = arith.constant 0 : index
    %c0_48 = arith.constant 0 : index
    %c32 = arith.constant 32 : index
    %30 = vector.load %arg8[%c0_47, %c0_48, %c32] : memref<16x16x72xf32, #tpu.memory_space<vmem>>, vector<16x16x8xf32>
    tpu.vector_store %arg8[%c0_47, %c0_48, %c32], %29 {strides = array<i32>} : memref<16x16x72xf32, #tpu.memory_space<vmem>>, vector<16x16x8xf32>,
    %c1_49 = arith.constant 1 : index
    %c2_50 = arith.constant 2 : index
    %c0_51 = arith.constant 0 : index
    %31 = vector.load %arg7[%c1_49, %c2_50, %c0_51] : memref<18x18x8xf32, #tpu.memory_space<vmem>>, vector<16x16x8xf32>
    %c0_52 = arith.constant 0 : index
    %c0_53 = arith.constant 0 : index
    %c40 = arith.constant 40 : index
    %32 = vector.load %arg8[%c0_52, %c0_53, %c40] : memref<16x16x72xf32, #tpu.memory_space<vmem>>, vector<16x16x8xf32>
    tpu.vector_store %arg8[%c0_52, %c0_53, %c40], %31 {strides = array<i32>} : memref<16x16x72xf32, #tpu.memory_space<vmem>>, vector<16x16x8xf32>,
    %c2_54 = arith.constant 2 : index
    %c0_55 = arith.constant 0 : index
    %c0_56 = arith.constant 0 : index
    %33 = vector.load %arg7[%c2_54, %c0_55, %c0_56] : memref<18x18x8xf32, #tpu.memory_space<vmem>>, vector<16x16x8xf32>
    %c0_57 = arith.constant 0 : index
    %c0_58 = arith.constant 0 : index
    %c48 = arith.constant 48 : index
    %34 = vector.load %arg8[%c0_57, %c0_58, %c48] : memref<16x16x72xf32, #tpu.memory_space<vmem>>, vector<16x16x8xf32>
    tpu.vector_store %arg8[%c0_57, %c0_58, %c48], %33 {strides = array<i32>} : memref<16x16x72xf32, #tpu.memory_space<vmem>>, vector<16x16x8xf32>,
    %c2_59 = arith.constant 2 : index
    %c1_60 = arith.constant 1 : index
    %c0_61 = arith.constant 0 : index
    %35 = vector.load %arg7[%c2_59, %c1_60, %c0_61] : memref<18x18x8xf32, #tpu.memory_space<vmem>>, vector<16x16x8xf32>
    %c0_62 = arith.constant 0 : index
    %c0_63 = arith.constant 0 : index
    %c56 = arith.constant 56 : index
    %36 = vector.load %arg8[%c0_62, %c0_63, %c56] : memref<16x16x72xf32, #tpu.memory_space<vmem>>, vector<16x16x8xf32>
    tpu.vector_store %arg8[%c0_62, %c0_63, %c56], %35 {strides = array<i32>} : memref<16x16x72xf32, #tpu.memory_space<vmem>>, vector<16x16x8xf32>,
    %c2_64 = arith.constant 2 : index
    %c2_65 = arith.constant 2 : index
    %c0_66 = arith.constant 0 : index
    %37 = vector.load %arg7[%c2_64, %c2_65, %c0_66] : memref<18x18x8xf32, #tpu.memory_space<vmem>>, vector<16x16x8xf32>
    %c0_67 = arith.constant 0 : index
    %c0_68 = arith.constant 0 : index
    %c64 = arith.constant 64 : index
    %38 = vector.load %arg8[%c0_67, %c0_68, %c64] : memref<16x16x72xf32, #tpu.memory_space<vmem>>, vector<16x16x8xf32>
    tpu.vector_store %arg8[%c0_67, %c0_68, %c64], %37 {strides = array<i32>} : memref<16x16x72xf32, #tpu.memory_space<vmem>>, vector<16x16x8xf32>,
    %c0_69 = arith.constant 0 : index
    %c0_70 = arith.constant 0 : index
    %c0_71 = arith.constant 0 : index
    %39 = vector.load %arg8[%c0_69, %c0_70, %c0_71] : memref<16x16x72xf32, #tpu.memory_space<vmem>>, vector<16x16x72xf32>
    %c0_72 = arith.constant 0 : index
    %c0_73 = arith.constant 0 : index
    %40 = vector.load %arg4[%c0_72, %c0_73] : memref<72x8xf32, #tpu.memory_space<vmem>>, vector<72x8xf32>
    %cst_74 = arith.constant dense<0.000000e+00> : vector<16x16x8xf32>
    %41 = tpu.matmul %39, %40, %cst_74 {dimension_numbers = #tpu.dot_dimension_numbers<[2], [0], [0, 1], [1], [0, 0, 0, 1, 1, 1], [], []>} : vector<16x16x72xf32>, vector<72x8xf32>, vector<16x16x8xf32> -> vector<16x16x8xf32>
    %cst_75 = arith.constant dense<0.000000e+00> : vector<8xf32>
    %42 = vector.multi_reduction <add>, %41, %cst_75 [0, 1] : vector<16x16x8xf32> to vector<8xf32>
    %43 = vector.shape_cast %42 : vector<8xf32> to vector<1x1x8xf32>
    %c0_76 = arith.constant 0 : index
    %c0_77 = arith.constant 0 : index
    %c0_78 = arith.constant 0 : index
    %44 = vector.load %arg6[%c0_76, %c0_77, %c0_78] : memref<1x2x8xf32, #tpu.memory_space<vmem>>, vector<1x1x8xf32>
    tpu.vector_store %arg6[%c0_76, %c0_77, %c0_78], %43 {strides = array<i32>} : memref<1x2x8xf32, #tpu.memory_space<vmem>>, vector<1x1x8xf32>,
    %45 = arith.mulf %41, %41 : vector<16x16x8xf32>
    %cst_79 = arith.constant dense<0.000000e+00> : vector<8xf32>
    %46 = vector.multi_reduction <add>, %45, %cst_79 [0, 1] : vector<16x16x8xf32> to vector<8xf32>
    %47 = vector.shape_cast %46 : vector<8xf32> to vector<1x1x8xf32>
    %c0_80 = arith.constant 0 : index
    %c1_81 = arith.constant 1 : index
    %c0_82 = arith.constant 0 : index
    %48 = vector.load %arg6[%c0_80, %c1_81, %c0_82] : memref<1x2x8xf32, #tpu.memory_space<vmem>>, vector<1x1x8xf32>
    tpu.vector_store %arg6[%c0_80, %c1_81, %c0_82], %47 {strides = array<i32>} : memref<1x2x8xf32, #tpu.memory_space<vmem>>, vector<1x1x8xf32>,
    %c0_83 = arith.constant 0 : index
    %c0_84 = arith.constant 0 : index
    %c0_85 = arith.constant 0 : index
    %c0_86 = arith.constant 0 : index
    %49 = vector.load %arg5[%c0_83, %c0_84, %c0_85, %c0_86] : memref<1x16x16x8xf32, #tpu.memory_space<vmem>>, vector<1x16x16x8xf32>
    %50 = vector.shape_cast %49 : vector<1x16x16x8xf32> to vector<16x16x8xf32>
    %51 = vector.shape_cast %41 : vector<16x16x8xf32> to vector<1x16x16x8xf32>
    tpu.vector_store %arg5[%c0_83, %c0_84, %c0_85, %c0_86], %51 {strides = array<i32>} : memref<1x16x16x8xf32, #tpu.memory_space<vmem>>, vector<1x16x16x8xf32>,
    return
  }
  func.func @transform_0(%arg0: i32) -> (i32, i32, i32, i32) {
    %c0_i32 = arith.constant 0 : i32
    %c0_i32_0 = arith.constant 0 : i32
    %c0_i32_1 = arith.constant 0 : i32
    %c0_i32_2 = arith.constant 0 : i32
    return %arg0, %c0_i32, %c0_i32_0, %c0_i32_1 : i32, i32, i32, i32
  }
  func.func @transform_1(%arg0: i32) -> (i32, i32) {
    %c0_i32 = arith.constant 0 : i32
    %c0_i32_0 = arith.constant 0 : i32
    %c0_i32_1 = arith.constant 0 : i32
    return %c0_i32, %c0_i32_0 : i32, i32
  }
  func.func @transform_2(%arg0: i32) -> (i32, i32) {
    %c0_i32 = arith.constant 0 : i32
    %c0_i32_0 = arith.constant 0 : i32
    %c0_i32_1 = arith.constant 0 : i32
    return %c0_i32, %c0_i32_0 : i32, i32
  }
  func.func @transform_3(%arg0: i32) -> (i32, i32) {
    %c0_i32 = arith.constant 0 : i32
    %c0_i32_0 = arith.constant 0 : i32
    %c0_i32_1 = arith.constant 0 : i32
    return %c0_i32, %c0_i32_0 : i32, i32
  }
  func.func @transform_4(%arg0: i32) -> (i32, i32, i32, i32) {
    %c0_i32 = arith.constant 0 : i32
    %c0_i32_0 = arith.constant 0 : i32
    %c0_i32_1 = arith.constant 0 : i32
    %c0_i32_2 = arith.constant 0 : i32
    return %arg0, %c0_i32, %c0_i32_0, %c0_i32_1 : i32, i32, i32, i32
  }
  func.func @transform_5(%arg0: i32) -> (i32, i32, i32) {
    %c0_i32 = arith.constant 0 : i32
    %c0_i32_0 = arith.constant 0 : i32
    %c0_i32_1 = arith.constant 0 : i32
    return %arg0, %c0_i32, %c0_i32_0 : i32, i32, i32
  }
}

module attributes {stable_mosaic.version = 11 : i64} {
  func.func @bn_add_relu_kernel(%arg0: i32, %arg1: memref<1x16x128xf32, #tpu.memory_space<vmem>>, %arg2: memref<1x16x128xf32, #tpu.memory_space<vmem>>, %arg3: memref<1x128xf32, #tpu.memory_space<vmem>>, %arg4: memref<1x128xf32, #tpu.memory_space<vmem>>, %arg5: memref<1x16x128xf32, #tpu.memory_space<vmem>>) attributes {dimension_semantics = [#tpu.dimension_semantics<parallel>], iteration_bounds = array<i64: 2>, scalar_prefetch = 0 : i64, scratch_operands = 0 : i64, tpu.core_type = #tpu.core_type<tc>, window_params = [{transform_indices = @transform_0, window_bounds = array<i64: 1, 16, 128>}, {transform_indices = @transform_1, window_bounds = array<i64: 1, 16, 128>}, {pipeline_mode = #tpu.pipeline_mode<synchronous>, transform_indices = @transform_2, window_bounds = array<i64: 1, 128>}, {pipeline_mode = #tpu.pipeline_mode<synchronous>, transform_indices = @transform_3, window_bounds = array<i64: 1, 128>}, {transform_indices = @transform_4, window_bounds = array<i64: 1, 16, 128>}]} {
    %c0 = arith.constant 0 : index
    %c0_0 = arith.constant 0 : index
    %c0_1 = arith.constant 0 : index
    %0 = vector.load %arg1[%c0, %c0_0, %c0_1] : memref<1x16x128xf32, #tpu.memory_space<vmem>>, vector<1x16x128xf32>
    %1 = vector.shape_cast %0 : vector<1x16x128xf32> to vector<16x128xf32>
    %c0_2 = arith.constant 0 : index
    %c0_3 = arith.constant 0 : index
    %2 = vector.load %arg3[%c0_2, %c0_3] : memref<1x128xf32, #tpu.memory_space<vmem>>, vector<1x128xf32>
    %3 = vector.broadcast %2 : vector<1x128xf32> to vector<16x128xf32>
    %4 = arith.mulf %1, %3 : vector<16x128xf32>
    %c0_4 = arith.constant 0 : index
    %c0_5 = arith.constant 0 : index
    %5 = vector.load %arg4[%c0_4, %c0_5] : memref<1x128xf32, #tpu.memory_space<vmem>>, vector<1x128xf32>
    %6 = vector.broadcast %5 : vector<1x128xf32> to vector<16x128xf32>
    %7 = arith.addf %4, %6 : vector<16x128xf32>
    %c0_6 = arith.constant 0 : index
    %c0_7 = arith.constant 0 : index
    %c0_8 = arith.constant 0 : index
    %8 = vector.load %arg2[%c0_6, %c0_7, %c0_8] : memref<1x16x128xf32, #tpu.memory_space<vmem>>, vector<1x16x128xf32>
    %9 = vector.shape_cast %8 : vector<1x16x128xf32> to vector<16x128xf32>
    %10 = arith.addf %7, %9 : vector<16x128xf32>
    %cst = arith.constant 0.000000e+00 : f32
    %11 = vector.broadcast %cst : f32 to vector<16x128xf32>
    %12 = arith.maximumf %10, %11 : vector<16x128xf32>
    %c0_9 = arith.constant 0 : index
    %c0_10 = arith.constant 0 : index
    %c0_11 = arith.constant 0 : index
    %13 = vector.load %arg5[%c0_9, %c0_10, %c0_11] : memref<1x16x128xf32, #tpu.memory_space<vmem>>, vector<1x16x128xf32>
    %14 = vector.shape_cast %13 : vector<1x16x128xf32> to vector<16x128xf32>
    %15 = vector.shape_cast %12 : vector<16x128xf32> to vector<1x16x128xf32>
    tpu.vector_store %arg5[%c0_9, %c0_10, %c0_11], %15 {strides = array<i32>} : memref<1x16x128xf32, #tpu.memory_space<vmem>>, vector<1x16x128xf32>,
    return
  }
  func.func @transform_0(%arg0: i32) -> (i32, i32, i32) {
    %c0_i32 = arith.constant 0 : i32
    %c0_i32_0 = arith.constant 0 : i32
    %c0_i32_1 = arith.constant 0 : i32
    return %arg0, %c0_i32, %c0_i32_0 : i32, i32, i32
  }
  func.func @transform_1(%arg0: i32) -> (i32, i32, i32) {
    %c0_i32 = arith.constant 0 : i32
    %c0_i32_0 = arith.constant 0 : i32
    %c0_i32_1 = arith.constant 0 : i32
    return %arg0, %c0_i32, %c0_i32_0 : i32, i32, i32
  }
  func.func @transform_2(%arg0: i32) -> (i32, i32) {
    %c0_i32 = arith.constant 0 : i32
    %c0_i32_0 = arith.constant 0 : i32
    %c0_i32_1 = arith.constant 0 : i32
    return %c0_i32, %c0_i32_0 : i32, i32
  }
  func.func @transform_3(%arg0: i32) -> (i32, i32) {
    %c0_i32 = arith.constant 0 : i32
    %c0_i32_0 = arith.constant 0 : i32
    %c0_i32_1 = arith.constant 0 : i32
    return %c0_i32, %c0_i32_0 : i32, i32
  }
  func.func @transform_4(%arg0: i32) -> (i32, i32, i32) {
    %c0_i32 = arith.constant 0 : i32
    %c0_i32_0 = arith.constant 0 : i32
    %c0_i32_1 = arith.constant 0 : i32
    return %arg0, %c0_i32, %c0_i32_0 : i32, i32, i32
  }
}

</mosaic_0001>

<bundles_post_ra>
// kernel: tile.13
= control target key start
LH: loop header
LB: loop body
LE: loop exit
PB: predicated region body
PF: predicated region fallthrough
CT: control target
= control target key end

     0   :  { %s28_s0 = inlined_call_operand.vmem [shape: f32[8], index: 0, kind: input, shape index: {}]   ;;  %s29_s1 = inlined_call_operand.vmem [shape: f32[16,8], index: 1, kind: output, shape index: {}]  }
   0x1   :  { %v4_v0 = vld [vmem:[%s28_s0] ss:$0 sm:$0xff] }
   0x2   :  { %5 = vst [vmem:[%s29_s1] sm:$0xff] %v4_v0  ;;  %8 = vst [vmem:[%s29_s1 + $0x8] sm:$0xff] %v4_v0 }

// kernel: tile.14
= control target key start
LH: loop header
LB: loop body
LE: loop exit
PB: predicated region body
PF: predicated region fallthrough
CT: control target
= control target key end

     0   :  { %s133_s10 = smov 120   ;;  %s134_s11 = smov 104   ;;  %vm3_vm0 = vcmask 64512   ;;  %vm9_vm1 = vcmask 1048512   ;;  %vm15_vm2 = vcmask 982912   ;;  %vm21_vm3 = vcmask 917312   ;;  %s209_s0 = inlined_call_operand.vmem [shape: f32[16,8], index: 0, kind: input, shape index: {}]   ;;  %s210_s1 = inlined_call_operand.vmem [shape: f32[1,128], index: 1, kind: output, shape index: {}]  }
   0x1   :  { %v103_v0 = vld [vmem:[%s209_s0 + $0xf] sm:$0x1]   ;;  %v105_v1 = vld [vmem:[%s209_s0 + $0xd] sm:$0x1]   ;;  %v104_v2 = vld [vmem:[%s209_s0 + $0xe] sm:$0x1]  }
   0x2   :  { %7 = vrot.lane.b32.xlu0 %v103_v0, %s133_s10  ;;  %19 = vrot.lane.b32.xlu1 %v105_v1, %s134_s11  ;;  %v106_v3 = vld [vmem:[%s209_s0 + $0xc] sm:$0x1]   ;;  %s135_s16 = smov 112   ;;  %s136_s17 = smov 96   ;;  %v107_v4 = vld [vmem:[%s209_s0 + $0xb] sm:$0x1]  }
   0x3   :  { %v108_v5 = vld [vmem:[%s209_s0 + $0xa] sm:$0x1]   ;;  %v2_v6 = vld [vmem:[%s209_s0] sm:$0x1]   ;;  %s137_s24 = smov 88   ;;  %s138_s25 = smov 80  }
   0x4   :  { %4 = vst.msk [vmem:[#allocation0] sm:$0x1] %vm3_vm0, %v2_v6   ;;  %v109_v7 = vld [vmem:[%s209_s0 + $0x9] sm:$0x1]   ;;  %v110_v8 = vld [vmem:[%s209_s0 + $0x8] sm:$0x1]  }
   0x5   :  { %s139_s30 = smov 72   ;;  %s140_s2 = smov 64   ;;  %v111_v9 = vld [vmem:[%s209_s0 + $0x7] sm:$0x1]   ;;  %v112_v10 = vld [vmem:[%s209_s0 + $0x6] sm:$0x1]  }
   0x6   :  { %13 = vrot.lane.b32.xlu0 %v104_v2, %s135_s16  ;;  %25 = vrot.lane.b32.xlu1 %v106_v3, %s136_s17  ;;  %s141_s7 = smov 56   ;;  %s142_s8 = smov 48   ;;  %v113_v11 = vld [vmem:[%s209_s0 + $0x5] sm:$0x1]   ;;  %v114_v12 = vld [vmem:[%s209_s0 + $0x4] sm:$0x1]  }
   0x7   :  { %s143_s13 = smov 40   ;;  %s144_s14 = smov 32   ;;  %v115_v13 = vld [vmem:[%s209_s0 + $0x3] sm:$0x1]   ;;  %v116_v14 = vld [vmem:[%s209_s0 + $0x2] sm:$0x1]  }
   0x8   :  { %s145_s19 = smov 24   ;;  %s146_s20 = smov 16   ;;  %v117_v15 = vld [vmem:[%s209_s0 + $0x1] sm:$0x1]   ;;  %vm27_vm4 = vcmask 851712   ;;  %vm33_vm5 = vcmask 786112  }
   0x9   :  { %s147_s0 = smov 8   ;;  %vm39_vm6 = vcmask 720512   ;;  %vm45_vm7 = vcmask 654912   ;;  %vm51_vm8 = vcmask 589312   ;;  %vm57_vm9 = vcmask 523712  }
   0xa   :  { %31 = vrot.lane.b32.xlu0 %v107_v4, %s137_s24  ;;  %37 = vrot.lane.b32.xlu1 %v108_v5, %s138_s25  ;;  %vm63_vm10 = vcmask 458112   ;;  %vm69_vm11 = vcmask 392512   ;;  %vm75_vm12 = vcmask 326912   ;;  %vm81_vm13 = vcmask 261312  }
   0xb   :  { %vm87_vm14 = vcmask 195712   ;;  %vm93_vm15 = vcmask 130112  }
   0xe   :  { %43 = vrot.lane.b32.xlu0 %v109_v7, %s139_s30  ;;  %49 = vrot.lane.b32.xlu1 %v110_v8, %s140_s2 }
  0x12   :  { %55 = vrot.lane.b32.xlu0 %v111_v9, %s141_s7  ;;  %61 = vrot.lane.b32.xlu1 %v112_v10, %s142_s8 }
  0x16   :  { %67 = vrot.lane.b32.xlu0 %v113_v11, %s143_s13  ;;  %73 = vrot.lane.b32.xlu1 %v114_v12, %s144_s14 }
  0x1a   :  { %79 = vrot.lane.b32.xlu0 %v115_v13, %s145_s19  ;;  %85 = vrot.lane.b32.xlu1 %v116_v14, %s146_s20 }
  0x1e   :  { %91 = vrot.lane.b32.xlu0 %v117_v15, %s147_s0 }
  0x74   :  { %v8_v16 = vpop.permute.xlu0 %7   ;;  %v20_v17 = vpop.permute.xlu1 %19  }
  0x75   :  { %10 = vst.msk [vmem:[#allocation0] sm:$0x1] %vm9_vm1, %v8_v16  }
  0x78   :  { %v14_v18 = vpop.permute.xlu0 %13   ;;  %v26_v19 = vpop.permute.xlu1 %25  }
  0x79   :  { %16 = vst.msk [vmem:[#allocation0] sm:$0x1] %vm15_vm2, %v14_v18  }
  0x7a   :  { %22 = vst.msk [vmem:[#allocation0] sm:$0x1] %vm21_vm3, %v20_v17  }
  0x7b   :  { %28 = vst.msk [vmem:[#allocation0] sm:$0x1] %vm27_vm4, %v26_v19  }
  0x7c   :  { %v32_v20 = vpop.permute.xlu0 %31   ;;  %v38_v21 = vpop.permute.xlu1 %37  }
  0x7d   :  { %34 = vst.msk [vmem:[#allocation0] sm:$0x1] %vm33_vm5, %v32_v20  }
  0x7e   :  { %40 = vst.msk [vmem:[#allocation0] sm:$0x1] %vm39_vm6, %v38_v21  }
  0x80   :  { %v44_v22 = vpop.permute.xlu0 %43   ;;  %v50_v23 = vpop.permute.xlu1 %49  }
  0x81   :  { %46 = vst.msk [vmem:[#allocation0] sm:$0x1] %vm45_vm7, %v44_v22  }
  0x82   :  { %52 = vst.msk [vmem:[#allocation0] sm:$0x1] %vm51_vm8, %v50_v23  }
  0x84   :  { %v56_v24 = vpop.permute.xlu0 %55   ;;  %v62_v25 = vpop.permute.xlu1 %61  }
  0x85   :  { %58 = vst.msk [vmem:[#allocation0] sm:$0x1] %vm57_vm9, %v56_v24  }
  0x86   :  { %64 = vst.msk [vmem:[#allocation0] sm:$0x1] %vm63_vm10, %v62_v25  }
  0x88   :  { %v68_v26 = vpop.permute.xlu0 %67   ;;  %v74_v27 = vpop.permute.xlu1 %73  }
  0x89   :  { %70 = vst.msk [vmem:[#allocation0] sm:$0x1] %vm69_vm11, %v68_v26  }
  0x8a   :  { %76 = vst.msk [vmem:[#allocation0] sm:$0x1] %vm75_vm12, %v74_v27  }
  0x8c   :  { %v80_v28 = vpop.permute.xlu0 %79   ;;  %v86_v29 = vpop.permute.xlu1 %85  }
  0x8d   :  { %82 = vst.msk [vmem:[#allocation0] sm:$0x1] %vm81_vm13, %v80_v28  }
  0x8e   :  { %88 = vst.msk [vmem:[#allocation0] sm:$0x1] %vm87_vm14, %v86_v29  }
  0x90   :  { %v92_v30 = vpop.permute.xlu0 %91  }
  0x91   :  { %94 = vst.msk [vmem:[#allocation0] sm:$0x1] %vm93_vm15, %v92_v30  }
  0x98   :  { %v99_v31 = vld [vmem:[#allocation0] sm:$0x1] }
  0x99   :  { %102 = vst [vmem:[%s210_s1] sm:$0x1] %v99_v31 }

// kernel: basic_block.5
= control target key start
LH: loop header
LB: loop body
LE: loop exit
PB: predicated region body
PF: predicated region fallthrough
CT: control target
= control target key end

     0   :  { %s372_s15 = smov 0   ;;  %s398_s0 = inlined_call_operand.vmem [shape: f32[2,16,128], index: 0, kind: input, shape index: {}]   ;;  %s399_s1 = inlined_call_operand.vmem [shape: f32[2,16,128], index: 1, kind: input, shape index: {}]   ;;  %s400_s2 = inlined_call_operand.vmem [shape: f32[1,128], index: 2, kind: input, shape index: {}]   ;;  %s401_s3 = inlined_call_operand.vmem [shape: f32[1,128], index: 3, kind: input, shape index: {}]   ;;  %s402_s4 = inlined_call_operand.vmem [shape: f32[2,16,128], index: 4, kind: output, shape index: {}]  }
   0x1 LB: > { %s313_s16 = sadd.s32 4294967295, %s345_s15   ;;  %p317_p0 = scmp.ge.s32.totalorder %s345_s15, 1  ;;  %s345_s15 = sphi %s372_s15, %s14_s15  }
   0x2   : > { %p172_p1 = scmp.lt.s32.totalorder %s345_s15, 3 }
   0x4   : > { %p173_p2 = pnand %p317_p0, %p172_p1 }
   0x5   : > { %p203_p3 = scmp.lt.s32.totalorder (!%p173_p2), %s313_s16, 1 }
   0x6   : > { %176 = sbr.rel (%p173_p2) target bundleno = 24 (0x18), region = 36 }
   0xb   : > { %s404_s16 = smov (!%p203_p3, %s313_s16), 1  ;;  %v324_v0 = vld [vmem:[%s400_s2] ss:$0 sm:$0xff] }
   0xc   : > { %s328_s17 = sshll.u32 %s404_s16, 4  ;;  %v325_v3 = vld [vmem:[%s401_s3] ss:$0 sm:$0xff] }
   0xd   : > { %s207_s22 = scalar_lea.vmem %s398_s0, %s328_s17  ;;  %s212_s25 = scalar_lea.vmem %s399_s1, %s328_s17 }
   0xe   : > { %v218_v1 = vld [vmem:[%s207_s22] sm:$0xff]  ;;  %v219_v2 = vld [vmem:[%s207_s22 + $0x8] sm:$0xff]  ;;  %s217_s30 = scalar_lea.vmem %s402_s4, %s328_s17 }
   0xf   : > { %v227_v4 = vmul.f32 %v324_v0, %v218_v1  ;;  %v228_v5 = vmul.f32 %v324_v0, %v219_v2  ;;  %v238_v6 = vld [vmem:[%s212_s25] sm:$0xff]  ;;  %v239_v7 = vld [vmem:[%s212_s25 + $0x8] sm:$0xff] }
  0x11   : > { %v236_v8 = vadd.f32 %v325_v3, %v227_v4  ;;  %v237_v9 = vadd.f32 %v325_v3, %v228_v5 }
  0x13   : > { %v240_v10 = vadd.f32 %v238_v6, %v236_v8  ;;  %v241_v11 = vadd.f32 %v239_v7, %v237_v9 }
  0x15   : > { %v242_v12 = vmax.f32 %v240_v10, 0.0  ;;  %v243_v13 = vmax.f32 %v241_v11, 0.0 }
  0x17   : > { %244 = vst [vmem:[%s217_s30] sm:$0xff] %v242_v12  ;;  %245 = vst [vmem:[%s217_s30 + $0x8] sm:$0xff] %v243_v13 }
  0x18 PF: > { %s14_s15 = sadd.s32 1, %s345_s15  }
  0x19   : > { %p11_p4 = scmp.ge.s32.totalorder %s14_s15, 4  }
  0x1b   :  { %13 = sbr.rel (!%p11_p4) target bundleno = 1 (0x1), region = 69 }

// kernel: basic_block.3
= control target key start
LH: loop header
LB: loop body
LE: loop exit
PB: predicated region body
PF: predicated region fallthrough
CT: control target
= control target key end

     0   :  { %s2776_s12 = smov 0   ;;  %s3892_s0 = inlined_call_operand.vmem [shape: f32[2,16,16,8], index: 0, kind: input, shape index: {}]   ;;  %s3893_s1 = inlined_call_operand.vmem [shape: f32[72,8], index: 1, kind: input, shape index: {}]   ;;  %s3894_s2 = inlined_call_operand.vmem [shape: f32[2,16,16,8], index: 2, kind: output, shape index: {0}]   ;;  %s3895_s3 = inlined_call_operand.vmem [shape: f32[2,2,8], index: 3, kind: output, shape index: {1}]  }
   0x1 LB: > { %s2551_s13 = sadd.s32 4294967295, %s2745_s12   ;;  %p2555_p0 = scmp.ge.s32.totalorder %s2745_s12, 1  ;;  %s2745_s12 = sphi %s2776_s12, %s14_s12  }
   0x2   : > { %p140_p1 = scmp.lt.s32.totalorder %s2745_s12, 3 }
   0x4   : > { %p141_p2 = pnand %p2555_p0, %p140_p1 }
   0x5   : > { %p2786_p3 = scmp.lt.s32.totalorder (!%p141_p2), %s2551_s13, 1  ;;  %s2748_s19 = smov (!%p141_p2), 8  }
   0x6   : > { %144 = sbr.rel (%p141_p2) target bundleno = 885 (0x375), region = 28  ;;  %s2749_s20 = smov (!%p141_p2), 16  }
   0x7   : > { %s2750_s21 = smov (!%p141_p2), 24   ;;  %s2751_s22 = smov (!%p141_p2), 32  }
   0x8   : > { %s2752_s25 = smov (!%p141_p2), 40   ;;  %s2753_s30 = smov (!%p141_p2), 48  }
   0x9   : > { %s2754_s8 = smov (!%p141_p2), 56   ;;  %s2755_s23 = smov (!%p141_p2), 64  }
   0xb   : > { %vm214_vm0 = vcmask 64512   ;;  %vm217_vm1 = vcmask 58368   ;;  %vm224_vm2 = vcmask 57344   ;;  %v2747_v0 = vmov 0.0   ;;  %s3898_s13 = smov (!%p2786_p3, %s2551_s13), 1 }
   0xc   : > { %215 = vst.msk [vmem:[#allocation2] sm:$0xff] %vm214_vm0, %v2747_v0  ;;  %216 = vst.msk [vmem:[#allocation2 + $0x8] sm:$0xff] %vm214_vm0, %v2747_v0  ;;  %s2595_s15 = sshll.u32 %s3898_s13, 8  ;;  %vm513_vm3 = vcmask 130112   ;;  %vm706_vm4 = vcmask 195712   ;;  %vm899_vm5 = vcmask 261312  }
   0xd   : > { %220 = vst.msk [vmem:[#allocation2 + $0x198] sm:$0xff] %vm214_vm0, %v2747_v0  ;;  %221 = vst.msk [vmem:[#allocation2 + $0x1a0] sm:$0xff] %vm214_vm0, %v2747_v0  ;;  %s2838_s18 = scalar_lea.vmem %s3892_s0, %s2595_s15  ;;  %vm1092_vm6 = vcmask 326912   ;;  %vm1285_vm7 = vcmask 392512   ;;  %vm1479_vm8 = vcmask 458112   ;;  %vm1672_vm9 = vcmask 523712  }
   0xe   : > { %218 = vst.msk [vmem:[#allocation2 + $0x10] sm:$0x3] %vm217_vm1, %v2747_v0  ;;  %222 = vst.msk [vmem:[#allocation2 + $0x1a8] sm:$0x3] %vm217_vm1, %v2747_v0  ;;  %v182_v1 = vld [vmem:[%s2838_s18] sm:$0xff]  ;;  %v184_v2 = vld [vmem:[%s2838_s18 + $0x10] sm:$0xff] }
   0xf   : > { %241 = vst.msk [vmem:[#allocation2 + $0x29] sm:$0x1] %vm224_vm2, %v2747_v0  ;;  %225 = vst.msk [vmem:[#allocation2 + $0x18] sm:$0x1] %vm224_vm2, %v2747_v0  ;;  %v183_v3 = vld [vmem:[%s2838_s18 + $0x8] sm:$0xff]  ;;  %v186_v4 = vld [vmem:[%s2838_s18 + $0x20] sm:$0xff] }
  0x10   : > { %226 = vst.msk [vmem:[#allocation2 + $0x30] sm:$0x1] %vm224_vm2, %v2747_v0  ;;  %227 = vst.msk [vmem:[#allocation2 + $0x48] sm:$0x1] %vm224_vm2, %v2747_v0  ;;  %v185_v5 = vld [vmem:[%s2838_s18 + $0x18] sm:$0xff]  ;;  %v188_v6 = vld [vmem:[%s2838_s18 + $0x30] sm:$0xff] }
  0x11   : > { %228 = vst.msk [vmem:[#allocation2 + $0x60] sm:$0x1] %vm224_vm2, %v2747_v0  ;;  %229 = vst.msk [vmem:[#allocation2 + $0x78] sm:$0x1] %vm224_vm2, %v2747_v0  ;;  %v187_v9 = vld [vmem:[%s2838_s18 + $0x28] sm:$0xff]  ;;  %v190_v10 = vld [vmem:[%s2838_s18 + $0x40] sm:$0xff] }
  0x12   : > { %230 = vst.msk [vmem:[#allocation2 + $0x90] sm:$0x1] %vm224_vm2, %v2747_v0  ;;  %231 = vst.msk [vmem:[#allocation2 + $0xa8] sm:$0x1] %vm224_vm2, %v2747_v0  ;;  %v189_v11 = vld [vmem:[%s2838_s18 + $0x38] sm:$0xff]  ;;  %v192_v12 = vld [vmem:[%s2838_s18 + $0x50] sm:$0xff] }
  0x13   : > { %232 = vst.msk [vmem:[#allocation2 + $0xc0] sm:$0x1] %vm224_vm2, %v2747_v0  ;;  %233 = vst.msk [vmem:[#allocation2 + $0xd8] sm:$0x1] %vm224_vm2, %v2747_v0  ;;  %v353_v7 = vld [vmem:[#allocation2 + $0x1] sm:$0xff]  ;;  %v193_v15 = vld [vmem:[%s2838_s18 + $0x58] sm:$0xff] }
  0x14   : > { %234 = vst.msk [vmem:[#allocation2 + $0xf0] sm:$0x1] %vm224_vm2, %v2747_v0  ;;  %235 = vst.msk [vmem:[#allocation2 + $0x108] sm:$0x1] %vm224_vm2, %v2747_v0  ;;  %417 = vrot.lane.b32.xlu0 %v353_v7, %s2748_s19  ;;  %v191_v13 = vld [vmem:[%s2838_s18 + $0x48] sm:$0xff]  ;;  %v194_v14 = vld [vmem:[%s2838_s18 + $0x60] sm:$0xff] }
  0x15   : > { %236 = vst.msk [vmem:[#allocation2 + $0x120] sm:$0x1] %vm224_vm2, %v2747_v0  ;;  %237 = vst.msk [vmem:[#allocation2 + $0x138] sm:$0x1] %vm224_vm2, %v2747_v0  ;;  %v354_v8 = vld [vmem:[#allocation2 + $0x9] sm:$0xff]  ;;  %v198_v18 = vld [vmem:[%s2838_s18 + $0x80] sm:$0xff] }
  0x16   : > { %238 = vst.msk [vmem:[#allocation2 + $0x150] sm:$0x1] %vm224_vm2, %v2747_v0  ;;  %239 = vst.msk [vmem:[#allocation2 + $0x168] sm:$0x1] %vm224_vm2, %v2747_v0  ;;  %v196_v16 = vld [vmem:[%s2838_s18 + $0x70] sm:$0xff]  ;;  %v195_v17 = vld [vmem:[%s2838_s18 + $0x68] sm:$0xff] }
  0x17   : > { %240 = vst.msk [vmem:[#allocation2 + $0x180] sm:$0x1] %vm224_vm2, %v2747_v0  ;;  %242 = vst.msk [vmem:[#allocation2 + $0x41] sm:$0x1] %vm224_vm2, %v2747_v0  ;;  %v197_v19 = vld [vmem:[%s2838_s18 + $0x78] sm:$0xff]  ;;  %v200_v20 = vld [vmem:[%s2838_s18 + $0x90] sm:$0xff] }
  0x18   : > { %243 = vst.msk [vmem:[#allocation2 + $0x59] sm:$0x1] %vm224_vm2, %v2747_v0  ;;  %244 = vst.msk [vmem:[#allocation2 + $0x71] sm:$0x1] %vm224_vm2, %v2747_v0  ;;  %v199_v21 = vld [vmem:[%s2838_s18 + $0x88] sm:$0xff]  ;;  %419 = vrot.lane.b32.xlu0 %v354_v8, %s2748_s19  ;;  %v202_v22 = vld [vmem:[%s2838_s18 + $0xa0] sm:$0xff] }
  0x19   : > { %245 = vst.msk [vmem:[#allocation2 + $0x89] sm:$0x1] %vm224_vm2, %v2747_v0  ;;  %246 = vst.msk [vmem:[#allocation2 + $0xa1] sm:$0x1] %vm224_vm2, %v2747_v0  ;;  %v201_v23 = vld [vmem:[%s2838_s18 + $0x98] sm:$0xff]  ;;  %v204_v24 = vld [vmem:[%s2838_s18 + $0xb0] sm:$0xff] }
  0x1a   : > { %247 = vst.msk [vmem:[#allocation2 + $0xb9] sm:$0x1] %vm224_vm2, %v2747_v0  ;;  %248 = vst.msk [vmem:[#allocation2 + $0xd1] sm:$0x1] %vm224_vm2, %v2747_v0  ;;  %v203_v28 = vld [vmem:[%s2838_s18 + $0xa8] sm:$0xff]  ;;  %v206_v29 = vld [vmem:[%s2838_s18 + $0xc0] sm:$0xff] }
  0x1b   : > { %249 = vst.msk [vmem:[#allocation2 + $0xe9] sm:$0x1] %vm224_vm2, %v2747_v0  ;;  %250 = vst.msk [vmem:[#allocation2 + $0x101] sm:$0x1] %vm224_vm2, %v2747_v0  ;;  %v205_v33 = vld [vmem:[%s2838_s18 + $0xb8] sm:$0xff]  ;;  %v208_v34 = vld [vmem:[%s2838_s18 + $0xd0] sm:$0xff] }
  0x1c   : > { %251 = vst.msk [vmem:[#allocation2 + $0x119] sm:$0x1] %vm224_vm2, %v2747_v0  ;;  %252 = vst.msk [vmem:[#allocation2 + $0x131] sm:$0x1] %vm224_vm2, %v2747_v0  ;;  %v207_v35 = vld [vmem:[%s2838_s18 + $0xc8] sm:$0xff]  ;;  %v210_v36 = vld [vmem:[%s2838_s18 + $0xe0] sm:$0xff] }
  0x1d   : > { %253 = vst.msk [vmem:[#allocation2 + $0x149] sm:$0x1] %vm224_vm2, %v2747_v0  ;;  %254 = vst.msk [vmem:[#allocation2 + $0x161] sm:$0x1] %vm224_vm2, %v2747_v0  ;;  %v209_v37 = vld [vmem:[%s2838_s18 + $0xd8] sm:$0xff]  ;;  %v211_v39 = vld [vmem:[%s2838_s18 + $0xe8] sm:$0xff] }
  0x1e   : > { %255 = vst.msk [vmem:[#allocation2 + $0x179] sm:$0x1] %vm224_vm2, %v2747_v0  ;;  %256 = vst.msk [vmem:[#allocation2 + $0x191] sm:$0x1] %vm224_vm2, %v2747_v0  ;;  %v289_v45 = vld [vmem:[#allocation2] sm:$0xff]  ;;  %v290_v46 = vld [vmem:[#allocation2 + $0x8] sm:$0xff] }
  0x1f   : > { %257 = vst.msk [vmem:[#allocation2 + $0x19] sm:$0xff] %vm214_vm0, %v182_v1  ;;  %259 = vst.msk [vmem:[#allocation2 + $0x31] sm:$0xff] %vm214_vm0, %v184_v2  ;;  %vm1865_vm10 = vcmask 589312   ;;  %vm1939_vm11 = vcmask 588800  }
  0x20   : > { %258 = vst.msk [vmem:[#allocation2 + $0x21] sm:$0xff] %vm214_vm0, %v183_v3  ;;  %261 = vst.msk [vmem:[#allocation2 + $0x49] sm:$0xff] %vm214_vm0, %v186_v4 }
  0x21   : > { %260 = vst.msk [vmem:[#allocation2 + $0x39] sm:$0xff] %vm214_vm0, %v185_v5  ;;  %263 = vst.msk [vmem:[#allocation2 + $0x61] sm:$0xff] %vm214_vm0, %v188_v6 }
  0x22   : > { %262 = vst.msk [vmem:[#allocation2 + $0x51] sm:$0xff] %vm214_vm0, %v187_v9  ;;  %265 = vst.msk [vmem:[#allocation2 + $0x79] sm:$0xff] %vm214_vm0, %v190_v10 }
  0x23   : > { %264 = vst.msk [vmem:[#allocation2 + $0x69] sm:$0xff] %vm214_vm0, %v189_v11  ;;  %267 = vst.msk [vmem:[#allocation2 + $0x91] sm:$0xff] %vm214_vm0, %v192_v12 }
  0x24   : > { %266 = vst.msk [vmem:[#allocation2 + $0x81] sm:$0xff] %vm214_vm0, %v191_v13  ;;  %269 = vst.msk [vmem:[#allocation2 + $0xa9] sm:$0xff] %vm214_vm0, %v194_v14 }
  0x25   : > { %268 = vst.msk [vmem:[#allocation2 + $0x99] sm:$0xff] %vm214_vm0, %v193_v15  ;;  %271 = vst.msk [vmem:[#allocation2 + $0xc1] sm:$0xff] %vm214_vm0, %v196_v16 }
  0x26   : > { %270 = vst.msk [vmem:[#allocation2 + $0xb1] sm:$0xff] %vm214_vm0, %v195_v17  ;;  %273 = vst.msk [vmem:[#allocation2 + $0xd9] sm:$0xff] %vm214_vm0, %v198_v18  ;;  %v2883_v25 = vld [vmem:[#allocation2 + $0x19] sm:$0xff]  ;;  %v2885_v26 = vld [vmem:[#allocation2 + $0x31] sm:$0xff] }
  0x27   : > { %272 = vst.msk [vmem:[#allocation2 + $0xc9] sm:$0xff] %vm214_vm0, %v197_v19  ;;  %275 = vst.msk [vmem:[#allocation2 + $0xf1] sm:$0xff] %vm214_vm0, %v200_v20  ;;  %421 = vrot.lane.b32.xlu1 %v2883_v25, %s2748_s19  ;;  %v2892_v27 = vld [vmem:[#allocation2 + $0x21] sm:$0xff]  ;;  %425 = vrot.lane.b32.xlu0 %v2885_v26, %s2748_s19  ;;  %v2900_v30 = vld [vmem:[#allocation2 + $0x49] sm:$0xff] }
  0x28   : > { %274 = vst.msk [vmem:[#allocation2 + $0xe1] sm:$0xff] %vm214_vm0, %v199_v21  ;;  %277 = vst.msk [vmem:[#allocation2 + $0x109] sm:$0xff] %vm214_vm0, %v202_v22  ;;  %v2904_v31 = vld [vmem:[#allocation2 + $0x39] sm:$0xff]  ;;  %v2908_v32 = vld [vmem:[#allocation2 + $0x61] sm:$0xff] }
  0x29   : > { %276 = vst.msk [vmem:[#allocation2 + $0xf9] sm:$0xff] %vm214_vm0, %v201_v23  ;;  %279 = vst.msk [vmem:[#allocation2 + $0x121] sm:$0xff] %vm214_vm0, %v204_v24  ;;  %v2920_v38 = vld [vmem:[#allocation2 + $0x51] sm:$0xff]  ;;  %v2928_v40 = vld [vmem:[#allocation2 + $0x79] sm:$0xff] }
  0x2a   : > { %278 = vst.msk [vmem:[#allocation2 + $0x111] sm:$0xff] %vm214_vm0, %v203_v28  ;;  %281 = vst.msk [vmem:[#allocation2 + $0x139] sm:$0xff] %vm214_vm0, %v206_v29  ;;  %v2932_v41 = vld [vmem:[#allocation2 + $0x69] sm:$0xff]  ;;  %v365_v42 = vld [vmem:[#allocation2 + $0x91] sm:$0xff] }
  0x2b   : > { %423 = vrot.lane.b32.xlu1 %v2892_v27, %s2748_s19  ;;  %429 = vrot.lane.b32.xlu0 %v2900_v30, %s2748_s19  ;;  %280 = vst.msk [vmem:[#allocation2 + $0x129] sm:$0xff] %vm214_vm0, %v205_v33  ;;  %283 = vst.msk [vmem:[#allocation2 + $0x151] sm:$0xff] %vm214_vm0, %v208_v34  ;;  %v2938_v43 = vld [vmem:[#allocation2 + $0x81] sm:$0xff]  ;;  %v367_v44 = vld [vmem:[#allocation2 + $0xa9] sm:$0xff] }
  0x2c   : > { %282 = vst.msk [vmem:[#allocation2 + $0x141] sm:$0xff] %vm214_vm0, %v207_v35  ;;  %285 = vst.msk [vmem:[#allocation2 + $0x169] sm:$0xff] %vm214_vm0, %v210_v36  ;;  %v366_v47 = vld [vmem:[#allocation2 + $0x99] sm:$0xff]  ;;  %v2950_v49 = vld [vmem:[#allocation2 + $0x30] sm:$0xff] }
  0x2d   : > { %284 = vst.msk [vmem:[#allocation2 + $0x159] sm:$0xff] %vm214_vm0, %v209_v37  ;;  %286 = vst.msk [vmem:[#allocation2 + $0x171] sm:$0xff] %vm214_vm0, %v211_v39  ;;  %v2945_v48 = vld [vmem:[#allocation2 + $0x18] sm:$0xff]  ;;  %v369_v50 = vld [vmem:[#allocation2 + $0xc1] sm:$0xff] }
  0x2e   : > { %321 = vst.msk [vmem:[#allocation3] sm:$0xff] %vm214_vm0, %v289_v45  ;;  %322 = vst.msk [vmem:[#allocation3 + $0x8] sm:$0xff] %vm214_vm0, %v290_v46  ;;  %v2954_v51 = vld [vmem:[#allocation2 + $0x20] sm:$0xff]  ;;  %v2956_v52 = vld [vmem:[#allocation2 + $0x48] sm:$0xff] }
  0x2f   : > { %427 = vrot.lane.b32.xlu1 %v2904_v31, %s2748_s19  ;;  %433 = vrot.lane.b32.xlu0 %v2908_v32, %s2748_s19  ;;  %323 = vst.msk [vmem:[#allocation3 + $0x10] sm:$0xff] %vm214_vm0, %v2945_v48  ;;  %325 = vst.msk [vmem:[#allocation3 + $0x20] sm:$0xff] %vm214_vm0, %v2950_v49  ;;  %v368_v53 = vld [vmem:[#allocation2 + $0xb1] sm:$0xff]  ;;  %v2965_v55 = vld [vmem:[#allocation2 + $0x60] sm:$0xff] }
  0x30   : > { %324 = vst.msk [vmem:[#allocation3 + $0x18] sm:$0xff] %vm214_vm0, %v2954_v51  ;;  %327 = vst.msk [vmem:[#allocation3 + $0x30] sm:$0xff] %vm214_vm0, %v2956_v52  ;;  %v2963_v54 = vld [vmem:[#allocation2 + $0x38] sm:$0xff]  ;;  %v2971_v57 = vld [vmem:[#allocation2 + $0x50] sm:$0xff] }
  0x31   : > { %v371_v56 = vld [vmem:[#allocation2 + $0xd9] sm:$0xff]  ;;  %326 = vst.msk [vmem:[#allocation3 + $0x28] sm:$0xff] %vm214_vm0, %v2963_v54  ;;  %329 = vst.msk [vmem:[#allocation3 + $0x40] sm:$0xff] %vm214_vm0, %v2965_v55  ;;  %v2975_v59 = vld [vmem:[#allocation2 + $0x68] sm:$0xff] }
  0x32   : > { %v2973_v58 = vld [vmem:[#allocation2 + $0x78] sm:$0xff]  ;;  %328 = vst.msk [vmem:[#allocation3 + $0x38] sm:$0xff] %vm214_vm0, %v2971_v57  ;;  %330 = vst.msk [vmem:[#allocation3 + $0x48] sm:$0xff] %vm214_vm0, %v2975_v59  ;;  %v2984_v60 = vld [vmem:[#allocation2 + $0x90] sm:$0xff] }
  0x33   : > { %431 = vrot.lane.b32.xlu1 %v2920_v38, %s2748_s19  ;;  %437 = vrot.lane.b32.xlu0 %v2928_v40, %s2748_s19  ;;  %331 = vst.msk [vmem:[#allocation3 + $0x50] sm:$0xff] %vm214_vm0, %v2973_v58  ;;  %v2986_v61 = vld [vmem:[#allocation2 + $0x80] sm:$0xff]  ;;  %v2988_v62 = vld [vmem:[#allocation2 + $0xa8] sm:$0xff]  ;;  %333 = vst.msk [vmem:[#allocation3 + $0x60] sm:$0xff] %vm214_vm0, %v2984_v60 }
  0x34   : > { %v370_v63 = vld [vmem:[#allocation2 + $0xc9] sm:$0xff]  ;;  %332 = vst.msk [vmem:[#allocation3 + $0x58] sm:$0xff] %vm214_vm0, %v2986_v61  ;;  %335 = vst.msk [vmem:[#allocation3 + $0x70] sm:$0xff] %vm214_vm0, %v2988_v62  ;;  %v2996_v0 = vld [vmem:[#allocation2 + $0x98] sm:$0xff] }
  0x35   : > { %v2998_v1 = vld [vmem:[#allocation2 + $0xc0] sm:$0xff]  ;;  %v3000_v2 = vld [vmem:[#allocation2 + $0xb0] sm:$0xff]  ;;  %334 = vst.msk [vmem:[#allocation3 + $0x68] sm:$0xff] %vm214_vm0, %v2996_v0  ;;  %v3009_v3 = vld [vmem:[#allocation2 + $0xd8] sm:$0xff] }
  0x36   : > { %337 = vst.msk [vmem:[#allocation3 + $0x80] sm:$0xff] %vm214_vm0, %v2998_v1  ;;  %336 = vst.msk [vmem:[#allocation3 + $0x78] sm:$0xff] %vm214_vm0, %v3000_v2  ;;  %v3011_v4 = vld [vmem:[#allocation2 + $0xc8] sm:$0xff]  ;;  %v3013_v5 = vld [vmem:[#allocation2 + $0xf0] sm:$0xff] }
  0x37   : > { %435 = vrot.lane.b32.xlu1 %v2932_v41, %s2748_s19  ;;  %441 = vrot.lane.b32.xlu0 %v365_v42, %s2748_s19  ;;  %339 = vst.msk [vmem:[#allocation3 + $0x90] sm:$0xff] %vm214_vm0, %v3009_v3  ;;  %338 = vst.msk [vmem:[#allocation3 + $0x88] sm:$0xff] %vm214_vm0, %v3011_v4  ;;  %v3021_v6 = vld [vmem:[#allocation2 + $0xe0] sm:$0xff]  ;;  %v3023_v7 = vld [vmem:[#allocation2 + $0x108] sm:$0xff] }
  0x38   : > { %341 = vst.msk [vmem:[#allocation3 + $0xa0] sm:$0xff] %vm214_vm0, %v3013_v5  ;;  %v3025_v8 = vld [vmem:[#allocation2 + $0xf8] sm:$0xff]  ;;  %340 = vst.msk [vmem:[#allocation3 + $0x98] sm:$0xff] %vm214_vm0, %v3021_v6  ;;  %v3034_v9 = vld [vmem:[#allocation2 + $0x120] sm:$0xff] }
  0x39   : > { %343 = vst.msk [vmem:[#allocation3 + $0xb0] sm:$0xff] %vm214_vm0, %v3023_v7  ;;  %342 = vst.msk [vmem:[#allocation3 + $0xa8] sm:$0xff] %vm214_vm0, %v3025_v8  ;;  %v3036_v10 = vld [vmem:[#allocation2 + $0x110] sm:$0xff]  ;;  %v315_v12 = vld [vmem:[#allocation2 + $0x138] sm:$0xff] }
  0x3a   : > { %v373_v11 = vld [vmem:[#allocation2 + $0xf1] sm:$0xff]  ;;  %345 = vst.msk [vmem:[#allocation3 + $0xc0] sm:$0xff] %vm214_vm0, %v3034_v9  ;;  %344 = vst.msk [vmem:[#allocation3 + $0xb8] sm:$0xff] %vm214_vm0, %v3036_v10  ;;  %v372_v13 = vld [vmem:[#allocation2 + $0xe1] sm:$0xff] }
  0x3b   : > { %439 = vrot.lane.b32.xlu1 %v2938_v43, %s2748_s19  ;;  %445 = vrot.lane.b32.xlu0 %v367_v44, %s2748_s19  ;;  %347 = vst.msk [vmem:[#allocation3 + $0xd0] sm:$0xff] %vm214_vm0, %v315_v12  ;;  %v3044_v14 = vld [vmem:[#allocation2 + $0x128] sm:$0xff]  ;;  %v317_v16 = vld [vmem:[#allocation2 + $0x150] sm:$0xff]  ;;  %v374_v17 = vld [vmem:[#allocation2 + $0xf9] sm:$0xff] }
  0x3c   : > { %346 = vst.msk [vmem:[#allocation3 + $0xc8] sm:$0xff] %vm214_vm0, %v3044_v14  ;;  %v375_v15 = vld [vmem:[#allocation2 + $0x109] sm:$0xff]  ;;  %349 = vst.msk [vmem:[#allocation3 + $0xe0] sm:$0xff] %vm214_vm0, %v317_v16  ;;  %v316_v18 = vld [vmem:[#allocation2 + $0x140] sm:$0xff] }
  0x3d   : > { %348 = vst.msk [vmem:[#allocation3 + $0xd8] sm:$0xff] %vm214_vm0, %v316_v18  ;;  %v377_v19 = vld [vmem:[#allocation2 + $0x121] sm:$0xff]  ;;  %v376_v21 = vld [vmem:[#allocation2 + $0x111] sm:$0xff]  ;;  %v379_v23 = vld [vmem:[#allocation2 + $0x139] sm:$0xff] }
  0x3e   : > { %v319_v20 = vld [vmem:[#allocation2 + $0x168] sm:$0xff]  ;;  %v318_v22 = vld [vmem:[#allocation2 + $0x158] sm:$0xff]  ;;  %v320_v28 = vld [vmem:[#allocation2 + $0x170] sm:$0xff] }
  0x3f   : > { %443 = vrot.lane.b32.xlu1 %v366_v47, %s2748_s19  ;;  %449 = vrot.lane.b32.xlu0 %v369_v50, %s2748_s19  ;;  %351 = vst.msk [vmem:[#allocation3 + $0xf0] sm:$0xff] %vm214_vm0, %v319_v20  ;;  %350 = vst.msk [vmem:[#allocation3 + $0xe8] sm:$0xff] %vm214_vm0, %v318_v22  ;;  %v378_v24 = vld [vmem:[#allocation2 + $0x129] sm:$0xff]  ;;  %v381_v29 = vld [vmem:[#allocation2 + $0x151] sm:$0xff] }
  0x40   : > { %352 = vst.msk [vmem:[#allocation3 + $0xf8] sm:$0xff] %vm214_vm0, %v320_v28  ;;  %v380_v33 = vld [vmem:[#allocation2 + $0x141] sm:$0xff]  ;;  %v383_v34 = vld [vmem:[#allocation2 + $0x169] sm:$0xff]  ;;  %v382_v35 = vld [vmem:[#allocation2 + $0x159] sm:$0xff] }
  0x41   : > { %v546_v36 = vld [vmem:[#allocation2 + $0x2] sm:$0xff]  ;;  %v384_v37 = vld [vmem:[#allocation2 + $0x171] sm:$0xff]  ;;  %v3066_v39 = vld [vmem:[#allocation2 + $0x1a] sm:$0xff] }
  0x42   : > { %v547_v42 = vld [vmem:[#allocation2 + $0xa] sm:$0xff]  ;;  %v3071_v44 = vld [vmem:[#allocation2 + $0x32] sm:$0xff]  ;;  %v3074_v45 = vld [vmem:[#allocation2 + $0x22] sm:$0xff] }
  0x43   : > { %447 = vrot.lane.b32.xlu1 %v368_v53, %s2748_s19  ;;  %453 = vrot.lane.b32.xlu0 %v371_v56, %s2748_s19  ;;  %v3078_v46 = vld [vmem:[#allocation2 + $0x4a] sm:$0xff]  ;;  %v3082_v47 = vld [vmem:[#allocation2 + $0x3a] sm:$0xff]  ;;  %v3086_v50 = vld [vmem:[#allocation2 + $0x62] sm:$0xff] }
  0x44   : > { %v3090_v53 = vld [vmem:[#allocation2 + $0x52] sm:$0xff]  ;;  %v3094_v56 = vld [vmem:[#allocation2 + $0x7a] sm:$0xff]  ;;  %v3106_v12 = vld [vmem:[#allocation2 + $0x82] sm:$0xff] }
  0x45   : > { %v3118_v16 = vld [vmem:[#allocation2 + $0xc2] sm:$0xff]  ;;  %v564_v18 = vld [vmem:[#allocation2 + $0xda] sm:$0xff]  ;;  %v566_v20 = vld [vmem:[#allocation2 + $0xf2] sm:$0xff] }
  0x46   : > { %v568_v22 = vld [vmem:[#allocation2 + $0x10a] sm:$0xff]  ;;  %v569_v28 = vld [vmem:[#allocation2 + $0x112] sm:$0xff] }
  0x47   : > { %451 = vrot.lane.b32.xlu1 %v370_v63, %s2748_s19  ;;  %457 = vrot.lane.b32.xlu0 %v373_v11, %s2748_s19  ;;  %v3098_v63 = vld [vmem:[#allocation2 + $0x6a] sm:$0xff]  ;;  %v3102_v11 = vld [vmem:[#allocation2 + $0x92] sm:$0xff] }
  0x4b   : > { %455 = vrot.lane.b32.xlu1 %v372_v13, %s2748_s19  ;;  %461 = vrot.lane.b32.xlu0 %v375_v15, %s2748_s19  ;;  %v3110_v13 = vld [vmem:[#allocation2 + $0xaa] sm:$0xff]  ;;  %v3114_v15 = vld [vmem:[#allocation2 + $0x9a] sm:$0xff] }
  0x4f   : > { %459 = vrot.lane.b32.xlu1 %v374_v17, %s2748_s19  ;;  %465 = vrot.lane.b32.xlu0 %v377_v19, %s2748_s19  ;;  %v3122_v17 = vld [vmem:[#allocation2 + $0xb2] sm:$0xff]  ;;  %v3128_v19 = vld [vmem:[#allocation2 + $0xca] sm:$0xff] }
  0x53   : > { %463 = vrot.lane.b32.xlu1 %v376_v21, %s2748_s19  ;;  %469 = vrot.lane.b32.xlu0 %v379_v23, %s2748_s19  ;;  %v565_v21 = vld [vmem:[#allocation2 + $0xe2] sm:$0xff]  ;;  %v567_v23 = vld [vmem:[#allocation2 + $0xfa] sm:$0xff] }
  0x57   : > { %467 = vrot.lane.b32.xlu1 %v378_v24, %s2748_s19  ;;  %473 = vrot.lane.b32.xlu0 %v381_v29, %s2748_s19  ;;  %v570_v24 = vld [vmem:[#allocation2 + $0x122] sm:$0xff]  ;;  %v572_v29 = vld [vmem:[#allocation2 + $0x13a] sm:$0xff] }
  0x5b   : > { %471 = vrot.lane.b32.xlu1 %v380_v33, %s2748_s19  ;;  %477 = vrot.lane.b32.xlu0 %v383_v34, %s2748_s19  ;;  %v571_v34 = vld [vmem:[#allocation2 + $0x12a] sm:$0xff] }
  0x5f   : > { %475 = vrot.lane.b32.xlu1 %v382_v35, %s2748_s19  ;;  %610 = vrot.lane.b32.xlu0 %v546_v36, %s2749_s20  ;;  %v574_v35 = vld [vmem:[#allocation2 + $0x152] sm:$0xff] }
  0x63   : > { %479 = vrot.lane.b32.xlu1 %v384_v37, %s2748_s19  ;;  %614 = vrot.lane.b32.xlu0 %v3066_v39, %s2749_s20  ;;  %v573_v37 = vld [vmem:[#allocation2 + $0x142] sm:$0xff] }
  0x67   : > { %612 = vrot.lane.b32.xlu1 %v547_v42, %s2749_s20  ;;  %618 = vrot.lane.b32.xlu0 %v3071_v44, %s2749_s20 }
  0x6b   : > { %616 = vrot.lane.b32.xlu1 %v3074_v45, %s2749_s20  ;;  %622 = vrot.lane.b32.xlu0 %v3078_v46, %s2749_s20 }
  0x6f   : > { %620 = vrot.lane.b32.xlu1 %v3082_v47, %s2749_s20  ;;  %626 = vrot.lane.b32.xlu0 %v3086_v50, %s2749_s20 }
  0x73   : > { %624 = vrot.lane.b32.xlu1 %v3090_v53, %s2749_s20  ;;  %630 = vrot.lane.b32.xlu0 %v3094_v56, %s2749_s20 }
  0x77   : > { %628 = vrot.lane.b32.xlu1 %v3098_v63, %s2749_s20  ;;  %634 = vrot.lane.b32.xlu0 %v3102_v11, %s2749_s20 }
  0x7b   : > { %632 = vrot.lane.b32.xlu1 %v3106_v12, %s2749_s20  ;;  %638 = vrot.lane.b32.xlu0 %v3110_v13, %s2749_s20 }
  0x7f   : > { %636 = vrot.lane.b32.xlu1 %v3114_v15, %s2749_s20  ;;  %642 = vrot.lane.b32.xlu0 %v3118_v16, %s2749_s20 }
  0x83   : > { %640 = vrot.lane.b32.xlu1 %v3122_v17, %s2749_s20  ;;  %646 = vrot.lane.b32.xlu0 %v564_v18, %s2749_s20  ;;  %v576_v18 = vld [vmem:[#allocation2 + $0x16a] sm:$0xff] }
  0x86   : > { %v418_v33 = vpop.permute.xlu0 %417 }
  0x87   : > { %644 = vrot.lane.b32.xlu1 %v3128_v19, %s2749_s20  ;;  %650 = vrot.lane.b32.xlu0 %v566_v20, %s2749_s20  ;;  %514 = vst.msk [vmem:[#allocation3] sm:$0xff] %vm513_vm3, %v418_v33 }
  0x8a   : > { %v420_v36 = vpop.permute.xlu0 %419 }
  0x8b   : > { %648 = vrot.lane.b32.xlu1 %v565_v21, %s2749_s20  ;;  %654 = vrot.lane.b32.xlu0 %v568_v22, %s2749_s20  ;;  %515 = vst.msk [vmem:[#allocation3 + $0x8] sm:$0xff] %vm513_vm3, %v420_v36  ;;  %v575_v21 = vld [vmem:[#allocation2 + $0x15a] sm:$0xff] }
  0x8f   : > { %652 = vrot.lane.b32.xlu1 %v567_v23, %s2749_s20  ;;  %658 = vrot.lane.b32.xlu0 %v570_v24, %s2749_s20  ;;  %v577_v24 = vld [vmem:[#allocation2 + $0x172] sm:$0xff] }
  0x93   : > { %656 = vrot.lane.b32.xlu1 %v569_v28, %s2749_s20  ;;  %662 = vrot.lane.b32.xlu0 %v572_v29, %s2749_s20 }
  0x97   : > { %660 = vrot.lane.b32.xlu1 %v571_v34, %s2749_s20  ;;  %666 = vrot.lane.b32.xlu0 %v574_v35, %s2749_s20 }
  0x99   : > { %v422_v42 = vpop.permute.xlu1 %421  ;;  %v426_v20 = vpop.permute.xlu0 %425 }
  0x9a   : > { %516 = vst.msk [vmem:[#allocation3 + $0x10] sm:$0xff] %vm513_vm3, %v422_v42  ;;  %518 = vst.msk [vmem:[#allocation3 + $0x20] sm:$0xff] %vm513_vm3, %v426_v20 }
  0x9b   : > { %664 = vrot.lane.b32.xlu1 %v573_v37, %s2749_s20  ;;  %670 = vrot.lane.b32.xlu0 %v576_v18, %s2749_s20 }
  0x9d   : > { %v424_v22 = vpop.permute.xlu1 %423  ;;  %v430_v23 = vpop.permute.xlu0 %429 }
  0x9e   : > { %517 = vst.msk [vmem:[#allocation3 + $0x18] sm:$0xff] %vm513_vm3, %v424_v22  ;;  %520 = vst.msk [vmem:[#allocation3 + $0x30] sm:$0xff] %vm513_vm3, %v430_v23 }
  0x9f   : > { %668 = vrot.lane.b32.xlu1 %v575_v21, %s2749_s20  ;;  %803 = vrot.lane.b32.xlu0 %v2945_v48, %s2750_s21 }
  0xa1   : > { %v428_v28 = vpop.permute.xlu1 %427  ;;  %v434_v29 = vpop.permute.xlu0 %433 }
  0xa2   : > { %519 = vst.msk [vmem:[#allocation3 + $0x28] sm:$0xff] %vm513_vm3, %v428_v28  ;;  %522 = vst.msk [vmem:[#allocation3 + $0x40] sm:$0xff] %vm513_vm3, %v434_v29 }
  0xa3   : > { %672 = vrot.lane.b32.xlu1 %v577_v24, %s2749_s20  ;;  %807 = vrot.lane.b32.xlu0 %v2950_v49, %s2750_s21 }
  0xa5   : > { %v432_v33 = vpop.permute.xlu1 %431  ;;  %v438_v34 = vpop.permute.xlu0 %437 }
  0xa6   : > { %521 = vst.msk [vmem:[#allocation3 + $0x38] sm:$0xff] %vm513_vm3, %v432_v33  ;;  %524 = vst.msk [vmem:[#allocation3 + $0x50] sm:$0xff] %vm513_vm3, %v438_v34 }
  0xa7   : > { %805 = vrot.lane.b32.xlu1 %v2954_v51, %s2750_s21  ;;  %811 = vrot.lane.b32.xlu0 %v2956_v52, %s2750_s21 }
  0xa9   : > { %v436_v48 = vpop.permute.xlu1 %435  ;;  %v442_v35 = vpop.permute.xlu0 %441 }
  0xaa   : > { %523 = vst.msk [vmem:[#allocation3 + $0x48] sm:$0xff] %vm513_vm3, %v436_v48  ;;  %526 = vst.msk [vmem:[#allocation3 + $0x60] sm:$0xff] %vm513_vm3, %v442_v35 }
  0xab   : > { %809 = vrot.lane.b32.xlu1 %v2963_v54, %s2750_s21  ;;  %815 = vrot.lane.b32.xlu0 %v2965_v55, %s2750_s21 }
  0xad   : > { %v440_v36 = vpop.permute.xlu1 %439  ;;  %v446_v51 = vpop.permute.xlu0 %445 }
  0xae   : > { %525 = vst.msk [vmem:[#allocation3 + $0x58] sm:$0xff] %vm513_vm3, %v440_v36  ;;  %528 = vst.msk [vmem:[#allocation3 + $0x70] sm:$0xff] %vm513_vm3, %v446_v51  ;;  %v1938_v36 = vld [vmem:[%s3893_s1 + $0x40] sm:$0xff] }
  0xaf   : > { %813 = vrot.lane.b32.xlu1 %v2971_v57, %s2750_s21  ;;  %819 = vrot.lane.b32.xlu0 %v2973_v58, %s2750_s21 }
  0xb0   : > { %2638 = vmatprep.subr.mxu0 %v1938_v36  ;;  %2704 = vmatprep.subr.mxu1 %v1938_v36 }
  0xb1   : > { %v444_v37 = vpop.permute.xlu1 %443  ;;  %v450_v42 = vpop.permute.xlu0 %449  ;;  %2639 = vmatpush3.msra.mxu0 %v1938_v36  ;;  %2713 = vmatpush3.msra.mxu1 %v1938_v36 }
  0xb2   : > { %527 = vst.msk [vmem:[#allocation3 + $0x68] sm:$0xff] %vm513_vm3, %v444_v37  ;;  %530 = vst.msk [vmem:[#allocation3 + $0x80] sm:$0xff] %vm513_vm3, %v450_v42 }
  0xb3   : > { %817 = vrot.lane.b32.xlu1 %v2975_v59, %s2750_s21  ;;  %823 = vrot.lane.b32.xlu0 %v2984_v60, %s2750_s21 }
  0xb5   : > { %v448_v18 = vpop.permute.xlu1 %447  ;;  %v454_v20 = vpop.permute.xlu0 %453 }
  0xb6   : > { %529 = vst.msk [vmem:[#allocation3 + $0x78] sm:$0xff] %vm513_vm3, %v448_v18  ;;  %532 = vst.msk [vmem:[#allocation3 + $0x90] sm:$0xff] %vm513_vm3, %v454_v20 }
  0xb7   : > { %821 = vrot.lane.b32.xlu1 %v2986_v61, %s2750_s21  ;;  %827 = vrot.lane.b32.xlu0 %v2988_v62, %s2750_s21 }
  0xb9   : > { %v452_v21 = vpop.permute.xlu1 %451  ;;  %v458_v22 = vpop.permute.xlu0 %457 }
  0xba   : > { %531 = vst.msk [vmem:[#allocation3 + $0x88] sm:$0xff] %vm513_vm3, %v452_v21  ;;  %534 = vst.msk [vmem:[#allocation3 + $0xa0] sm:$0xff] %vm513_vm3, %v458_v22  ;;  %v1932_v22 = vld [vmem:[%s3893_s1 + $0x10] sm:$0xff] }
  0xbb   : > { %825 = vrot.lane.b32.xlu1 %v2996_v0, %s2750_s21  ;;  %831 = vrot.lane.b32.xlu0 %v2998_v1, %s2750_s21 }
  0xbd   : > { %v456_v23 = vpop.permute.xlu1 %455  ;;  %v462_v24 = vpop.permute.xlu0 %461 }
  0xbe   : > { %533 = vst.msk [vmem:[#allocation3 + $0x98] sm:$0xff] %vm513_vm3, %v456_v23  ;;  %536 = vst.msk [vmem:[#allocation3 + $0xb0] sm:$0xff] %vm513_vm3, %v462_v24 }
  0xbf   : > { %829 = vrot.lane.b32.xlu1 %v3000_v2, %s2750_s21  ;;  %835 = vrot.lane.b32.xlu0 %v3009_v3, %s2750_s21 }
  0xc1   : > { %v460_v28 = vpop.permute.xlu1 %459  ;;  %v466_v29 = vpop.permute.xlu0 %465 }
  0xc2   : > { %535 = vst.msk [vmem:[#allocation3 + $0xa8] sm:$0xff] %vm513_vm3, %v460_v28  ;;  %538 = vst.msk [vmem:[#allocation3 + $0xc0] sm:$0xff] %vm513_vm3, %v466_v29  ;;  %v1930_v28 = vld [vmem:[%s3893_s1] sm:$0xff] }
  0xc3   : > { %833 = vrot.lane.b32.xlu1 %v3011_v4, %s2750_s21  ;;  %839 = vrot.lane.b32.xlu0 %v3013_v5, %s2750_s21 }
  0xc5   : > { %v464_v33 = vpop.permute.xlu1 %463  ;;  %v470_v34 = vpop.permute.xlu0 %469 }
  0xc6   : > { %537 = vst.msk [vmem:[#allocation3 + $0xb8] sm:$0xff] %vm513_vm3, %v464_v33  ;;  %540 = vst.msk [vmem:[#allocation3 + $0xd0] sm:$0xff] %vm513_vm3, %v470_v34 }
  0xc7   : > { %837 = vrot.lane.b32.xlu1 %v3021_v6, %s2750_s21  ;;  %996 = vrot.lane.b32.xlu0 %v2883_v25, %s2751_s22  ;;  %v1937_v25 = vld [vmem:[%s3893_s1 + $0x38] sm:$0xff] }
  0xc8   : > { %2640 = vmatprep.subr.mxu0 %v1937_v25  ;;  %2705 = vmatprep.subr.mxu1 %v1937_v25 }
  0xc9   : > { %v468_v48 = vpop.permute.xlu1 %467  ;;  %v474_v35 = vpop.permute.xlu0 %473  ;;  %2641 = vmatpush3.msra.mxu0 %v1937_v25  ;;  %2714 = vmatpush3.msra.mxu1 %v1937_v25 }
  0xca   : > { %539 = vst.msk [vmem:[#allocation3 + $0xc8] sm:$0xff] %vm513_vm3, %v468_v48  ;;  %542 = vst.msk [vmem:[#allocation3 + $0xe0] sm:$0xff] %vm513_vm3, %v474_v35 }
  0xcb   : > { %841 = vrot.lane.b32.xlu1 %v3025_v8, %s2750_s21  ;;  %1189 = vrot.lane.b32.xlu0 %v3066_v39, %s2752_s25  ;;  %v1936_v39 = vld [vmem:[%s3893_s1 + $0x30] sm:$0xff] }
  0xcc   : > { %2642 = vmatprep.subr.mxu0 %v1936_v39  ;;  %2706 = vmatprep.subr.mxu1 %v1936_v39 }
  0xcd   : > { %v472_v51 = vpop.permute.xlu1 %471  ;;  %v478_v37 = vpop.permute.xlu0 %477  ;;  %2643 = vmatpush3.msra.mxu0 %v1936_v39  ;;  %2715 = vmatpush3.msra.mxu1 %v1936_v39 }
  0xce   : > { %541 = vst.msk [vmem:[#allocation3 + $0xd8] sm:$0xff] %vm513_vm3, %v472_v51  ;;  %544 = vst.msk [vmem:[#allocation3 + $0xf0] sm:$0xff] %vm513_vm3, %v478_v37 }
  0xcf   : > { %998 = vrot.lane.b32.xlu1 %v2892_v27, %s2751_s22  ;;  %1383 = vrot.lane.b32.xlu0 %v2950_v49, %s2753_s30  ;;  %v1935_v27 = vld [vmem:[%s3893_s1 + $0x28] sm:$0xff]  ;;  %v1934_v49 = vld [vmem:[%s3893_s1 + $0x20] sm:$0xff] }
  0xd0   : > { %2644 = vmatprep.subr.mxu0 %v1935_v27  ;;  %2707 = vmatprep.subr.mxu1 %v1935_v27 }
  0xd1   : > { %v476_v42 = vpop.permute.xlu1 %475  ;;  %v611_v18 = vpop.permute.xlu0 %610  ;;  %2645 = vmatpush3.msra.mxu0 %v1935_v27  ;;  %2716 = vmatpush3.msra.mxu1 %v1935_v27 }
  0xd2   : > { %543 = vst.msk [vmem:[#allocation3 + $0xe8] sm:$0xff] %vm513_vm3, %v476_v42  ;;  %2646 = vmatprep.subr.mxu0 %v1934_v49  ;;  %2708 = vmatprep.subr.mxu1 %v1934_v49 }
  0xd3   : > { %1191 = vrot.lane.b32.xlu1 %v3074_v45, %s2752_s25  ;;  %707 = vst.msk [vmem:[#allocation3] sm:$0xff] %vm706_vm4, %v611_v18  ;;  %1576 = vrot.lane.b32.xlu0 %v2885_v26, %s2754_s8  ;;  %v1933_v45 = vld [vmem:[%s3893_s1 + $0x18] sm:$0xff] }
  0xd4   : > { %2647 = vmatpush3.msra.mxu0 %v1934_v49  ;;  %2717 = vmatpush3.msra.mxu1 %v1934_v49 }
  0xd5   : > { %v480_v20 = vpop.permute.xlu1 %479  ;;  %v615_v21 = vpop.permute.xlu0 %614  ;;  %2648 = vmatprep.subr.mxu0 %v1933_v45  ;;  %2709 = vmatprep.subr.mxu1 %v1933_v45 }
  0xd6   : > { %545 = vst.msk [vmem:[#allocation3 + $0xf8] sm:$0xff] %vm513_vm3, %v480_v20  ;;  %2649 = vmatpush3.msra.mxu0 %v1933_v45  ;;  %2718 = vmatpush3.msra.mxu1 %v1933_v45  ;;  %v1520_v45 = vld [vmem:[#allocation2 + $0x91] sm:$0xff] }
  0xd7   : > { %1385 = vrot.lane.b32.xlu1 %v2963_v54, %s2753_s30  ;;  %709 = vst.msk [vmem:[#allocation3 + $0x10] sm:$0xff] %vm706_vm4, %v615_v21  ;;  %1578 = vrot.lane.b32.xlu0 %v2904_v31, %s2754_s8  ;;  %v1931_v54 = vld [vmem:[%s3893_s1 + $0x8] sm:$0xff] }
  0xd8   : > { %2650 = vmatprep.subr.mxu0 %v1932_v22  ;;  %2710 = vmatprep.subr.mxu1 %v1932_v22 }
  0xd9   : > { %v613_v23 = vpop.permute.xlu1 %612  ;;  %2651 = vmatpush3.msra.mxu0 %v1932_v22  ;;  %v619_v24 = vpop.permute.xlu0 %618  ;;  %2719 = vmatpush3.msra.mxu1 %v1932_v22 }
  0xda   : > { %708 = vst.msk [vmem:[#allocation3 + $0x8] sm:$0xff] %vm706_vm4, %v613_v23  ;;  %2652 = vmatprep.subr.mxu0 %v1931_v54  ;;  %711 = vst.msk [vmem:[#allocation3 + $0x20] sm:$0xff] %vm706_vm4, %v619_v24  ;;  %2711 = vmatprep.subr.mxu1 %v1931_v54 }
  0xdb   : > { %1000 = vrot.lane.b32.xlu1 %v2885_v26, %s2751_s22  ;;  %2653 = vmatpush3.msra.mxu0 %v1931_v54 }
  0xdc   : > { %1002 = vrot.lane.b32.xlu0 %v2904_v31, %s2751_s22  ;;  %2654 = vmatprep.subr.mxu0 %v1930_v28 }
  0xdd   : > { %v617_v29 = vpop.permute.xlu1 %616  ;;  %2655 = vmatpush3.msra.mxu0 %v1930_v28  ;;  %v623_v33 = vpop.permute.xlu0 %622  ;;  %2720 = vmatpush3.msra.mxu1 %v1931_v54 }
  0xde   : > { %710 = vst.msk [vmem:[#allocation3 + $0x18] sm:$0xff] %vm706_vm4, %v617_v29  ;;  %713 = vst.msk [vmem:[#allocation3 + $0x30] sm:$0xff] %vm706_vm4, %v623_v33  ;;  %2712 = vmatprep.subr.mxu1 %v1930_v28  ;;  %v1522_v33 = vld [vmem:[#allocation2 + $0xa9] sm:$0xff] }
  0xdf   : > { %1769 = vrot.lane.b32.xlu1 %v3071_v44, %s2755_s23  ;;  %2721 = vmatpush3.msra.mxu1 %v1930_v28 }
  0xe0   : > { %1771 = vrot.lane.b32.xlu0 %v3082_v47, %s2755_s23 }
  0xe1   : > { %v621_v26 = vpop.permute.xlu1 %620  ;;  %v627_v31 = vpop.permute.xlu0 %626 }
  0xe2   : > { %712 = vst.msk [vmem:[#allocation3 + $0x28] sm:$0xff] %vm706_vm4, %v621_v26  ;;  %715 = vst.msk [vmem:[#allocation3 + $0x40] sm:$0xff] %vm706_vm4, %v627_v31 }
  0xe3   : > { %1193 = vrot.lane.b32.xlu1 %v3071_v44, %s2752_s25 }
  0xe4   : > { %1387 = vrot.lane.b32.xlu0 %v2956_v52, %s2753_s30 }
  0xe5   : > { %v625_v34 = vpop.permute.xlu1 %624  ;;  %v631_v48 = vpop.permute.xlu0 %630 }
  0xe6   : > { %714 = vst.msk [vmem:[#allocation3 + $0x38] sm:$0xff] %vm706_vm4, %v625_v34  ;;  %717 = vst.msk [vmem:[#allocation3 + $0x50] sm:$0xff] %vm706_vm4, %v631_v48 }
  0xe7   : > { %1195 = vrot.lane.b32.xlu1 %v3082_v47, %s2752_s25 }
  0xe8   : > { %1580 = vrot.lane.b32.xlu0 %v2900_v30, %s2754_s8 }
  0xe9   : > { %v629_v44 = vpop.permute.xlu1 %628  ;;  %v635_v35 = vpop.permute.xlu0 %634 }
  0xea   : > { %716 = vst.msk [vmem:[#allocation3 + $0x48] sm:$0xff] %vm706_vm4, %v629_v44  ;;  %719 = vst.msk [vmem:[#allocation3 + $0x60] sm:$0xff] %vm706_vm4, %v635_v35 }
  0xeb   : > { %1389 = vrot.lane.b32.xlu1 %v2971_v57, %s2753_s30 }
  0xec   : > { %1582 = vrot.lane.b32.xlu0 %v2920_v38, %s2754_s8 }
  0xed   : > { %v633_v52 = vpop.permute.xlu1 %632  ;;  %v639_v47 = vpop.permute.xlu0 %638 }
  0xee   : > { %718 = vst.msk [vmem:[#allocation3 + $0x58] sm:$0xff] %vm706_vm4, %v633_v52  ;;  %721 = vst.msk [vmem:[#allocation3 + $0x70] sm:$0xff] %vm706_vm4, %v639_v47  ;;  %v1524_v47 = vld [vmem:[#allocation2 + $0xc1] sm:$0xff] }
  0xef   : > { %1004 = vrot.lane.b32.xlu1 %v2900_v30, %s2751_s22 }
  0xf0   : > { %1006 = vrot.lane.b32.xlu0 %v2920_v38, %s2751_s22 }
  0xf1   : > { %v637_v36 = vpop.permute.xlu1 %636  ;;  %v643_v57 = vpop.permute.xlu0 %642 }
  0xf2   : > { %720 = vst.msk [vmem:[#allocation3 + $0x68] sm:$0xff] %vm706_vm4, %v637_v36  ;;  %723 = vst.msk [vmem:[#allocation3 + $0x80] sm:$0xff] %vm706_vm4, %v643_v57 }
  0xf3   : > { %1773 = vrot.lane.b32.xlu1 %v3078_v46, %s2755_s23 }
  0xf4   : > { %1775 = vrot.lane.b32.xlu0 %v3090_v53, %s2755_s23 }
  0xf5   : > { %v641_v51 = vpop.permute.xlu1 %640  ;;  %v647_v30 = vpop.permute.xlu0 %646 }
  0xf6   : > { %722 = vst.msk [vmem:[#allocation3 + $0x78] sm:$0xff] %vm706_vm4, %v641_v51  ;;  %725 = vst.msk [vmem:[#allocation3 + $0x90] sm:$0xff] %vm706_vm4, %v647_v30 }
  0xf7   : > { %1197 = vrot.lane.b32.xlu1 %v3078_v46, %s2752_s25 }
  0xf8   : > { %1391 = vrot.lane.b32.xlu0 %v2965_v55, %s2753_s30 }
  0xf9   : > { %v645_v38 = vpop.permute.xlu1 %644  ;;  %v651_v25 = vpop.permute.xlu0 %650 }
  0xfa   : > { %724 = vst.msk [vmem:[#allocation3 + $0x88] sm:$0xff] %vm706_vm4, %v645_v38  ;;  %727 = vst.msk [vmem:[#allocation3 + $0xa0] sm:$0xff] %vm706_vm4, %v651_v25 }
  0xfb   : > { %1199 = vrot.lane.b32.xlu1 %v3090_v53, %s2752_s25 }
  0xfc   : > { %1584 = vrot.lane.b32.xlu0 %v2908_v32, %s2754_s8 }
  0xfd   : > { %v649_v37 = vpop.permute.xlu1 %648  ;;  %v655_v46 = vpop.permute.xlu0 %654 }
  0xfe   : > { %726 = vst.msk [vmem:[#allocation3 + $0x98] sm:$0xff] %vm706_vm4, %v649_v37  ;;  %729 = vst.msk [vmem:[#allocation3 + $0xb0] sm:$0xff] %vm706_vm4, %v655_v46 }
  0xff   : > { %1393 = vrot.lane.b32.xlu1 %v2975_v59, %s2753_s30 }
 0x100   : > { %1586 = vrot.lane.b32.xlu0 %v2932_v41, %s2754_s8 }
 0x101   : > { %v653_v55 = vpop.permute.xlu1 %652  ;;  %v659_v53 = vpop.permute.xlu0 %658 }
 0x102   : > { %728 = vst.msk [vmem:[#allocation3 + $0xa8] sm:$0xff] %vm706_vm4, %v653_v55  ;;  %731 = vst.msk [vmem:[#allocation3 + $0xc0] sm:$0xff] %vm706_vm4, %v659_v53 }
 0x103   : > { %1008 = vrot.lane.b32.xlu1 %v2908_v32, %s2751_s22 }
 0x104   : > { %1010 = vrot.lane.b32.xlu0 %v2932_v41, %s2751_s22 }
 0x105   : > { %v657_v39 = vpop.permute.xlu1 %656  ;;  %v663_v59 = vpop.permute.xlu0 %662 }
 0x106   : > { %730 = vst.msk [vmem:[#allocation3 + $0xb8] sm:$0xff] %vm706_vm4, %v657_v39  ;;  %733 = vst.msk [vmem:[#allocation3 + $0xd0] sm:$0xff] %vm706_vm4, %v663_v59 }
 0x107   : > { %1777 = vrot.lane.b32.xlu1 %v3086_v50, %s2755_s23 }
 0x108   : > { %1779 = vrot.lane.b32.xlu0 %v3098_v63, %s2755_s23 }
 0x109   : > { %v661_v42 = vpop.permute.xlu1 %660  ;;  %v667_v32 = vpop.permute.xlu0 %666 }
 0x10a   : > { %732 = vst.msk [vmem:[#allocation3 + $0xc8] sm:$0xff] %vm706_vm4, %v661_v42  ;;  %735 = vst.msk [vmem:[#allocation3 + $0xe0] sm:$0xff] %vm706_vm4, %v667_v32  ;;  %v1527_v42 = vld [vmem:[#allocation2 + $0xe1] sm:$0xff] }
 0x10b   : > { %1201 = vrot.lane.b32.xlu1 %v3086_v50, %s2752_s25 }
 0x10c   : > { %1395 = vrot.lane.b32.xlu0 %v2973_v58, %s2753_s30 }
 0x10d   : > { %v665_v41 = vpop.permute.xlu1 %664  ;;  %v671_v27 = vpop.permute.xlu0 %670 }
 0x10e   : > { %734 = vst.msk [vmem:[#allocation3 + $0xd8] sm:$0xff] %vm706_vm4, %v665_v41  ;;  %737 = vst.msk [vmem:[#allocation3 + $0xf0] sm:$0xff] %vm706_vm4, %v671_v27  ;;  %v1719_v27 = vld [vmem:[#allocation2 + $0xda] sm:$0xff] }
 0x10f   : > { %1203 = vrot.lane.b32.xlu1 %v3098_v63, %s2752_s25 }
 0x110   : > { %1588 = vrot.lane.b32.xlu0 %v2928_v40, %s2754_s8 }
 0x111   : > { %v669_v18 = vpop.permute.xlu1 %668  ;;  %v804_v50 = vpop.permute.xlu0 %803 }
 0x112   : > { %736 = vst.msk [vmem:[#allocation3 + $0xe8] sm:$0xff] %vm706_vm4, %v669_v18 }
 0x113   : > { %1397 = vrot.lane.b32.xlu1 %v2986_v61, %s2753_s30  ;;  %900 = vst.msk [vmem:[#allocation3] sm:$0xff] %vm899_vm5, %v804_v50  ;;  %v1720_v50 = vld [vmem:[#allocation2 + $0xe2] sm:$0xff] }
 0x114   : > { %1590 = vrot.lane.b32.xlu0 %v2938_v43, %s2754_s8 }
 0x115   : > { %v673_v58 = vpop.permute.xlu1 %672  ;;  %v808_v63 = vpop.permute.xlu0 %807 }
 0x116   : > { %738 = vst.msk [vmem:[#allocation3 + $0xf8] sm:$0xff] %vm706_vm4, %v673_v58 }
 0x117   : > { %1012 = vrot.lane.b32.xlu1 %v2928_v40, %s2751_s22  ;;  %902 = vst.msk [vmem:[#allocation3 + $0x10] sm:$0xff] %vm899_vm5, %v808_v63 }
 0x118   : > { %1014 = vrot.lane.b32.xlu0 %v2938_v43, %s2751_s22 }
 0x119   : > { %v806_v49 = vpop.permute.xlu1 %805  ;;  %v812_v61 = vpop.permute.xlu0 %811 }
 0x11a   : > { %901 = vst.msk [vmem:[#allocation3 + $0x8] sm:$0xff] %vm899_vm5, %v806_v49  ;;  %904 = vst.msk [vmem:[#allocation3 + $0x20] sm:$0xff] %vm899_vm5, %v812_v61 }
 0x11b   : > { %1781 = vrot.lane.b32.xlu1 %v3094_v56, %s2755_s23 }
 0x11c   : > { %1783 = vrot.lane.b32.xlu0 %v3106_v12, %s2755_s23 }
 0x11d   : > { %v810_v20 = vpop.permute.xlu1 %809  ;;  %v816_v40 = vpop.permute.xlu0 %815 }
 0x11e   : > { %903 = vst.msk [vmem:[#allocation3 + $0x18] sm:$0xff] %vm899_vm5, %v810_v20  ;;  %906 = vst.msk [vmem:[#allocation3 + $0x30] sm:$0xff] %vm899_vm5, %v816_v40  ;;  %v1528_v40 = vld [vmem:[#allocation2 + $0xf1] sm:$0xff] }
 0x11f   : > { %1205 = vrot.lane.b32.xlu1 %v3094_v56, %s2752_s25  ;;  %v1521_v56 = vld [vmem:[#allocation2 + $0x99] sm:$0xff] }
 0x120   : > { %1399 = vrot.lane.b32.xlu0 %v2984_v60, %s2753_s30 }
 0x121   : > { %v814_v43 = vpop.permute.xlu1 %813  ;;  %v820_v21 = vpop.permute.xlu0 %819 }
 0x122   : > { %905 = vst.msk [vmem:[#allocation3 + $0x28] sm:$0xff] %vm899_vm5, %v814_v43  ;;  %908 = vst.msk [vmem:[#allocation3 + $0x40] sm:$0xff] %vm899_vm5, %v820_v21 }
 0x123   : > { %1207 = vrot.lane.b32.xlu1 %v3106_v12, %s2752_s25 }
 0x124   : > { %1592 = vrot.lane.b32.xlu0 %v1520_v45, %s2754_s8 }
 0x125   : > { %v818_v22 = vpop.permute.xlu1 %817  ;;  %v824_v23 = vpop.permute.xlu0 %823 }
 0x126   : > { %907 = vst.msk [vmem:[#allocation3 + $0x38] sm:$0xff] %vm899_vm5, %v818_v22  ;;  %910 = vst.msk [vmem:[#allocation3 + $0x50] sm:$0xff] %vm899_vm5, %v824_v23  ;;  %v1529_v22 = vld [vmem:[#allocation2 + $0xf9] sm:$0xff] }
 0x127   : > { %1401 = vrot.lane.b32.xlu1 %v2996_v0, %s2753_s30 }
 0x128   : > { %1594 = vrot.lane.b32.xlu0 %v1521_v56, %s2754_s8 }
 0x129   : > { %v822_v60 = vpop.permute.xlu1 %821  ;;  %v828_v12 = vpop.permute.xlu0 %827 }
 0x12a   : > { %909 = vst.msk [vmem:[#allocation3 + $0x48] sm:$0xff] %vm899_vm5, %v822_v60  ;;  %912 = vst.msk [vmem:[#allocation3 + $0x60] sm:$0xff] %vm899_vm5, %v828_v12  ;;  %v1721_v12 = vld [vmem:[#allocation2 + $0xf2] sm:$0xff] }
 0x12b   : > { %1016 = vrot.lane.b32.xlu1 %v1520_v45, %s2751_s22  ;;  %v212_v45 = vld [vmem:[%s2838_s18 + $0xf0] sm:$0xff] }
 0x12c   : > { %1018 = vrot.lane.b32.xlu0 %v1521_v56, %s2751_s22  ;;  %287 = vst.msk [vmem:[#allocation2 + $0x181] sm:$0xff] %vm214_vm0, %v212_v45  ;;  %v213_v56 = vld [vmem:[%s2838_s18 + $0xf8] sm:$0xff] }
 0x12d   : > { %v826_v54 = vpop.permute.xlu1 %825  ;;  %v832_v24 = vpop.permute.xlu0 %831  ;;  %288 = vst.msk [vmem:[#allocation2 + $0x189] sm:$0xff] %vm214_vm0, %v213_v56  ;;  %v1728_v56 = vld [vmem:[#allocation2 + $0x142] sm:$0xff] }
 0x12e   : > { %911 = vst.msk [vmem:[#allocation3 + $0x58] sm:$0xff] %vm899_vm5, %v826_v54  ;;  %914 = vst.msk [vmem:[#allocation3 + $0x70] sm:$0xff] %vm899_vm5, %v832_v24 }
 0x12f   : > { %1785 = vrot.lane.b32.xlu1 %v3102_v11, %s2755_s23 }
 0x130   : > { %1787 = vrot.lane.b32.xlu0 %v3114_v15, %s2755_s23 }
 0x131   : > { %v830_v0 = vpop.permute.xlu1 %829  ;;  %v836_v28 = vpop.permute.xlu0 %835 }
 0x132   : > { %913 = vst.msk [vmem:[#allocation3 + $0x68] sm:$0xff] %vm899_vm5, %v830_v0  ;;  %916 = vst.msk [vmem:[#allocation3 + $0x80] sm:$0xff] %vm899_vm5, %v836_v28 }
 0x133   : > { %1209 = vrot.lane.b32.xlu1 %v3102_v11, %s2752_s25  ;;  %v1523_v11 = vld [vmem:[#allocation2 + $0xb1] sm:$0xff] }
 0x134   : > { %1403 = vrot.lane.b32.xlu0 %v2988_v62, %s2753_s30 }
 0x135   : > { %v834_v29 = vpop.permute.xlu1 %833  ;;  %v840_v26 = vpop.permute.xlu0 %839 }
 0x136   : > { %915 = vst.msk [vmem:[#allocation3 + $0x78] sm:$0xff] %vm899_vm5, %v834_v29  ;;  %918 = vst.msk [vmem:[#allocation3 + $0x90] sm:$0xff] %vm899_vm5, %v840_v26 }
 0x137   : > { %1211 = vrot.lane.b32.xlu1 %v3114_v15, %s2752_s25 }
 0x138   : > { %1596 = vrot.lane.b32.xlu0 %v1522_v33, %s2754_s8 }
 0x139   : > { %v838_v31 = vpop.permute.xlu1 %837  ;;  %v997_v34 = vpop.permute.xlu0 %996 }
 0x13a   : > { %917 = vst.msk [vmem:[#allocation3 + $0x88] sm:$0xff] %vm899_vm5, %v838_v31 }
 0x13b   : > { %1405 = vrot.lane.b32.xlu1 %v3000_v2, %s2753_s30  ;;  %1093 = vst.msk [vmem:[#allocation3] sm:$0xff] %vm1092_vm6, %v997_v34 }
 0x13c   : > { %1598 = vrot.lane.b32.xlu0 %v1523_v11, %s2754_s8 }
 0x13d   : > { %v842_v62 = vpop.permute.xlu1 %841  ;;  %v1190_v15 = vpop.permute.xlu0 %1189 }
 0x13e   : > { %919 = vst.msk [vmem:[#allocation3 + $0x98] sm:$0xff] %vm899_vm5, %v842_v62  ;;  %v1530_v62 = vld [vmem:[#allocation2 + $0x109] sm:$0xff] }
 0x13f   : > { %1020 = vrot.lane.b32.xlu1 %v1522_v33, %s2751_s22  ;;  %1286 = vst.msk [vmem:[#allocation3] sm:$0xff] %vm1285_vm7, %v1190_v15 }
 0x140   : > { %1022 = vrot.lane.b32.xlu0 %v1523_v11, %s2751_s22 }
 0x141   : > { %v999_v48 = vpop.permute.xlu1 %998  ;;  %v1384_v2 = vpop.permute.xlu0 %1383 }
 0x142   : > { %1094 = vst.msk [vmem:[#allocation3 + $0x8] sm:$0xff] %vm1092_vm6, %v999_v48  ;;  %v1531_v48 = vld [vmem:[#allocation2 + $0x111] sm:$0xff] }
 0x143   : > { %1789 = vrot.lane.b32.xlu1 %v3110_v13, %s2755_s23  ;;  %1480 = vst.msk [vmem:[#allocation3] sm:$0xff] %vm1479_vm8, %v1384_v2 }
 0x144   : > { %1791 = vrot.lane.b32.xlu0 %v3122_v17, %s2755_s23 }
 0x145   : > { %v1192_v44 = vpop.permute.xlu1 %1191  ;;  %v1577_v35 = vpop.permute.xlu0 %1576 }
 0x146   : > { %1287 = vst.msk [vmem:[#allocation3 + $0x8] sm:$0xff] %vm1285_vm7, %v1192_v44 }
 0x147   : > { %1213 = vrot.lane.b32.xlu1 %v3110_v13, %s2752_s25  ;;  %1673 = vst.msk [vmem:[#allocation3] sm:$0xff] %vm1672_vm9, %v1577_v35  ;;  %v1525_v13 = vld [vmem:[#allocation2 + $0xc9] sm:$0xff] }
 0x148   : > { %1407 = vrot.lane.b32.xlu0 %v2998_v1, %s2753_s30 }
 0x149   : > { %v1386_v52 = vpop.permute.xlu1 %1385  ;;  %v1579_v36 = vpop.permute.xlu0 %1578 }
 0x14a   : > { %1481 = vst.msk [vmem:[#allocation3 + $0x8] sm:$0xff] %vm1479_vm8, %v1386_v52 }
 0x14b   : > { %1215 = vrot.lane.b32.xlu1 %v3122_v17, %s2752_s25  ;;  %1674 = vst.msk [vmem:[#allocation3 + $0x8] sm:$0xff] %vm1672_vm9, %v1579_v36 }
 0x14c   : > { %1600 = vrot.lane.b32.xlu0 %v1524_v47, %s2754_s8 }
 0x14d   : > { %v1001_v57 = vpop.permute.xlu1 %1000 }
 0x14e   : > { %1095 = vst.msk [vmem:[#allocation3 + $0x10] sm:$0xff] %vm1092_vm6, %v1001_v57  ;;  %v1003_v51 = vpop.permute.xlu0 %1002 }
 0x14f   : > { %1409 = vrot.lane.b32.xlu1 %v3011_v4, %s2753_s30  ;;  %1096 = vst.msk [vmem:[#allocation3 + $0x18] sm:$0xff] %vm1092_vm6, %v1003_v51  ;;  %v1139_v4 = vld [vmem:[#allocation2 + $0xc2] sm:$0xff] }
 0x150   : > { %1602 = vrot.lane.b32.xlu0 %v1525_v13, %s2754_s8 }
 0x151   : > { %v1770_v1 = vpop.permute.xlu1 %1769 }
 0x152   : > { %1866 = vst.msk [vmem:[#allocation3] sm:$0xff] %vm1865_vm10, %v1770_v1  ;;  %v1772_v17 = vpop.permute.xlu0 %1771 }
 0x153   : > { %1024 = vrot.lane.b32.xlu1 %v1524_v47, %s2751_s22  ;;  %1867 = vst.msk [vmem:[#allocation3 + $0x8] sm:$0xff] %vm1865_vm10, %v1772_v17  ;;  %v1724_v47 = vld [vmem:[#allocation2 + $0x112] sm:$0xff] }
 0x154   : > { %1026 = vrot.lane.b32.xlu0 %v1525_v13, %s2751_s22 }
 0x155   : > { %v1194_v30 = vpop.permute.xlu1 %1193 }
 0x156   : > { %1288 = vst.msk [vmem:[#allocation3 + $0x10] sm:$0xff] %vm1285_vm7, %v1194_v30  ;;  %v1388_v38 = vpop.permute.xlu0 %1387  ;;  %v761_v30 = vld [vmem:[#allocation2 + $0x120] sm:$0xff] }
 0x157   : > { %1793 = vrot.lane.b32.xlu1 %v3118_v16, %s2755_s23  ;;  %1482 = vst.msk [vmem:[#allocation3 + $0x10] sm:$0xff] %vm1479_vm8, %v1388_v38  ;;  %v1140_v16 = vld [vmem:[#allocation2 + $0xca] sm:$0xff] }
 0x158   : > { %1795 = vrot.lane.b32.xlu0 %v3128_v19, %s2755_s23  ;;  %v1526_v19 = vld [vmem:[#allocation2 + $0xd9] sm:$0xff] }
 0x159   : > { %v1196_v25 = vpop.permute.xlu1 %1195  ;;  %v1898_v37 = vld [vmem:[#allocation3] sm:$0xff] }
 0x15a   : > { %1289 = vst.msk [vmem:[#allocation3 + $0x18] sm:$0xff] %vm1285_vm7, %v1196_v25  ;;  %2656 = vmatprep.mubr.msk.f32.mxu0 %vm1939_vm11, %v1898_v37  ;;  %v1581_v46 = vpop.permute.xlu0 %1580  ;;  %v1899_v55 = vld [vmem:[#allocation3 + $0x8] sm:$0xff]  ;;  %v1533_v37 = vld [vmem:[#allocation2 + $0x129] sm:$0xff] }
 0x15b   : > { %1217 = vrot.lane.b32.xlu1 %v1139_v4, %s2752_s25  ;;  %1675 = vst.msk [vmem:[#allocation3 + $0x10] sm:$0xff] %vm1672_vm9, %v1581_v46  ;;  %2657 = vmatmul.mubr.msk.f32.vlgmr.msra.gmra.mxu0 %vm1939_vm11, %v1899_v55 }
 0x15c   : > { %1411 = vrot.lane.b32.xlu0 %v3009_v3, %s2753_s30 }
 0x15d   : > { %v1390_v53 = vpop.permute.xlu1 %1389 }
 0x15e   : > { %1483 = vst.msk [vmem:[#allocation3 + $0x18] sm:$0xff] %vm1479_vm8, %v1390_v53  ;;  %v1583_v39 = vpop.permute.xlu0 %1582 }
 0x15f   : > { %1219 = vrot.lane.b32.xlu1 %v1140_v16, %s2752_s25  ;;  %1676 = vst.msk [vmem:[#allocation3 + $0x18] sm:$0xff] %vm1672_vm9, %v1583_v39 }
 0x160   : > { %1604 = vrot.lane.b32.xlu0 %v1526_v19, %s2754_s8 }
 0x161   : > { %v1005_v59 = vpop.permute.xlu1 %1004 }
 0x162   : > { %1097 = vst.msk [vmem:[#allocation3 + $0x20] sm:$0xff] %vm1092_vm6, %v1005_v59  ;;  %v1007_v32 = vpop.permute.xlu0 %1006  ;;  %v1726_v59 = vld [vmem:[#allocation2 + $0x12a] sm:$0xff] }
 0x163   : > { %1413 = vrot.lane.b32.xlu1 %v3021_v6, %s2753_s30  ;;  %1098 = vst.msk [vmem:[#allocation3 + $0x28] sm:$0xff] %vm1092_vm6, %v1007_v32 }
 0x164   : > { %1606 = vrot.lane.b32.xlu0 %v1527_v42, %s2754_s8 }
 0x165   : > { %v1774_v3 = vpop.permute.xlu1 %1773 }
 0x166   : > { %1868 = vst.msk [vmem:[#allocation3 + $0x10] sm:$0xff] %vm1865_vm10, %v1774_v3  ;;  %v1776_v41 = vpop.permute.xlu0 %1775  ;;  %v1341_v3 = vld [vmem:[#allocation2 + $0x138] sm:$0xff] }
 0x167   : > { %1028 = vrot.lane.b32.xlu1 %v1526_v19, %s2751_s22  ;;  %1869 = vst.msk [vmem:[#allocation3 + $0x18] sm:$0xff] %vm1865_vm10, %v1776_v41  ;;  %v1725_v19 = vld [vmem:[#allocation2 + $0x122] sm:$0xff] }
 0x168   : > { %1030 = vrot.lane.b32.xlu0 %v1527_v42, %s2751_s22 }
 0x169   : > { %v1198_v18 = vpop.permute.xlu1 %1197 }
 0x16a   : > { %1290 = vst.msk [vmem:[#allocation3 + $0x20] sm:$0xff] %vm1285_vm7, %v1198_v18  ;;  %v1392_v6 = vpop.permute.xlu0 %1391  ;;  %v1342_v18 = vld [vmem:[#allocation2 + $0x140] sm:$0xff] }
 0x16b   : > { %1797 = vrot.lane.b32.xlu1 %v1719_v27, %s2755_s23  ;;  %1484 = vst.msk [vmem:[#allocation3 + $0x20] sm:$0xff] %vm1479_vm8, %v1392_v6 }
 0x16c   : > { %1799 = vrot.lane.b32.xlu0 %v1720_v50, %s2755_s23 }
 0x16d   : > { %v1200_v58 = vpop.permute.xlu1 %1199  ;;  %v1900_v63 = vld [vmem:[#allocation3 + $0x10] sm:$0xff] }
 0x16e   : > { %1291 = vst.msk [vmem:[#allocation3 + $0x28] sm:$0xff] %vm1285_vm7, %v1200_v58  ;;  %2659 = vmatprep.mubr.msk.f32.mxu0 %vm1939_vm11, %v1900_v63  ;;  %v1585_v49 = vpop.permute.xlu0 %1584  ;;  %v1901_v61 = vld [vmem:[#allocation3 + $0x18] sm:$0xff]  ;;  %v1534_v63 = vld [vmem:[#allocation2 + $0x139] sm:$0xff] }
 0x16f   : > { %1221 = vrot.lane.b32.xlu1 %v1719_v27, %s2752_s25  ;;  %1677 = vst.msk [vmem:[#allocation3 + $0x20] sm:$0xff] %vm1672_vm9, %v1585_v49  ;;  %2660 = vmatmul.mubr.msk.f32.gmra.mxu0 %vm1939_vm11, %v1901_v61 }
 0x170   : > { %1415 = vrot.lane.b32.xlu0 %v3013_v5, %s2753_s30 }
 0x171   : > { %v1394_v20 = vpop.permute.xlu1 %1393 }
 0x172   : > { %1485 = vst.msk [vmem:[#allocation3 + $0x28] sm:$0xff] %vm1479_vm8, %v1394_v20  ;;  %v1587_v43 = vpop.permute.xlu0 %1586  ;;  %v1535_v20 = vld [vmem:[#allocation2 + $0x141] sm:$0xff] }
 0x173   : > { %1223 = vrot.lane.b32.xlu1 %v1720_v50, %s2752_s25  ;;  %1678 = vst.msk [vmem:[#allocation3 + $0x28] sm:$0xff] %vm1672_vm9, %v1587_v43 }
 0x174   : > { %1608 = vrot.lane.b32.xlu0 %v1528_v40, %s2754_s8 }
 0x175   : > { %v1009_v21 = vpop.permute.xlu1 %1008 }
 0x176   : > { %1099 = vst.msk [vmem:[#allocation3 + $0x30] sm:$0xff] %vm1092_vm6, %v1009_v21  ;;  %v1011_v5 = vpop.permute.xlu0 %1010 }
 0x177   : > { %1417 = vrot.lane.b32.xlu1 %v3025_v8, %s2753_s30  ;;  %1100 = vst.msk [vmem:[#allocation3 + $0x38] sm:$0xff] %vm1092_vm6, %v1011_v5  ;;  %v1722_v8 = vld [vmem:[#allocation2 + $0xfa] sm:$0xff] }
 0x178   : > { %1610 = vrot.lane.b32.xlu0 %v1529_v22, %s2754_s8 }
 0x179   : > { %v1778_v23 = vpop.permute.xlu1 %1777 }
 0x17a   : > { %1870 = vst.msk [vmem:[#allocation3 + $0x20] sm:$0xff] %vm1865_vm10, %v1778_v23  ;;  %v1780_v60 = vpop.permute.xlu0 %1779 }
 0x17b   : > { %1032 = vrot.lane.b32.xlu1 %v1528_v40, %s2751_s22  ;;  %1871 = vst.msk [vmem:[#allocation3 + $0x28] sm:$0xff] %vm1865_vm10, %v1780_v60 }
 0x17c   : > { %1034 = vrot.lane.b32.xlu0 %v1529_v22, %s2751_s22  ;;  %v1727_v22 = vld [vmem:[#allocation2 + $0x13a] sm:$0xff] }
 0x17d   : > { %v1202_v54 = vpop.permute.xlu1 %1201 }
 0x17e   : > { %1292 = vst.msk [vmem:[#allocation3 + $0x30] sm:$0xff] %vm1285_vm7, %v1202_v54  ;;  %v1396_v24 = vpop.permute.xlu0 %1395 }
 0x17f   : > { %1801 = vrot.lane.b32.xlu1 %v1721_v12, %s2755_s23  ;;  %1486 = vst.msk [vmem:[#allocation3 + $0x30] sm:$0xff] %vm1479_vm8, %v1396_v24  ;;  %v1344_v24 = vld [vmem:[#allocation2 + $0x158] sm:$0xff] }
 0x180   : > { %1803 = vrot.lane.b32.xlu0 %v1722_v8, %s2755_s23 }
 0x181   : > { %v1204_v0 = vpop.permute.xlu1 %1203  ;;  %v1902_v28 = vld [vmem:[#allocation3 + $0x20] sm:$0xff] }
 0x182   : > { %1293 = vst.msk [vmem:[#allocation3 + $0x38] sm:$0xff] %vm1285_vm7, %v1204_v0  ;;  %2662 = vmatprep.mubr.msk.f32.mxu0 %vm1939_vm11, %v1902_v28  ;;  %v1589_v29 = vpop.permute.xlu0 %1588  ;;  %v1903_v33 = vld [vmem:[#allocation3 + $0x28] sm:$0xff] }
 0x183   : > { %1225 = vrot.lane.b32.xlu1 %v1721_v12, %s2752_s25  ;;  %1679 = vst.msk [vmem:[#allocation3 + $0x30] sm:$0xff] %vm1672_vm9, %v1589_v29  ;;  %2663 = vmatmul.mubr.msk.f32.gmra.mxu0 %vm1939_vm11, %v1903_v33  ;;  %v1343_v12 = vld [vmem:[#allocation2 + $0x150] sm:$0xff] }
 0x184   : > { %1419 = vrot.lane.b32.xlu0 %v3023_v7, %s2753_s30 }
 0x185   : > { %v1398_v26 = vpop.permute.xlu1 %1397 }
 0x186   : > { %1487 = vst.msk [vmem:[#allocation3 + $0x38] sm:$0xff] %vm1479_vm8, %v1398_v26  ;;  %v1591_v31 = vpop.permute.xlu0 %1590 }
 0x187   : > { %1227 = vrot.lane.b32.xlu1 %v1722_v8, %s2752_s25  ;;  %1680 = vst.msk [vmem:[#allocation3 + $0x38] sm:$0xff] %vm1672_vm9, %v1591_v31  ;;  %v1536_v31 = vld [vmem:[#allocation2 + $0x151] sm:$0xff] }
 0x188   : > { %1421 = vrot.lane.b32.xlu0 %v3036_v10, %s2753_s30 }
 0x189   : > { %v1013_v11 = vpop.permute.xlu1 %1012 }
 0x18a   : > { %1101 = vst.msk [vmem:[#allocation3 + $0x40] sm:$0xff] %vm1092_vm6, %v1013_v11  ;;  %v1015_v34 = vpop.permute.xlu0 %1014 }
 0x18b   : > { %843 = vrot.lane.b32.xlu1 %v3023_v7, %s2750_s21  ;;  %1102 = vst.msk [vmem:[#allocation3 + $0x48] sm:$0xff] %vm1092_vm6, %v1015_v34  ;;  %v1537_v34 = vld [vmem:[#allocation2 + $0x159] sm:$0xff] }
 0x18c   : > { %845 = vrot.lane.b32.xlu0 %v3036_v10, %s2750_s21  ;;  %v1723_v10 = vld [vmem:[#allocation2 + $0x10a] sm:$0xff] }
 0x18d   : > { %v1782_v15 = vpop.permute.xlu1 %1781 }
 0x18e   : > { %1872 = vst.msk [vmem:[#allocation3 + $0x30] sm:$0xff] %vm1865_vm10, %v1782_v15  ;;  %v1784_v2 = vpop.permute.xlu0 %1783 }
 0x18f   : > { %1612 = vrot.lane.b32.xlu1 %v1530_v62, %s2754_s8  ;;  %1873 = vst.msk [vmem:[#allocation3 + $0x38] sm:$0xff] %vm1865_vm10, %v1784_v2  ;;  %v1729_v2 = vld [vmem:[#allocation2 + $0x152] sm:$0xff] }
 0x190   : > { %1614 = vrot.lane.b32.xlu0 %v1531_v48, %s2754_s8 }
 0x191   : > { %v1206_v44 = vpop.permute.xlu1 %1205 }
 0x192   : > { %1294 = vst.msk [vmem:[#allocation3 + $0x40] sm:$0xff] %vm1285_vm7, %v1206_v44  ;;  %v1400_v7 = vpop.permute.xlu0 %1399 }
 0x193   : > { %1036 = vrot.lane.b32.xlu1 %v1530_v62, %s2751_s22  ;;  %1488 = vst.msk [vmem:[#allocation3 + $0x40] sm:$0xff] %vm1479_vm8, %v1400_v7  ;;  %v1730_v7 = vld [vmem:[#allocation2 + $0x15a] sm:$0xff] }
 0x194   : > { %1038 = vrot.lane.b32.xlu0 %v1531_v48, %s2751_s22 }
 0x195   : > { %v1208_v35 = vpop.permute.xlu1 %1207  ;;  %v1904_v52 = vld [vmem:[#allocation3 + $0x30] sm:$0xff] }
 0x196   : > { %1295 = vst.msk [vmem:[#allocation3 + $0x48] sm:$0xff] %vm1285_vm7, %v1208_v35  ;;  %2665 = vmatprep.mubr.msk.f32.mxu0 %vm1939_vm11, %v1904_v52  ;;  %v1593_v36 = vpop.permute.xlu0 %1592  ;;  %v1905_v57 = vld [vmem:[#allocation3 + $0x38] sm:$0xff] }
 0x197   : > { %1805 = vrot.lane.b32.xlu1 %v1723_v10, %s2755_s23  ;;  %1681 = vst.msk [vmem:[#allocation3 + $0x40] sm:$0xff] %vm1672_vm9, %v1593_v36  ;;  %2666 = vmatmul.mubr.msk.f32.gmra.mxu0 %vm1939_vm11, %v1905_v57  ;;  %v1345_v52 = vld [vmem:[#allocation2 + $0x168] sm:$0xff] }
 0x198   : > { %1807 = vrot.lane.b32.xlu0 %v1724_v47, %s2755_s23 }
 0x199   : > { %v1402_v13 = vpop.permute.xlu1 %1401 }
 0x19a   : > { %1489 = vst.msk [vmem:[#allocation3 + $0x48] sm:$0xff] %vm1479_vm8, %v1402_v13  ;;  %v1595_v51 = vpop.permute.xlu0 %1594  ;;  %v1346_v13 = vld [vmem:[#allocation2 + $0x170] sm:$0xff] }
 0x19b   : > { %1229 = vrot.lane.b32.xlu1 %v1723_v10, %s2752_s25  ;;  %1682 = vst.msk [vmem:[#allocation3 + $0x48] sm:$0xff] %vm1672_vm9, %v1595_v51 }
 0x19c   : > { %1423 = vrot.lane.b32.xlu0 %v3034_v9, %s2753_s30  ;;  %v1532_v9 = vld [vmem:[#allocation2 + $0x121] sm:$0xff] }
 0x19d   : > { %v1017_v1 = vpop.permute.xlu1 %1016 }
 0x19e   : > { %1103 = vst.msk [vmem:[#allocation3 + $0x50] sm:$0xff] %vm1092_vm6, %v1017_v1  ;;  %v1019_v17 = vpop.permute.xlu0 %1018 }
 0x19f   : > { %1231 = vrot.lane.b32.xlu1 %v1724_v47, %s2752_s25  ;;  %1104 = vst.msk [vmem:[#allocation3 + $0x58] sm:$0xff] %vm1092_vm6, %v1019_v17 }
 0x1a0   : > { %1425 = vrot.lane.b32.xlu0 %v3044_v14, %s2753_s30 }
 0x1a1   : > { %v1786_v38 = vpop.permute.xlu1 %1785 }
 0x1a2   : > { %1874 = vst.msk [vmem:[#allocation3 + $0x40] sm:$0xff] %vm1865_vm10, %v1786_v38  ;;  %v1788_v4 = vpop.permute.xlu0 %1787  ;;  %v1538_v38 = vld [vmem:[#allocation2 + $0x169] sm:$0xff] }
 0x1a3   : > { %847 = vrot.lane.b32.xlu1 %v761_v30, %s2750_s21  ;;  %1875 = vst.msk [vmem:[#allocation3 + $0x48] sm:$0xff] %vm1865_vm10, %v1788_v4 }
 0x1a4   : > { %849 = vrot.lane.b32.xlu0 %v3044_v14, %s2750_s21 }
 0x1a5   : > { %v1210_v25 = vpop.permute.xlu1 %1209 }
 0x1a6   : > { %1296 = vst.msk [vmem:[#allocation3 + $0x50] sm:$0xff] %vm1285_vm7, %v1210_v25  ;;  %v1404_v46 = vpop.permute.xlu0 %1403 }
 0x1a7   : > { %1616 = vrot.lane.b32.xlu1 %v1532_v9, %s2754_s8  ;;  %1490 = vst.msk [vmem:[#allocation3 + $0x50] sm:$0xff] %vm1479_vm8, %v1404_v46 }
 0x1a8   : > { %1618 = vrot.lane.b32.xlu0 %v1533_v37, %s2754_s8 }
 0x1a9   : > { %v1212_v55 = vpop.permute.xlu1 %1211  ;;  %v1906_v16 = vld [vmem:[#allocation3 + $0x40] sm:$0xff] }
 0x1aa   : > { %1297 = vst.msk [vmem:[#allocation3 + $0x58] sm:$0xff] %vm1285_vm7, %v1212_v55  ;;  %2668 = vmatprep.mubr.msk.f32.mxu0 %vm1939_vm11, %v1906_v16  ;;  %v1597_v53 = vpop.permute.xlu0 %1596  ;;  %v1907_v14 = vld [vmem:[#allocation3 + $0x48] sm:$0xff]  ;;  %v1731_v55 = vld [vmem:[#allocation2 + $0x16a] sm:$0xff] }
 0x1ab   : > { %1040 = vrot.lane.b32.xlu1 %v1532_v9, %s2751_s22  ;;  %1683 = vst.msk [vmem:[#allocation3 + $0x50] sm:$0xff] %vm1672_vm9, %v1597_v53  ;;  %2669 = vmatmul.mubr.msk.f32.gmra.mxu0 %vm1939_vm11, %v1907_v14  ;;  %v1539_v9 = vld [vmem:[#allocation2 + $0x171] sm:$0xff] }
 0x1ac   : > { %1042 = vrot.lane.b32.xlu0 %v1533_v37, %s2751_s22  ;;  %v1732_v53 = vld [vmem:[#allocation2 + $0x172] sm:$0xff] }
 0x1ad   : > { %v1406_v39 = vpop.permute.xlu1 %1405 }
 0x1ae   : > { %1491 = vst.msk [vmem:[#allocation3 + $0x58] sm:$0xff] %vm1479_vm8, %v1406_v39  ;;  %v1599_v42 = vpop.permute.xlu0 %1598 }
 0x1af   : > { %1809 = vrot.lane.b32.xlu1 %v1725_v19, %s2755_s23  ;;  %1684 = vst.msk [vmem:[#allocation3 + $0x58] sm:$0xff] %vm1672_vm9, %v1599_v42 }
 0x1b0   : > { %1811 = vrot.lane.b32.xlu0 %v1726_v59, %s2755_s23 }
 0x1b1   : > { %v1021_v32 = vpop.permute.xlu1 %1020 }
 0x1b2   : > { %1105 = vst.msk [vmem:[#allocation3 + $0x60] sm:$0xff] %vm1092_vm6, %v1021_v32  ;;  %v1023_v41 = vpop.permute.xlu0 %1022 }
 0x1b3   : > { %1233 = vrot.lane.b32.xlu1 %v1725_v19, %s2752_s25  ;;  %1106 = vst.msk [vmem:[#allocation3 + $0x68] sm:$0xff] %vm1092_vm6, %v1023_v41  ;;  %v1348_v41 = vld [vmem:[#allocation2 + $0x188] sm:$0xff] }
 0x1b4   : > { %1427 = vrot.lane.b32.xlu0 %v1341_v3, %s2753_s30 }
 0x1b5   : > { %v1790_v27 = vpop.permute.xlu1 %1789 }
 0x1b6   : > { %1876 = vst.msk [vmem:[#allocation3 + $0x50] sm:$0xff] %vm1865_vm10, %v1790_v27  ;;  %v1792_v50 = vpop.permute.xlu0 %1791 }
 0x1b7   : > { %1235 = vrot.lane.b32.xlu1 %v1726_v59, %s2752_s25  ;;  %1877 = vst.msk [vmem:[#allocation3 + $0x58] sm:$0xff] %vm1865_vm10, %v1792_v50  ;;  %v1347_v59 = vld [vmem:[#allocation2 + $0x180] sm:$0xff] }
 0x1b8   : > { %1429 = vrot.lane.b32.xlu0 %v1342_v18, %s2753_s30 }
 0x1b9   : > { %v1214_v6 = vpop.permute.xlu1 %1213 }
 0x1ba   : > { %1298 = vst.msk [vmem:[#allocation3 + $0x60] sm:$0xff] %vm1285_vm7, %v1214_v6  ;;  %v1408_v58 = vpop.permute.xlu0 %1407  ;;  %v1540_v6 = vld [vmem:[#allocation2 + $0x181] sm:$0xff] }
 0x1bb   : > { %851 = vrot.lane.b32.xlu1 %v1341_v3, %s2750_s21  ;;  %1492 = vst.msk [vmem:[#allocation3 + $0x60] sm:$0xff] %vm1479_vm8, %v1408_v58 }
 0x1bc   : > { %853 = vrot.lane.b32.xlu0 %v1342_v18, %s2750_s21 }
 0x1bd   : > { %v1216_v49 = vpop.permute.xlu1 %1215  ;;  %v1908_v61 = vld [vmem:[#allocation3 + $0x50] sm:$0xff] }
 0x1be   : > { %1299 = vst.msk [vmem:[#allocation3 + $0x68] sm:$0xff] %vm1285_vm7, %v1216_v49  ;;  %2671 = vmatprep.mubr.msk.f32.mxu0 %vm1939_vm11, %v1908_v61  ;;  %v1601_v40 = vpop.permute.xlu0 %1600  ;;  %v1909_v43 = vld [vmem:[#allocation3 + $0x58] sm:$0xff] }
 0x1bf   : > { %1620 = vrot.lane.b32.xlu1 %v1534_v63, %s2754_s8  ;;  %1685 = vst.msk [vmem:[#allocation3 + $0x60] sm:$0xff] %vm1672_vm9, %v1601_v40  ;;  %2672 = vmatmul.mubr.msk.f32.gmra.mxu0 %vm1939_vm11, %v1909_v43  ;;  %v1733_v40 = vld [vmem:[#allocation2 + $0x182] sm:$0xff] }
 0x1c0   : > { %1622 = vrot.lane.b32.xlu0 %v1535_v20, %s2754_s8 }
 0x1c1   : > { %v1410_v45 = vpop.permute.xlu1 %1409 }
 0x1c2   : > { %1493 = vst.msk [vmem:[#allocation3 + $0x68] sm:$0xff] %vm1479_vm8, %v1410_v45  ;;  %v1603_v21 = vpop.permute.xlu0 %1602  ;;  %v1734_v45 = vld [vmem:[#allocation2 + $0x18a] sm:$0xff] }
 0x1c3   : > { %1044 = vrot.lane.b32.xlu1 %v1534_v63, %s2751_s22  ;;  %1686 = vst.msk [vmem:[#allocation3 + $0x68] sm:$0xff] %vm1672_vm9, %v1603_v21  ;;  %v1541_v63 = vld [vmem:[#allocation2 + $0x189] sm:$0xff] }
 0x1c4   : > { %1046 = vrot.lane.b32.xlu0 %v1535_v20, %s2751_s22 }
 0x1c5   : > { %v1025_v5 = vpop.permute.xlu1 %1024 }
 0x1c6   : > { %1107 = vst.msk [vmem:[#allocation3 + $0x70] sm:$0xff] %vm1092_vm6, %v1025_v5  ;;  %v1027_v23 = vpop.permute.xlu0 %1026 }
 0x1c7   : > { %1813 = vrot.lane.b32.xlu1 %v1727_v22, %s2755_s23  ;;  %1108 = vst.msk [vmem:[#allocation3 + $0x78] sm:$0xff] %vm1092_vm6, %v1027_v23 }
 0x1c8   : > { %1815 = vrot.lane.b32.xlu0 %v1728_v56, %s2755_s23 }
 0x1c9   : > { %v1794_v60 = vpop.permute.xlu1 %1793 }
 0x1ca   : > { %1878 = vst.msk [vmem:[#allocation3 + $0x60] sm:$0xff] %vm1865_vm10, %v1794_v60  ;;  %v1796_v54 = vpop.permute.xlu0 %1795 }
 0x1cb   : > { %1237 = vrot.lane.b32.xlu1 %v1727_v22, %s2752_s25  ;;  %1879 = vst.msk [vmem:[#allocation3 + $0x68] sm:$0xff] %vm1865_vm10, %v1796_v54  ;;  %v1542_v54 = vld [vmem:[#allocation2 + $0x199] sm:$0xff] }
 0x1cc   : > { %1431 = vrot.lane.b32.xlu0 %v1343_v12, %s2753_s30 }
 0x1cd   : > { %v1218_v8 = vpop.permute.xlu1 %1217 }
 0x1ce   : > { %1300 = vst.msk [vmem:[#allocation3 + $0x70] sm:$0xff] %vm1285_vm7, %v1218_v8  ;;  %v1412_v0 = vpop.permute.xlu0 %1411 }
 0x1cf   : > { %1239 = vrot.lane.b32.xlu1 %v1728_v56, %s2752_s25  ;;  %1494 = vst.msk [vmem:[#allocation3 + $0x70] sm:$0xff] %vm1479_vm8, %v1412_v0  ;;  %v1349_v56 = vld [vmem:[#allocation2 + $0x198] sm:$0xff] }
 0x1d0   : > { %1433 = vrot.lane.b32.xlu0 %v1344_v24, %s2753_s30 }
 0x1d1   : > { %v1220_v28 = vpop.permute.xlu1 %1219  ;;  %v1910_v29 = vld [vmem:[#allocation3 + $0x60] sm:$0xff] }
 0x1d2   : > { %1301 = vst.msk [vmem:[#allocation3 + $0x78] sm:$0xff] %vm1285_vm7, %v1220_v28  ;;  %2674 = vmatprep.mubr.msk.f32.mxu0 %vm1939_vm11, %v1910_v29  ;;  %v1605_v33 = vpop.permute.xlu0 %1604  ;;  %v1911_v26 = vld [vmem:[#allocation3 + $0x68] sm:$0xff] }
 0x1d3   : > { %855 = vrot.lane.b32.xlu1 %v1343_v12, %s2750_s21  ;;  %1687 = vst.msk [vmem:[#allocation3 + $0x70] sm:$0xff] %vm1672_vm9, %v1605_v33  ;;  %2675 = vmatmul.mubr.msk.f32.gmra.mxu0 %vm1939_vm11, %v1911_v26  ;;  %v1735_v28 = vld [vmem:[#allocation2 + $0x19a] sm:$0xff] }
 0x1d4   : > { %857 = vrot.lane.b32.xlu0 %v1344_v24, %s2750_s21  ;;  %v1350_v24 = vld [vmem:[#allocation2 + $0x1a0] sm:$0xff] }
 0x1d5   : > { %v1414_v11 = vpop.permute.xlu1 %1413  ;;  %v1543_v26 = vld [vmem:[#allocation2 + $0x1a1] sm:$0xff] }
 0x1d6   : > { %1495 = vst.msk [vmem:[#allocation3 + $0x78] sm:$0xff] %vm1479_vm8, %v1414_v11  ;;  %v1607_v62 = vpop.permute.xlu0 %1606 }
 0x1d7   : > { %1624 = vrot.lane.b32.xlu1 %v1536_v31, %s2754_s8  ;;  %1688 = vst.msk [vmem:[#allocation3 + $0x78] sm:$0xff] %vm1672_vm9, %v1607_v62 }
 0x1d8   : > { %1626 = vrot.lane.b32.xlu0 %v1537_v34, %s2754_s8 }
 0x1d9   : > { %v1029_v15 = vpop.permute.xlu1 %1028 }
 0x1da   : > { %1109 = vst.msk [vmem:[#allocation3 + $0x80] sm:$0xff] %vm1092_vm6, %v1029_v15  ;;  %v1031_v48 = vpop.permute.xlu0 %1030 }
 0x1db   : > { %1048 = vrot.lane.b32.xlu1 %v1536_v31, %s2751_s22  ;;  %1110 = vst.msk [vmem:[#allocation3 + $0x88] sm:$0xff] %vm1092_vm6, %v1031_v48 }
 0x1dc   : > { %1050 = vrot.lane.b32.xlu0 %v1537_v34, %s2751_s22 }
 0x1dd   : > { %v1798_v44 = vpop.permute.xlu1 %1797 }
 0x1de   : > { %1880 = vst.msk [vmem:[#allocation3 + $0x70] sm:$0xff] %vm1865_vm10, %v1798_v44  ;;  %v1800_v10 = vpop.permute.xlu0 %1799 }
 0x1df   : > { %1817 = vrot.lane.b32.xlu1 %v1729_v2, %s2755_s23  ;;  %1881 = vst.msk [vmem:[#allocation3 + $0x78] sm:$0xff] %vm1865_vm10, %v1800_v10  ;;  %v1736_v10 = vld [vmem:[#allocation2 + $0x1a2] sm:$0xff] }
 0x1e0   : > { %1819 = vrot.lane.b32.xlu0 %v1730_v7, %s2755_s23 }
 0x1e1   : > { %v1222_v35 = vpop.permute.xlu1 %1221 }
 0x1e2   : > { %1302 = vst.msk [vmem:[#allocation3 + $0x80] sm:$0xff] %vm1285_vm7, %v1222_v35  ;;  %v1416_v47 = vpop.permute.xlu0 %1415 }
 0x1e3   : > { %1241 = vrot.lane.b32.xlu1 %v1729_v2, %s2752_s25  ;;  %1496 = vst.msk [vmem:[#allocation3 + $0x80] sm:$0xff] %vm1479_vm8, %v1416_v47 }
 0x1e4   : > { %1435 = vrot.lane.b32.xlu0 %v1345_v52, %s2753_s30 }
 0x1e5   : > { %v1224_v36 = vpop.permute.xlu1 %1223  ;;  %v1912_v57 = vld [vmem:[#allocation3 + $0x70] sm:$0xff] }
 0x1e6   : > { %1303 = vst.msk [vmem:[#allocation3 + $0x88] sm:$0xff] %vm1285_vm7, %v1224_v36  ;;  %2677 = vmatprep.mubr.msk.f32.mxu0 %vm1939_vm11, %v1912_v57  ;;  %v1609_v51 = vpop.permute.xlu0 %1608  ;;  %v1913_v1 = vld [vmem:[#allocation3 + $0x78] sm:$0xff] }
 0x1e7   : > { %1243 = vrot.lane.b32.xlu1 %v1730_v7, %s2752_s25  ;;  %1689 = vst.msk [vmem:[#allocation3 + $0x80] sm:$0xff] %vm1672_vm9, %v1609_v51  ;;  %2678 = vmatmul.mubr.msk.f32.gmra.mxu0 %vm1939_vm11, %v1913_v1 }
 0x1e8   : > { %1437 = vrot.lane.b32.xlu0 %v1346_v13, %s2753_s30 }
 0x1e9   : > { %v1418_v17 = vpop.permute.xlu1 %1417 }
 0x1ea   : > { %1497 = vst.msk [vmem:[#allocation3 + $0x88] sm:$0xff] %vm1479_vm8, %v1418_v17  ;;  %v1611_v30 = vpop.permute.xlu0 %1610 }
 0x1eb   : > { %859 = vrot.lane.b32.xlu1 %v1345_v52, %s2750_s21  ;;  %1690 = vst.msk [vmem:[#allocation3 + $0x88] sm:$0xff] %vm1672_vm9, %v1611_v30 }
 0x1ec   : > { %861 = vrot.lane.b32.xlu0 %v1346_v13, %s2750_s21 }
 0x1ed   : > { %v1033_v4 = vpop.permute.xlu1 %1032 }
 0x1ee   : > { %1111 = vst.msk [vmem:[#allocation3 + $0x90] sm:$0xff] %vm1092_vm6, %v1033_v4  ;;  %v1035_v25 = vpop.permute.xlu0 %1034 }
 0x1ef   : > { %1628 = vrot.lane.b32.xlu1 %v1538_v38, %s2754_s8  ;;  %1112 = vst.msk [vmem:[#allocation3 + $0x98] sm:$0xff] %vm1092_vm6, %v1035_v25 }
 0x1f0   : > { %1630 = vrot.lane.b32.xlu0 %v1539_v9, %s2754_s8 }
 0x1f1   : > { %v1802_v37 = vpop.permute.xlu1 %1801 }
 0x1f2   : > { %1882 = vst.msk [vmem:[#allocation3 + $0x80] sm:$0xff] %vm1865_vm10, %v1802_v37  ;;  %v1804_v46 = vpop.permute.xlu0 %1803 }
 0x1f3   : > { %1052 = vrot.lane.b32.xlu1 %v1538_v38, %s2751_s22  ;;  %1883 = vst.msk [vmem:[#allocation3 + $0x88] sm:$0xff] %vm1865_vm10, %v1804_v46 }
 0x1f4   : > { %1054 = vrot.lane.b32.xlu0 %v1539_v9, %s2751_s22 }
 0x1f5   : > { %v1226_v16 = vpop.permute.xlu1 %1225 }
 0x1f6   : > { %1304 = vst.msk [vmem:[#allocation3 + $0x90] sm:$0xff] %vm1285_vm7, %v1226_v16  ;;  %v1420_v14 = vpop.permute.xlu0 %1419 }
 0x1f7   : > { %1821 = vrot.lane.b32.xlu1 %v1731_v55, %s2755_s23  ;;  %1498 = vst.msk [vmem:[#allocation3 + $0x90] sm:$0xff] %vm1479_vm8, %v1420_v14 }
 0x1f8   : > { %1823 = vrot.lane.b32.xlu0 %v1732_v53, %s2755_s23 }
 0x1f9   : > { %v1228_v19 = vpop.permute.xlu1 %1227  ;;  %v1914_v39 = vld [vmem:[#allocation3 + $0x80] sm:$0xff] }
 0x1fa   : > { %1305 = vst.msk [vmem:[#allocation3 + $0x98] sm:$0xff] %vm1285_vm7, %v1228_v19  ;;  %2680 = vmatprep.mubr.msk.f32.mxu1 %vm1939_vm11, %v1914_v39  ;;  %v1422_v42 = vpop.permute.xlu0 %1421  ;;  %v1915_v32 = vld [vmem:[#allocation3 + $0x88] sm:$0xff] }
 0x1fb   : > { %1245 = vrot.lane.b32.xlu1 %v1731_v55, %s2752_s25  ;;  %1499 = vst.msk [vmem:[#allocation3 + $0x98] sm:$0xff] %vm1479_vm8, %v1422_v42  ;;  %2681 = vmatmul.mubr.msk.f32.vlgmr.msra.gmra.mxu1 %vm1939_vm11, %v1915_v32 }
 0x1fc   : > { %1439 = vrot.lane.b32.xlu0 %v1347_v59, %s2753_s30 }
 0x1fd   : > { %v844_v3 = vpop.permute.xlu1 %843 }
 0x1fe   : > { %920 = vst.msk [vmem:[#allocation3 + $0xa0] sm:$0xff] %vm899_vm5, %v844_v3  ;;  %v846_v27 = vpop.permute.xlu0 %845 }
 0x1ff   : > { %1247 = vrot.lane.b32.xlu1 %v1732_v53, %s2752_s25  ;;  %921 = vst.msk [vmem:[#allocation3 + $0xa8] sm:$0xff] %vm899_vm5, %v846_v27 }
 0x200   : > { %1441 = vrot.lane.b32.xlu0 %v1348_v41, %s2753_s30 }
 0x201   : > { %v1613_v18 = vpop.permute.xlu1 %1612 }
 0x202   : > { %1691 = vst.msk [vmem:[#allocation3 + $0x90] sm:$0xff] %vm1672_vm9, %v1613_v18  ;;  %v1615_v50 = vpop.permute.xlu0 %1614 }
 0x203   : > { %863 = vrot.lane.b32.xlu1 %v1347_v59, %s2750_s21  ;;  %1692 = vst.msk [vmem:[#allocation3 + $0x98] sm:$0xff] %vm1672_vm9, %v1615_v50 }
 0x204   : > { %865 = vrot.lane.b32.xlu0 %v1348_v41, %s2750_s21 }
 0x205   : > { %v1037_v58 = vpop.permute.xlu1 %1036 }
 0x206   : > { %1113 = vst.msk [vmem:[#allocation3 + $0xa0] sm:$0xff] %vm1092_vm6, %v1037_v58  ;;  %v1039_v49 = vpop.permute.xlu0 %1038 }
 0x207   : > { %1632 = vrot.lane.b32.xlu1 %v1540_v6, %s2754_s8  ;;  %1114 = vst.msk [vmem:[#allocation3 + $0xa8] sm:$0xff] %vm1092_vm6, %v1039_v49 }
 0x208   : > { %1634 = vrot.lane.b32.xlu0 %v1541_v63, %s2754_s8 }
 0x209   : > { %v1806_v61 = vpop.permute.xlu1 %1805 }
 0x20a   : > { %1884 = vst.msk [vmem:[#allocation3 + $0x90] sm:$0xff] %vm1865_vm10, %v1806_v61  ;;  %v1808_v20 = vpop.permute.xlu0 %1807 }
 0x20b   : > { %1056 = vrot.lane.b32.xlu1 %v1540_v6, %s2751_s22  ;;  %1885 = vst.msk [vmem:[#allocation3 + $0x98] sm:$0xff] %vm1865_vm10, %v1808_v20 }
 0x20c   : > { %1058 = vrot.lane.b32.xlu0 %v1541_v63, %s2751_s22  ;;  %s3676_s22 = scalar_lea.vmem %s3894_s2, %s2595_s15  ;;  %s2560_s15 = sshll.u32 %s3898_s13, 1 }
 0x20d   : > { %v1230_v43 = vpop.permute.xlu1 %1229  ;;  %s181_s26 = scalar_lea.vmem %s3895_s3, %s2560_s15 }
 0x20e   : > { %1306 = vst.msk [vmem:[#allocation3 + $0xa0] sm:$0xff] %vm1285_vm7, %v1230_v43  ;;  %v1424_v21 = vpop.permute.xlu0 %1423 }
 0x20f   : > { %1825 = vrot.lane.b32.xlu1 %v1733_v40, %s2755_s23  ;;  %1500 = vst.msk [vmem:[#allocation3 + $0xa0] sm:$0xff] %vm1479_vm8, %v1424_v21 }
 0x210   : > { %1827 = vrot.lane.b32.xlu0 %v1734_v45, %s2755_s23 }
 0x211   : > { %v1232_v22 = vpop.permute.xlu1 %1231  ;;  %v1916_v5 = vld [vmem:[#allocation3 + $0x90] sm:$0xff] }
 0x212   : > { %1307 = vst.msk [vmem:[#allocation3 + $0xa8] sm:$0xff] %vm1285_vm7, %v1232_v22  ;;  %2683 = vmatprep.mubr.msk.f32.mxu1 %vm1939_vm11, %v1916_v5  ;;  %v1426_v23 = vpop.permute.xlu0 %1425  ;;  %v1917_v60 = vld [vmem:[#allocation3 + $0x98] sm:$0xff] }
 0x213   : > { %1249 = vrot.lane.b32.xlu1 %v1733_v40, %s2752_s25  ;;  %1501 = vst.msk [vmem:[#allocation3 + $0xa8] sm:$0xff] %vm1479_vm8, %v1426_v23  ;;  %2684 = vmatmul.mubr.msk.f32.gmra.mxu1 %vm1939_vm11, %v1917_v60 }
 0x214   : > { %1443 = vrot.lane.b32.xlu0 %v1349_v56, %s2753_s30 }
 0x215   : > { %v848_v12 = vpop.permute.xlu1 %847 }
 0x216   : > { %922 = vst.msk [vmem:[#allocation3 + $0xb0] sm:$0xff] %vm899_vm5, %v848_v12  ;;  %v850_v8 = vpop.permute.xlu0 %849 }
 0x217   : > { %1251 = vrot.lane.b32.xlu1 %v1734_v45, %s2752_s25  ;;  %923 = vst.msk [vmem:[#allocation3 + $0xb8] sm:$0xff] %vm899_vm5, %v850_v8 }
 0x218   : > { %1636 = vrot.lane.b32.xlu0 %v1542_v54, %s2754_s8 }
 0x219   : > { %v1617_v0 = vpop.permute.xlu1 %1616 }
 0x21a   : > { %1693 = vst.msk [vmem:[#allocation3 + $0xa0] sm:$0xff] %vm1672_vm9, %v1617_v0  ;;  %v1619_v29 = vpop.permute.xlu0 %1618 }
 0x21b   : > { %1445 = vrot.lane.b32.xlu1 %v1350_v24, %s2753_s30  ;;  %1694 = vst.msk [vmem:[#allocation3 + $0xa8] sm:$0xff] %vm1672_vm9, %v1619_v29  ;;  %v2658_v33 = vpop.f32.mrf.mxu0 }
 0x21c   : > { %v2262_v11 = vsel %vm214_vm0, %v2658_v33, 0.0  ;;  %v2332_v34 = vmul.f32 %v2658_v33, %v2658_v33  ;;  %2434 = vst.msk [vmem:[%s3676_s22 + $0x8] sm:$0xff] %vm214_vm0, %v2658_v33  ;;  %1829 = vrot.lane.b32.xlu0 %v1735_v28, %s2755_s23 }
 0x21d   : > { %v1041_v31 = vpop.permute.xlu1 %1040  ;;  %v2102_v62 = vpop.f32.mrf.mxu0 }
 0x21e   : > { %1115 = vst.msk [vmem:[#allocation3 + $0xb0] sm:$0xff] %vm1092_vm6, %v1041_v31  ;;  %v1043_v15 = vpop.permute.xlu0 %1042  ;;  %v2364_v48 = vsel %vm214_vm0, %v2332_v34, 0.0  ;;  %v2261_v2 = vsel %vm214_vm0, %v2102_v62, 0.0  ;;  %v2331_v44 = vmul.f32 %v2102_v62, %v2102_v62 }
 0x21f   : > { %1638 = vrot.lane.b32.xlu1 %v1543_v26, %s2754_s8  ;;  %2433 = vst.msk [vmem:[%s3676_s22] sm:$0xff] %vm214_vm0, %v2102_v62  ;;  %v2263_v7 = vadd.f32 %v2262_v11, %v2261_v2 }
 0x220   : > { %1116 = vst.msk [vmem:[#allocation3 + $0xb8] sm:$0xff] %vm1092_vm6, %v1043_v15  ;;  %v2363_v35 = vsel %vm214_vm0, %v2331_v44, 0.0 }
 0x221   : > { %v1810_v52 = vpop.permute.xlu1 %1809  ;;  %v2365_v47 = vadd.f32 %v2364_v48, %v2363_v35 }
 0x222   : > { %1886 = vst.msk [vmem:[#allocation3 + $0xa0] sm:$0xff] %vm1865_vm10, %v1810_v52  ;;  %v1812_v36 = vpop.permute.xlu0 %1811 }
 0x223   : > { %1831 = vrot.lane.b32.xlu1 %v1736_v10, %s2755_s23  ;;  %1887 = vst.msk [vmem:[#allocation3 + $0xa8] sm:$0xff] %vm1865_vm10, %v1812_v36 }
 0x225   : > { %v1234_v57 = vpop.permute.xlu1 %1233 }
 0x226   : > { %1308 = vst.msk [vmem:[#allocation3 + $0xb0] sm:$0xff] %vm1285_vm7, %v1234_v57  ;;  %v1428_v13 = vpop.permute.xlu0 %1427 }
 0x227   : > { %1502 = vst.msk [vmem:[#allocation3 + $0xb0] sm:$0xff] %vm1479_vm8, %v1428_v13 }
 0x229   : > { %v1236_v51 = vpop.permute.xlu1 %1235  ;;  %v1918_v1 = vld [vmem:[#allocation3 + $0xa0] sm:$0xff] }
 0x22a   : > { %1309 = vst.msk [vmem:[#allocation3 + $0xb8] sm:$0xff] %vm1285_vm7, %v1236_v51  ;;  %2686 = vmatprep.mubr.msk.f32.mxu1 %vm1939_vm11, %v1918_v1  ;;  %v1430_v17 = vpop.permute.xlu0 %1429  ;;  %v1919_v30 = vld [vmem:[#allocation3 + $0xa8] sm:$0xff] }
 0x22b   : > { %1503 = vst.msk [vmem:[#allocation3 + $0xb8] sm:$0xff] %vm1479_vm8, %v1430_v17  ;;  %2687 = vmatmul.mubr.msk.f32.gmra.mxu1 %vm1939_vm11, %v1919_v30 }
 0x22d   : > { %v852_v38 = vpop.permute.xlu1 %851 }
 0x22e   : > { %924 = vst.msk [vmem:[#allocation3 + $0xc0] sm:$0xff] %vm899_vm5, %v852_v38  ;;  %v854_v4 = vpop.permute.xlu0 %853 }
 0x22f   : > { %925 = vst.msk [vmem:[#allocation3 + $0xc8] sm:$0xff] %vm899_vm5, %v854_v4  ;;  %v2661_v9 = vpop.f32.mrf.mxu0 }
 0x230   : > { %v2334_v25 = vmul.f32 %v2661_v9, %v2661_v9  ;;  %2436 = vst.msk [vmem:[%s3676_s22 + $0x18] sm:$0xff] %vm214_vm0, %v2661_v9  ;;  %v2266_v55 = vsel %vm214_vm0, %v2661_v9, 0.0 }
 0x231   : > { %v1621_v37 = vpop.permute.xlu1 %1620  ;;  %v2112_v46 = vpop.f32.mrf.mxu0 }
 0x232   : > { %1695 = vst.msk [vmem:[#allocation3 + $0xb0] sm:$0xff] %vm1672_vm9, %v1621_v37  ;;  %v2264_v16 = vsel %vm214_vm0, %v2112_v46, 0.0  ;;  %v2333_v53 = vmul.f32 %v2112_v46, %v2112_v46  ;;  %v1623_v14 = vpop.permute.xlu0 %1622  ;;  %v2368_v39 = vsel %vm214_vm0, %v2334_v25, 0.0 }
 0x233   : > { %2435 = vst.msk [vmem:[%s3676_s22 + $0x10] sm:$0xff] %vm214_vm0, %v2112_v46  ;;  %v2265_v19 = vadd.f32 %v2264_v16, %v2263_v7 }
 0x234   : > { %1696 = vst.msk [vmem:[#allocation3 + $0xb8] sm:$0xff] %vm1672_vm9, %v1623_v14  ;;  %v2366_v59 = vsel %vm214_vm0, %v2333_v53, 0.0 }
 0x235   : > { %v1045_v42 = vpop.permute.xlu1 %1044  ;;  %v2367_v32 = vadd.f32 %v2366_v59, %v2365_v47  ;;  %v2267_v3 = vadd.f32 %v2266_v55, %v2265_v19 }
 0x236   : > { %1117 = vst.msk [vmem:[#allocation3 + $0xc0] sm:$0xff] %vm1092_vm6, %v1045_v42  ;;  %v1047_v41 = vpop.permute.xlu0 %1046 }
 0x237   : > { %1118 = vst.msk [vmem:[#allocation3 + $0xc8] sm:$0xff] %vm1092_vm6, %v1047_v41  ;;  %v2369_v27 = vadd.f32 %v2368_v39, %v2367_v32 }
 0x239   : > { %v1814_v18 = vpop.permute.xlu1 %1813 }
 0x23a   : > { %1888 = vst.msk [vmem:[#allocation3 + $0xb0] sm:$0xff] %vm1865_vm10, %v1814_v18  ;;  %v1816_v50 = vpop.permute.xlu0 %1815 }
 0x23b   : > { %1889 = vst.msk [vmem:[#allocation3 + $0xb8] sm:$0xff] %vm1865_vm10, %v1816_v50 }
 0x23d   : > { %v1238_v6 = vpop.permute.xlu1 %1237 }
 0x23e   : > { %1310 = vst.msk [vmem:[#allocation3 + $0xc0] sm:$0xff] %vm1285_vm7, %v1238_v6  ;;  %v1432_v58 = vpop.permute.xlu0 %1431 }
 0x23f   : > { %1504 = vst.msk [vmem:[#allocation3 + $0xc0] sm:$0xff] %vm1479_vm8, %v1432_v58 }
 0x241   : > { %v1240_v63 = vpop.permute.xlu1 %1239  ;;  %v1920_v49 = vld [vmem:[#allocation3 + $0xb0] sm:$0xff] }
 0x242   : > { %1311 = vst.msk [vmem:[#allocation3 + $0xc8] sm:$0xff] %vm1285_vm7, %v1240_v63  ;;  %2689 = vmatprep.mubr.msk.f32.mxu1 %vm1939_vm11, %v1920_v49  ;;  %v1434_v61 = vpop.permute.xlu0 %1433  ;;  %v1921_v20 = vld [vmem:[#allocation3 + $0xb8] sm:$0xff] }
 0x243   : > { %1505 = vst.msk [vmem:[#allocation3 + $0xc8] sm:$0xff] %vm1479_vm8, %v1434_v61  ;;  %v2664_v40 = vpop.f32.mrf.mxu0  ;;  %2690 = vmatmul.mubr.msk.f32.gmra.mxu1 %vm1939_vm11, %v1921_v20 }
 0x244   : > { %v2336_v43 = vmul.f32 %v2664_v40, %v2664_v40  ;;  %2438 = vst.msk [vmem:[%s3676_s22 + $0x28] sm:$0xff] %vm214_vm0, %v2664_v40  ;;  %v2270_v22 = vsel %vm214_vm0, %v2664_v40, 0.0 }
 0x245   : > { %v856_v45 = vpop.permute.xlu1 %855  ;;  %v2122_v21 = vpop.f32.mrf.mxu0 }
 0x246   : > { %926 = vst.msk [vmem:[#allocation3 + $0xd0] sm:$0xff] %vm899_vm5, %v856_v45  ;;  %v2268_v5 = vsel %vm214_vm0, %v2122_v21, 0.0  ;;  %v2335_v56 = vmul.f32 %v2122_v21, %v2122_v21  ;;  %v858_v23 = vpop.permute.xlu0 %857  ;;  %v2372_v12 = vsel %vm214_vm0, %v2336_v43, 0.0 }
 0x247   : > { %2437 = vst.msk [vmem:[%s3676_s22 + $0x20] sm:$0xff] %vm214_vm0, %v2122_v21  ;;  %v2269_v60 = vadd.f32 %v2268_v5, %v2267_v3 }
 0x248   : > { %927 = vst.msk [vmem:[#allocation3 + $0xd8] sm:$0xff] %vm899_vm5, %v858_v23  ;;  %v2370_v54 = vsel %vm214_vm0, %v2335_v56, 0.0 }
 0x249   : > { %v1625_v8 = vpop.permute.xlu1 %1624  ;;  %v2371_v24 = vadd.f32 %v2370_v54, %v2369_v27  ;;  %v2271_v0 = vadd.f32 %v2270_v22, %v2269_v60 }
 0x24a   : > { %1697 = vst.msk [vmem:[#allocation3 + $0xc0] sm:$0xff] %vm1672_vm9, %v1625_v8  ;;  %v1627_v28 = vpop.permute.xlu0 %1626 }
 0x24b   : > { %1698 = vst.msk [vmem:[#allocation3 + $0xc8] sm:$0xff] %vm1672_vm9, %v1627_v28  ;;  %v2373_v29 = vadd.f32 %v2372_v12, %v2371_v24 }
 0x24d   : > { %v1049_v33 = vpop.permute.xlu1 %1048 }
 0x24e   : > { %1119 = vst.msk [vmem:[#allocation3 + $0xd0] sm:$0xff] %vm1092_vm6, %v1049_v33  ;;  %v1051_v26 = vpop.permute.xlu0 %1050 }
 0x24f   : > { %1120 = vst.msk [vmem:[#allocation3 + $0xd8] sm:$0xff] %vm1092_vm6, %v1051_v26 }
 0x251   : > { %v1818_v31 = vpop.permute.xlu1 %1817 }
 0x252   : > { %1890 = vst.msk [vmem:[#allocation3 + $0xc0] sm:$0xff] %vm1865_vm10, %v1818_v31  ;;  %v1820_v11 = vpop.permute.xlu0 %1819 }
 0x253   : > { %1891 = vst.msk [vmem:[#allocation3 + $0xc8] sm:$0xff] %vm1865_vm10, %v1820_v11 }
 0x255   : > { %v1242_v34 = vpop.permute.xlu1 %1241 }
 0x256   : > { %1312 = vst.msk [vmem:[#allocation3 + $0xd0] sm:$0xff] %vm1285_vm7, %v1242_v34  ;;  %v1436_v62 = vpop.permute.xlu0 %1435 }
 0x257   : > { %1506 = vst.msk [vmem:[#allocation3 + $0xd0] sm:$0xff] %vm1479_vm8, %v1436_v62  ;;  %v2667_v15 = vpop.f32.mrf.mxu0 }
 0x258   : > { %v2338_v48 = vmul.f32 %v2667_v15, %v2667_v15  ;;  %2440 = vst.msk [vmem:[%s3676_s22 + $0x38] sm:$0xff] %vm214_vm0, %v2667_v15  ;;  %v2274_v10 = vsel %vm214_vm0, %v2667_v15, 0.0 }
 0x259   : > { %v1244_v2 = vpop.permute.xlu1 %1243  ;;  %v1922_v44 = vld [vmem:[#allocation3 + $0xc0] sm:$0xff]  ;;  %v2132_v7 = vpop.f32.mrf.mxu0 }
 0x25a   : > { %1313 = vst.msk [vmem:[#allocation3 + $0xd8] sm:$0xff] %vm1285_vm7, %v1244_v2  ;;  %2692 = vmatprep.mubr.msk.f32.mxu1 %vm1939_vm11, %v1922_v44  ;;  %v2272_v35 = vsel %vm214_vm0, %v2132_v7, 0.0  ;;  %v2337_v52 = vmul.f32 %v2132_v7, %v2132_v7  ;;  %v1438_v47 = vpop.permute.xlu0 %1437  ;;  %v1923_v36 = vld [vmem:[#allocation3 + $0xc8] sm:$0xff]  ;;  %v2376_v13 = vsel %vm214_vm0, %v2338_v48, 0.0 }
 0x25b   : > { %2439 = vst.msk [vmem:[%s3676_s22 + $0x30] sm:$0xff] %vm214_vm0, %v2132_v7  ;;  %v2273_v57 = vadd.f32 %v2272_v35, %v2271_v0  ;;  %2693 = vmatmul.mubr.msk.f32.gmra.mxu1 %vm1939_vm11, %v1923_v36 }
 0x25c   : > { %1507 = vst.msk [vmem:[#allocation3 + $0xd8] sm:$0xff] %vm1479_vm8, %v1438_v47  ;;  %v2374_v51 = vsel %vm214_vm0, %v2337_v52, 0.0 }
 0x25d   : > { %v860_v1 = vpop.permute.xlu1 %859  ;;  %v2375_v17 = vadd.f32 %v2374_v51, %v2373_v29  ;;  %v2275_v30 = vadd.f32 %v2274_v10, %v2273_v57 }
 0x25e   : > { %928 = vst.msk [vmem:[#allocation3 + $0xe0] sm:$0xff] %vm899_vm5, %v860_v1  ;;  %v862_v38 = vpop.permute.xlu0 %861 }
 0x25f   : > { %929 = vst.msk [vmem:[#allocation3 + $0xe8] sm:$0xff] %vm899_vm5, %v862_v38  ;;  %v2377_v4 = vadd.f32 %v2376_v13, %v2375_v17 }
 0x261   : > { %v1629_v9 = vpop.permute.xlu1 %1628 }
 0x262   : > { %1699 = vst.msk [vmem:[#allocation3 + $0xd0] sm:$0xff] %vm1672_vm9, %v1629_v9  ;;  %v1631_v25 = vpop.permute.xlu0 %1630 }
 0x263   : > { %1700 = vst.msk [vmem:[#allocation3 + $0xd8] sm:$0xff] %vm1672_vm9, %v1631_v25 }
 0x265   : > { %v1053_v37 = vpop.permute.xlu1 %1052 }
 0x266   : > { %1121 = vst.msk [vmem:[#allocation3 + $0xe0] sm:$0xff] %vm1092_vm6, %v1053_v37  ;;  %v1055_v46 = vpop.permute.xlu0 %1054 }
 0x267   : > { %1122 = vst.msk [vmem:[#allocation3 + $0xe8] sm:$0xff] %vm1092_vm6, %v1055_v46 }
 0x269   : > { %v1822_v55 = vpop.permute.xlu1 %1821 }
 0x26a   : > { %1892 = vst.msk [vmem:[#allocation3 + $0xd0] sm:$0xff] %vm1865_vm10, %v1822_v55  ;;  %v1824_v16 = vpop.permute.xlu0 %1823 }
 0x26b   : > { %1893 = vst.msk [vmem:[#allocation3 + $0xd8] sm:$0xff] %vm1865_vm10, %v1824_v16  ;;  %v2670_v53 = vpop.f32.mrf.mxu0 }
 0x26c   : > { %v2340_v14 = vmul.f32 %v2670_v53, %v2670_v53  ;;  %2442 = vst.msk [vmem:[%s3676_s22 + $0x48] sm:$0xff] %vm214_vm0, %v2670_v53  ;;  %v2278_v59 = vsel %vm214_vm0, %v2670_v53, 0.0 }
 0x26d   : > { %v1246_v19 = vpop.permute.xlu1 %1245  ;;  %v2142_v39 = vpop.f32.mrf.mxu0 }
 0x26e   : > { %1314 = vst.msk [vmem:[#allocation3 + $0xe0] sm:$0xff] %vm1285_vm7, %v1246_v19  ;;  %v2276_v42 = vsel %vm214_vm0, %v2142_v39, 0.0  ;;  %v2339_v32 = vmul.f32 %v2142_v39, %v2142_v39  ;;  %v1440_v3 = vpop.permute.xlu0 %1439  ;;  %v2380_v27 = vsel %vm214_vm0, %v2340_v14, 0.0 }
 0x26f   : > { %2441 = vst.msk [vmem:[%s3676_s22 + $0x40] sm:$0xff] %vm214_vm0, %v2142_v39  ;;  %v2277_v41 = vadd.f32 %v2276_v42, %v2275_v30 }
 0x270   : > { %1508 = vst.msk [vmem:[#allocation3 + $0xe0] sm:$0xff] %vm1479_vm8, %v1440_v3  ;;  %v2378_v18 = vsel %vm214_vm0, %v2339_v32, 0.0 }
 0x271   : > { %v1248_v50 = vpop.permute.xlu1 %1247  ;;  %v1924_v6 = vld [vmem:[#allocation3 + $0xd0] sm:$0xff]  ;;  %v2379_v58 = vadd.f32 %v2378_v18, %v2377_v4  ;;  %v2279_v63 = vadd.f32 %v2278_v59, %v2277_v41 }
 0x272   : > { %1315 = vst.msk [vmem:[#allocation3 + $0xe8] sm:$0xff] %vm1285_vm7, %v1248_v50  ;;  %2695 = vmatprep.mubr.msk.f32.mxu1 %vm1939_vm11, %v1924_v6  ;;  %v1442_v49 = vpop.permute.xlu0 %1441  ;;  %v1925_v61 = vld [vmem:[#allocation3 + $0xd8] sm:$0xff] }
 0x273   : > { %1509 = vst.msk [vmem:[#allocation3 + $0xe8] sm:$0xff] %vm1479_vm8, %v1442_v49  ;;  %2696 = vmatmul.mubr.msk.f32.gmra.mxu1 %vm1939_vm11, %v1925_v61  ;;  %v2381_v20 = vadd.f32 %v2380_v27, %v2379_v58 }
 0x275   : > { %v864_v40 = vpop.permute.xlu1 %863 }
 0x276   : > { %930 = vst.msk [vmem:[#allocation3 + $0xf0] sm:$0xff] %vm899_vm5, %v864_v40  ;;  %v866_v43 = vpop.permute.xlu0 %865 }
 0x277   : > { %931 = vst.msk [vmem:[#allocation3 + $0xf8] sm:$0xff] %vm899_vm5, %v866_v43 }
 0x279   : > { %v1633_v45 = vpop.permute.xlu1 %1632 }
 0x27a   : > { %1701 = vst.msk [vmem:[#allocation3 + $0xe0] sm:$0xff] %vm1672_vm9, %v1633_v45  ;;  %v1635_v21 = vpop.permute.xlu0 %1634 }
 0x27b   : > { %1702 = vst.msk [vmem:[#allocation3 + $0xe8] sm:$0xff] %vm1672_vm9, %v1635_v21 }
 0x27d   : > { %v1057_v22 = vpop.permute.xlu1 %1056 }
 0x27e   : > { %1123 = vst.msk [vmem:[#allocation3 + $0xf0] sm:$0xff] %vm1092_vm6, %v1057_v22  ;;  %v1059_v5 = vpop.permute.xlu0 %1058 }
 0x27f   : > { %1124 = vst.msk [vmem:[#allocation3 + $0xf8] sm:$0xff] %vm1092_vm6, %v1059_v5  ;;  %v2673_v56 = vpop.f32.mrf.mxu0 }
 0x280   : > { %v2342_v23 = vmul.f32 %v2673_v56, %v2673_v56  ;;  %2444 = vst.msk [vmem:[%s3676_s22 + $0x58] sm:$0xff] %vm214_vm0, %v2673_v56  ;;  %v2282_v54 = vsel %vm214_vm0, %v2673_v56, 0.0 }
 0x281   : > { %v1826_v60 = vpop.permute.xlu1 %1825  ;;  %v2152_v12 = vpop.f32.mrf.mxu0 }
 0x282   : > { %1894 = vst.msk [vmem:[#allocation3 + $0xe0] sm:$0xff] %vm1865_vm10, %v1826_v60  ;;  %v2280_v8 = vsel %vm214_vm0, %v2152_v12, 0.0  ;;  %v2341_v24 = vmul.f32 %v2152_v12, %v2152_v12  ;;  %v1828_v0 = vpop.permute.xlu0 %1827  ;;  %v2384_v29 = vsel %vm214_vm0, %v2342_v23, 0.0 }
 0x283   : > { %2443 = vst.msk [vmem:[%s3676_s22 + $0x50] sm:$0xff] %vm214_vm0, %v2152_v12  ;;  %v2281_v28 = vadd.f32 %v2280_v8, %v2279_v63 }
 0x284   : > { %1895 = vst.msk [vmem:[#allocation3 + $0xe8] sm:$0xff] %vm1865_vm10, %v1828_v0  ;;  %v2382_v33 = vsel %vm214_vm0, %v2341_v24, 0.0 }
 0x285   : > { %v1250_v26 = vpop.permute.xlu1 %1249  ;;  %v2383_v31 = vadd.f32 %v2382_v33, %v2381_v20  ;;  %v2283_v11 = vadd.f32 %v2282_v54, %v2281_v28 }
 0x286   : > { %1316 = vst.msk [vmem:[#allocation3 + $0xf0] sm:$0xff] %vm1285_vm7, %v1250_v26  ;;  %v1444_v34 = vpop.permute.xlu0 %1443 }
 0x287   : > { %1510 = vst.msk [vmem:[#allocation3 + $0xf0] sm:$0xff] %vm1479_vm8, %v1444_v34  ;;  %v2385_v62 = vadd.f32 %v2384_v29, %v2383_v31 }
 0x289   : > { %v1252_v15 = vpop.permute.xlu1 %1251  ;;  %v1926_v48 = vld [vmem:[#allocation3 + $0xe0] sm:$0xff] }
 0x28a   : > { %1317 = vst.msk [vmem:[#allocation3 + $0xf8] sm:$0xff] %vm1285_vm7, %v1252_v15  ;;  %2698 = vmatprep.mubr.msk.f32.mxu1 %vm1939_vm11, %v1926_v48  ;;  %v1637_v44 = vpop.permute.xlu0 %1636 }
 0x28b   : > { %v1927_v2 = vld [vmem:[#allocation3 + $0xe8] sm:$0xff]  ;;  %1703 = vst.msk [vmem:[#allocation3 + $0xf0] sm:$0xff] %vm1672_vm9, %v1637_v44 }
 0x28c   : > { %2699 = vmatmul.mubr.msk.f32.gmra.mxu1 %vm1939_vm11, %v1927_v2 }
 0x28d   : > { %v1446_v7 = vpop.permute.xlu1 %1445 }
 0x28e   : > { %1511 = vst.msk [vmem:[#allocation3 + $0xf8] sm:$0xff] %vm1479_vm8, %v1446_v7  ;;  %v1830_v10 = vpop.permute.xlu0 %1829 }
 0x28f   : > { %1896 = vst.msk [vmem:[#allocation3 + $0xf0] sm:$0xff] %vm1865_vm10, %v1830_v10 }
 0x291   : > { %v1639_v35 = vpop.permute.xlu1 %1638 }
 0x292   : > { %1704 = vst.msk [vmem:[#allocation3 + $0xf8] sm:$0xff] %vm1672_vm9, %v1639_v35 }
 0x293   : > { %v2676_v52 = vpop.f32.mrf.mxu0 }
 0x294   : > { %v2344_v47 = vmul.f32 %v2676_v52, %v2676_v52  ;;  %2446 = vst.msk [vmem:[%s3676_s22 + $0x68] sm:$0xff] %vm214_vm0, %v2676_v52  ;;  %v2286_v13 = vsel %vm214_vm0, %v2676_v52, 0.0 }
 0x295   : > { %v1832_v36 = vpop.permute.xlu1 %1831  ;;  %v2162_v57 = vpop.f32.mrf.mxu0 }
 0x296   : > { %1897 = vst.msk [vmem:[#allocation3 + $0xf8] sm:$0xff] %vm1865_vm10, %v1832_v36  ;;  %v2284_v51 = vsel %vm214_vm0, %v2162_v57, 0.0  ;;  %v2343_v1 = vmul.f32 %v2162_v57, %v2162_v57  ;;  %v1928_v17 = vld [vmem:[#allocation3 + $0xf0] sm:$0xff]  ;;  %v2388_v38 = vsel %vm214_vm0, %v2344_v47, 0.0 }
 0x297   : > { %2445 = vst.msk [vmem:[%s3676_s22 + $0x60] sm:$0xff] %vm214_vm0, %v2162_v57  ;;  %v2285_v30 = vadd.f32 %v2284_v51, %v2283_v11  ;;  %2701 = vmatprep.mubr.msk.f32.mxu1 %vm1939_vm11, %v1928_v17 }
 0x298   : > { %v2386_v4 = vsel %vm214_vm0, %v2343_v1, 0.0 }
 0x299   : > { %v2387_v9 = vadd.f32 %v2386_v4, %v2385_v62  ;;  %v2287_v25 = vadd.f32 %v2286_v13, %v2285_v30 }
 0x29b   : > { %v2389_v37 = vadd.f32 %v2388_v38, %v2387_v9 }
 0x29d   : > { %v1929_v46 = vld [vmem:[#allocation3 + $0xf8] sm:$0xff] }
 0x29e   : > { %2702 = vmatmul.mubr.msk.f32.gmra.mxu1 %vm1939_vm11, %v1929_v46 }
 0x2a7   : > { %v2679_v55 = vpop.f32.mrf.mxu0 }
 0x2a8   : > { %v2346_v16 = vmul.f32 %v2679_v55, %v2679_v55  ;;  %2448 = vst.msk [vmem:[%s3676_s22 + $0x78] sm:$0xff] %vm214_vm0, %v2679_v55  ;;  %v2290_v14 = vsel %vm214_vm0, %v2679_v55, 0.0 }
 0x2a9   : > { %v2172_v53 = vpop.f32.mrf.mxu0 }
 0x2aa   : > { %v2288_v19 = vsel %vm214_vm0, %v2172_v53, 0.0  ;;  %v2345_v39 = vmul.f32 %v2172_v53, %v2172_v53  ;;  %2447 = vst.msk [vmem:[%s3676_s22 + $0x70] sm:$0xff] %vm214_vm0, %v2172_v53  ;;  %v2392_v42 = vsel %vm214_vm0, %v2346_v16, 0.0 }
 0x2ab   : > { %v2289_v59 = vadd.f32 %v2288_v19, %v2287_v25 }
 0x2ac   : > { %v2390_v32 = vsel %vm214_vm0, %v2345_v39, 0.0 }
 0x2ad   : > { %v2291_v3 = vadd.f32 %v2290_v14, %v2289_v59  ;;  %v2391_v41 = vadd.f32 %v2390_v32, %v2389_v37 }
 0x2af   : > { %v2393_v27 = vadd.f32 %v2392_v42, %v2391_v41 }
 0x2bb   : > { %v2682_v18 = vpop.f32.mrf.mxu1 }
 0x2bc   : > { %v2348_v50 = vmul.f32 %v2682_v18, %v2682_v18  ;;  %2450 = vst.msk [vmem:[%s3676_s22 + $0x88] sm:$0xff] %vm214_vm0, %v2682_v18  ;;  %v2294_v58 = vsel %vm214_vm0, %v2682_v18, 0.0 }
 0x2bd   : > { %v2182_v6 = vpop.f32.mrf.mxu1 }
 0x2be   : > { %v2292_v63 = vsel %vm214_vm0, %v2182_v6, 0.0  ;;  %v2347_v49 = vmul.f32 %v2182_v6, %v2182_v6  ;;  %2449 = vst.msk [vmem:[%s3676_s22 + $0x80] sm:$0xff] %vm214_vm0, %v2182_v6  ;;  %v2396_v20 = vsel %vm214_vm0, %v2348_v50, 0.0 }
 0x2bf   : > { %v2293_v61 = vadd.f32 %v2292_v63, %v2291_v3 }
 0x2c0   : > { %v2394_v40 = vsel %vm214_vm0, %v2347_v49, 0.0 }
 0x2c1   : > { %v2395_v43 = vadd.f32 %v2394_v40, %v2393_v27  ;;  %v2295_v45 = vadd.f32 %v2294_v58, %v2293_v61 }
 0x2c3   : > { %v2397_v21 = vadd.f32 %v2396_v20, %v2395_v43 }
 0x2d3   : > { %v2685_v22 = vpop.f32.mrf.mxu1 }
 0x2d4   : > { %v2350_v5 = vmul.f32 %v2685_v22, %v2685_v22  ;;  %2452 = vst.msk [vmem:[%s3676_s22 + $0x98] sm:$0xff] %vm214_vm0, %v2685_v22  ;;  %v2298_v23 = vsel %vm214_vm0, %v2685_v22, 0.0 }
 0x2d5   : > { %v2192_v56 = vpop.f32.mrf.mxu1 }
 0x2d6   : > { %v2296_v60 = vsel %vm214_vm0, %v2192_v56, 0.0  ;;  %v2349_v12 = vmul.f32 %v2192_v56, %v2192_v56  ;;  %2451 = vst.msk [vmem:[%s3676_s22 + $0x90] sm:$0xff] %vm214_vm0, %v2192_v56  ;;  %v2400_v8 = vsel %vm214_vm0, %v2350_v5, 0.0 }
 0x2d7   : > { %v2297_v54 = vadd.f32 %v2296_v60, %v2295_v45 }
 0x2d8   : > { %v2398_v24 = vsel %vm214_vm0, %v2349_v12, 0.0 }
 0x2d9   : > { %v2399_v0 = vadd.f32 %v2398_v24, %v2397_v21  ;;  %v2299_v28 = vadd.f32 %v2298_v23, %v2297_v54 }
 0x2db   : > { %v2401_v29 = vadd.f32 %v2400_v8, %v2399_v0 }
 0x2eb   : > { %v2688_v33 = vpop.f32.mrf.mxu1 }
 0x2ec   : > { %v2352_v26 = vmul.f32 %v2688_v33, %v2688_v33  ;;  %2454 = vst.msk [vmem:[%s3676_s22 + $0xa8] sm:$0xff] %vm214_vm0, %v2688_v33  ;;  %v2302_v11 = vsel %vm214_vm0, %v2688_v33, 0.0 }
 0x2ed   : > { %v2202_v31 = vpop.f32.mrf.mxu1 }
 0x2ee   : > { %v2300_v34 = vsel %vm214_vm0, %v2202_v31, 0.0  ;;  %v2351_v62 = vmul.f32 %v2202_v31, %v2202_v31  ;;  %2453 = vst.msk [vmem:[%s3676_s22 + $0xa0] sm:$0xff] %vm214_vm0, %v2202_v31  ;;  %v2404_v48 = vsel %vm214_vm0, %v2352_v26, 0.0 }
 0x2ef   : > { %v2301_v15 = vadd.f32 %v2300_v34, %v2299_v28 }
 0x2f0   : > { %v2402_v2 = vsel %vm214_vm0, %v2351_v62, 0.0 }
 0x2f1   : > { %v2403_v44 = vadd.f32 %v2402_v2, %v2401_v29  ;;  %v2303_v7 = vadd.f32 %v2302_v11, %v2301_v15 }
 0x2f3   : > { %v2405_v10 = vadd.f32 %v2404_v48, %v2403_v44 }
 0x303   : > { %v2691_v35 = vpop.f32.mrf.mxu1 }
 0x304   : > { %v2354_v52 = vmul.f32 %v2691_v35, %v2691_v35  ;;  %2456 = vst.msk [vmem:[%s3676_s22 + $0xb8] sm:$0xff] %vm214_vm0, %v2691_v35  ;;  %v2306_v36 = vsel %vm214_vm0, %v2691_v35, 0.0 }
 0x305   : > { %v2212_v47 = vpop.f32.mrf.mxu1 }
 0x306   : > { %v2304_v57 = vsel %vm214_vm0, %v2212_v47, 0.0  ;;  %v2353_v13 = vmul.f32 %v2212_v47, %v2212_v47  ;;  %2455 = vst.msk [vmem:[%s3676_s22 + $0xb0] sm:$0xff] %vm214_vm0, %v2212_v47  ;;  %v2408_v1 = vsel %vm214_vm0, %v2354_v52, 0.0 }
 0x307   : > { %v2305_v51 = vadd.f32 %v2304_v57, %v2303_v7 }
 0x308   : > { %v2406_v17 = vsel %vm214_vm0, %v2353_v13, 0.0 }
 0x309   : > { %v2407_v30 = vadd.f32 %v2406_v17, %v2405_v10  ;;  %v2307_v38 = vadd.f32 %v2306_v36, %v2305_v51 }
 0x30b   : > { %v2409_v4 = vadd.f32 %v2408_v1, %v2407_v30 }
 0x31b   : > { %v2694_v9 = vpop.f32.mrf.mxu1 }
 0x31c   : > { %2458 = vst.msk [vmem:[%s3676_s22 + $0xc8] sm:$0xff] %vm214_vm0, %v2694_v9  ;;  %v2356_v19 = vmul.f32 %v2694_v9, %v2694_v9  ;;  %v2310_v42 = vsel %vm214_vm0, %v2694_v9, 0.0 }
 0x31d   : > { %v2222_v25 = vpop.f32.mrf.mxu1 }
 0x31e   : > { %2457 = vst.msk [vmem:[%s3676_s22 + $0xc0] sm:$0xff] %vm214_vm0, %v2222_v25  ;;  %v2355_v55 = vmul.f32 %v2222_v25, %v2222_v25  ;;  %v2308_v53 = vsel %vm214_vm0, %v2222_v25, 0.0  ;;  %v2412_v41 = vsel %vm214_vm0, %v2356_v19, 0.0 }
 0x31f   : > { %v2309_v59 = vadd.f32 %v2308_v53, %v2307_v38 }
 0x320   : > { %v2410_v39 = vsel %vm214_vm0, %v2355_v55, 0.0 }
 0x321   : > { %v2411_v3 = vadd.f32 %v2410_v39, %v2409_v4  ;;  %v2311_v18 = vadd.f32 %v2310_v42, %v2309_v59 }
 0x323   : > { %v2413_v63 = vadd.f32 %v2412_v41, %v2411_v3 }
 0x333   : > { %v2697_v37 = vpop.f32.mrf.mxu1 }
 0x334   : > { %2460 = vst.msk [vmem:[%s3676_s22 + $0xd8] sm:$0xff] %vm214_vm0, %v2697_v37  ;;  %v2358_v50 = vmul.f32 %v2697_v37, %v2697_v37  ;;  %v2314_v49 = vsel %vm214_vm0, %v2697_v37, 0.0 }
 0x335   : > { %v2232_v46 = vpop.f32.mrf.mxu1 }
 0x336   : > { %2459 = vst.msk [vmem:[%s3676_s22 + $0xd0] sm:$0xff] %vm214_vm0, %v2232_v46  ;;  %v2357_v32 = vmul.f32 %v2232_v46, %v2232_v46  ;;  %v2312_v27 = vsel %vm214_vm0, %v2232_v46, 0.0  ;;  %v2416_v40 = vsel %vm214_vm0, %v2358_v50, 0.0 }
 0x337   : > { %v2313_v58 = vadd.f32 %v2312_v27, %v2311_v18 }
 0x338   : > { %v2414_v6 = vsel %vm214_vm0, %v2357_v32, 0.0 }
 0x339   : > { %v2415_v20 = vadd.f32 %v2414_v6, %v2413_v63  ;;  %v2315_v45 = vadd.f32 %v2314_v49, %v2313_v58 }
 0x33b   : > { %v2417_v56 = vadd.f32 %v2416_v40, %v2415_v20 }
 0x34c   : > { %v2700_v16 = vpop.f32.mrf.mxu1 }
 0x34d   : > { %2462 = vst.msk [vmem:[%s3676_s22 + $0xe8] sm:$0xff] %vm214_vm0, %v2700_v16  ;;  %v2360_v21 = vmul.f32 %v2700_v16, %v2700_v16  ;;  %v2318_v23 = vsel %vm214_vm0, %v2700_v16, 0.0 }
 0x34e   : > { %v2242_v14 = vpop.f32.mrf.mxu1 }
 0x34f   : > { %2461 = vst.msk [vmem:[%s3676_s22 + $0xe0] sm:$0xff] %vm214_vm0, %v2242_v14  ;;  %v2359_v61 = vmul.f32 %v2242_v14, %v2242_v14  ;;  %v2316_v43 = vsel %vm214_vm0, %v2242_v14, 0.0  ;;  %v2420_v54 = vsel %vm214_vm0, %v2360_v21, 0.0 }
 0x350   : > { %v2317_v5 = vadd.f32 %v2316_v43, %v2315_v45 }
 0x351   : > { %v2418_v22 = vsel %vm214_vm0, %v2359_v61, 0.0 }
 0x352   : > { %v2419_v60 = vadd.f32 %v2418_v22, %v2417_v56  ;;  %v2319_v24 = vadd.f32 %v2318_v23, %v2317_v5 }
 0x354   : > { %v2421_v26 = vadd.f32 %v2420_v54, %v2419_v60 }
 0x35e   : > { %v2703_v12 = vpop.f32.mrf.mxu1 }
 0x35f   : > { %2464 = vst.msk [vmem:[%s3676_s22 + $0xf8] sm:$0xff] %vm214_vm0, %v2703_v12  ;;  %v2362_v0 = vmul.f32 %v2703_v12, %v2703_v12  ;;  %v2322_v31 = vsel %vm214_vm0, %v2703_v12, 0.0 }
 0x360   : > { %v2252_v8 = vpop.f32.mrf.mxu1 }
 0x361   : > { %v2320_v28 = vsel %vm214_vm0, %v2252_v8, 0.0  ;;  %v2361_v29 = vmul.f32 %v2252_v8, %v2252_v8  ;;  %2463 = vst.msk [vmem:[%s3676_s22 + $0xf0] sm:$0xff] %vm214_vm0, %v2252_v8  ;;  %v2424_v15 = vsel %vm214_vm0, %v2362_v0, 0.0 }
 0x362   : > { %v2321_v33 = vadd.f32 %v2320_v28, %v2319_v24 }
 0x363   : > { %v2422_v11 = vsel %vm214_vm0, %v2361_v29, 0.0 }
 0x364   : > { %v2323_v34 = vadd.f32 %v2322_v31, %v2321_v33  ;;  %v2423_v62 = vadd.f32 %v2422_v11, %v2421_v26 }
 0x366   : > { %v2324_v48 = vrot.slane %v2323_v34, 4  ;;  %v2425_v2 = vadd.f32 %v2424_v15, %v2423_v62 }
 0x368   : > { %v2325_v44 = vadd.f32 %v2324_v48, %v2323_v34  ;;  %v2426_v7 = vrot.slane %v2425_v2, 4 }
 0x36a   : > { %v2326_v10 = vrot.slane %v2325_v44, 2  ;;  %v2427_v35 = vadd.f32 %v2426_v7, %v2425_v2 }
 0x36c   : > { %v2327_v52 = vadd.f32 %v2326_v10, %v2325_v44  ;;  %v2428_v47 = vrot.slane %v2427_v35, 2 }
 0x36e   : > { %v2328_v36 = vrot.slane %v2327_v52, 1  ;;  %v2429_v57 = vadd.f32 %v2428_v47, %v2427_v35 }
 0x370   : > { %v2329_v13 = vadd.f32 %v2328_v36, %v2327_v52  ;;  %v2430_v51 = vrot.slane %v2429_v57, 1 }
 0x372   : > { %2330 = vst.msk [vmem:[%s181_s26] sm:$0x1] %vm224_vm2, %v2329_v13  ;;  %v2431_v1 = vadd.f32 %v2430_v51, %v2429_v57 }
 0x374   : > { %2432 = vst.msk [vmem:[%s181_s26 + $0x1] sm:$0x1] %vm224_vm2, %v2431_v1 }
 0x375 PF: > { %s14_s12 = sadd.s32 1, %s2745_s12  }
 0x376   : > { %p11_p4 = scmp.ge.s32.totalorder %s14_s12, 4  }
 0x378   :  { %13 = sbr.rel (!%p11_p4) target bundleno = 1 (0x1), region = 73 }

// kernel: basic_block.4
= control target key start
LH: loop header
LB: loop body
LE: loop exit
PB: predicated region body
PF: predicated region fallthrough
CT: control target
= control target key end

     0   :  { %s2954_s18 = smov 0   ;;  %s4125_s0 = inlined_call_operand.vmem [shape: f32[2,16,16,8], index: 0, kind: input, shape index: {}]   ;;  %s4126_s1 = inlined_call_operand.vmem [shape: f32[1,8], index: 1, kind: input, shape index: {}]   ;;  %s4127_s2 = inlined_call_operand.vmem [shape: f32[1,8], index: 2, kind: input, shape index: {}]   ;;  %s4128_s3 = inlined_call_operand.vmem [shape: f32[72,8], index: 3, kind: input, shape index: {}]   ;;  %s4129_s4 = inlined_call_operand.vmem [shape: f32[2,16,16,8], index: 4, kind: output, shape index: {0}]   ;;  %s4130_s5 = inlined_call_operand.vmem [shape: f32[2,2,8], index: 5, kind: output, shape index: {1}]  }
   0x1 LB: > { %s2715_s19 = sadd.s32 4294967295, %s2913_s18   ;;  %p2719_p0 = scmp.ge.s32.totalorder %s2913_s18, 1  ;;  %s2913_s18 = sphi %s2954_s18, %s16_s18  }
   0x2   : > { %p190_p1 = scmp.lt.s32.totalorder %s2913_s18, 3 }
   0x4   : > { %p191_p2 = pnand %p2719_p0, %p190_p1 }
   0x5   : > { %p2964_p3 = scmp.lt.s32.totalorder (!%p191_p2), %s2715_s19, 1  ;;  %s2916_s29 = smov (!%p191_p2), 8  }
   0x6   : > { %194 = sbr.rel (%p191_p2) target bundleno = 885 (0x375), region = 36  ;;  %s2917_s30 = smov (!%p191_p2), 16  }
   0x7   : > { %s2918_s6 = smov (!%p191_p2), 24   ;;  %s2919_s7 = smov (!%p191_p2), 32  }
   0x8   : > { %s2920_s8 = smov (!%p191_p2), 40   ;;  %s2921_s13 = smov (!%p191_p2), 48  }
   0x9   : > { %s2922_s20 = smov (!%p191_p2), 56   ;;  %s2923_s9 = smov (!%p191_p2), 64  }
   0xb   : > { %vm378_vm0 = vcmask 64512   ;;  %vm381_vm1 = vcmask 58368   ;;  %vm388_vm2 = vcmask 57344   ;;  %v2915_v0 = vmov 0.0   ;;  %s4133_s19 = smov (!%p2964_p3, %s2715_s19), 1 }
   0xc   : > { %379 = vst.msk [vmem:[#allocation2] sm:$0xff] %vm378_vm0, %v2915_v0  ;;  %380 = vst.msk [vmem:[#allocation2 + $0x8] sm:$0xff] %vm378_vm0, %v2915_v0  ;;  %s2761_s21 = sshll.u32 %s4133_s19, 8  ;;  %v3014_v1 = vld [vmem:[%s4126_s1] ss:$0 sm:$0xff]  ;;  %vm677_vm3 = vcmask 130112  }
   0xd   : > { %384 = vst.msk [vmem:[#allocation2 + $0x198] sm:$0xff] %vm378_vm0, %v2915_v0  ;;  %385 = vst.msk [vmem:[#allocation2 + $0x1a0] sm:$0xff] %vm378_vm0, %v2915_v0  ;;  %s3021_s26 = scalar_lea.vmem %s4125_s0, %s2761_s21  ;;  %v3026_v2 = vld [vmem:[%s4127_s2] ss:$0 sm:$0xff]  ;;  %vm870_vm4 = vcmask 195712   ;;  %vm1063_vm5 = vcmask 261312  }
   0xe   : > { %382 = vst.msk [vmem:[#allocation2 + $0x10] sm:$0x3] %vm381_vm1, %v2915_v0  ;;  %386 = vst.msk [vmem:[#allocation2 + $0x1a8] sm:$0x3] %vm381_vm1, %v2915_v0  ;;  %v236_v3 = vld [vmem:[%s3021_s26] sm:$0xff]  ;;  %v238_v4 = vld [vmem:[%s3021_s26 + $0x10] sm:$0xff] }
   0xf   : > { %405 = vst.msk [vmem:[#allocation2 + $0x29] sm:$0x1] %vm388_vm2, %v2915_v0  ;;  %389 = vst.msk [vmem:[#allocation2 + $0x18] sm:$0x1] %vm388_vm2, %v2915_v0  ;;  %v237_v5 = vld [vmem:[%s3021_s26 + $0x8] sm:$0xff]  ;;  %v275_v6 = vmul.f32 %v3014_v1, %v236_v3  ;;  %v277_v7 = vmul.f32 %v3014_v1, %v238_v4  ;;  %v240_v9 = vld [vmem:[%s3021_s26 + $0x20] sm:$0xff] }
  0x10   : > { %390 = vst.msk [vmem:[#allocation2 + $0x30] sm:$0x1] %vm388_vm2, %v2915_v0  ;;  %391 = vst.msk [vmem:[#allocation2 + $0x48] sm:$0x1] %vm388_vm2, %v2915_v0  ;;  %v276_v8 = vmul.f32 %v3014_v1, %v237_v5  ;;  %v239_v10 = vld [vmem:[%s3021_s26 + $0x18] sm:$0xff]  ;;  %v242_v11 = vld [vmem:[%s3021_s26 + $0x30] sm:$0xff]  ;;  %v279_v13 = vmul.f32 %v3014_v1, %v240_v9 }
  0x11   : > { %392 = vst.msk [vmem:[#allocation2 + $0x60] sm:$0x1] %vm388_vm2, %v2915_v0  ;;  %393 = vst.msk [vmem:[#allocation2 + $0x78] sm:$0x1] %vm388_vm2, %v2915_v0  ;;  %v278_v14 = vmul.f32 %v3014_v1, %v239_v10  ;;  %v281_v15 = vmul.f32 %v3014_v1, %v242_v11  ;;  %v241_v16 = vld [vmem:[%s3021_s26 + $0x28] sm:$0xff]  ;;  %v314_v18 = vadd.f32 %v3026_v2, %v275_v6  ;;  %v244_v22 = vld [vmem:[%s3021_s26 + $0x40] sm:$0xff] }
  0x12   : > { %394 = vst.msk [vmem:[#allocation2 + $0x90] sm:$0x1] %vm388_vm2, %v2915_v0  ;;  %395 = vst.msk [vmem:[#allocation2 + $0xa8] sm:$0x1] %vm388_vm2, %v2915_v0  ;;  %v316_v19 = vadd.f32 %v3026_v2, %v277_v7  ;;  %v315_v20 = vadd.f32 %v3026_v2, %v276_v8  ;;  %v280_v21 = vmul.f32 %v3014_v1, %v241_v16  ;;  %v243_v27 = vld [vmem:[%s3021_s26 + $0x38] sm:$0xff]  ;;  %v246_v28 = vld [vmem:[%s3021_s26 + $0x50] sm:$0xff] }
  0x13   : > { %396 = vst.msk [vmem:[#allocation2 + $0xc0] sm:$0x1] %vm388_vm2, %v2915_v0  ;;  %397 = vst.msk [vmem:[#allocation2 + $0xd8] sm:$0x1] %vm388_vm2, %v2915_v0  ;;  %v517_v12 = vld [vmem:[#allocation2 + $0x1] sm:$0xff]  ;;  %v318_v23 = vadd.f32 %v3026_v2, %v279_v13  ;;  %v317_v24 = vadd.f32 %v3026_v2, %v278_v14  ;;  %v320_v25 = vadd.f32 %v3026_v2, %v281_v15  ;;  %v346_v30 = vmax.f32 %v314_v18, 0.0 }
  0x14   : > { %398 = vst.msk [vmem:[#allocation2 + $0xf0] sm:$0x1] %vm388_vm2, %v2915_v0  ;;  %399 = vst.msk [vmem:[#allocation2 + $0x108] sm:$0x1] %vm388_vm2, %v2915_v0  ;;  %581 = vrot.lane.b32.xlu0 %v517_v12, %s2916_s29  ;;  %v283_v26 = vmul.f32 %v3014_v1, %v244_v22  ;;  %v245_v29 = vld [vmem:[%s3021_s26 + $0x48] sm:$0xff]  ;;  %v348_v31 = vmax.f32 %v316_v19, 0.0  ;;  %v319_v33 = vadd.f32 %v3026_v2, %v280_v21 }
  0x15   : > { %400 = vst.msk [vmem:[#allocation2 + $0x120] sm:$0x1] %vm388_vm2, %v2915_v0  ;;  %401 = vst.msk [vmem:[#allocation2 + $0x138] sm:$0x1] %vm388_vm2, %v2915_v0  ;;  %v518_v17 = vld [vmem:[#allocation2 + $0x9] sm:$0xff]  ;;  %v347_v32 = vmax.f32 %v315_v20, 0.0  ;;  %v282_v43 = vmul.f32 %v3014_v1, %v243_v27  ;;  %v285_v44 = vmul.f32 %v3014_v1, %v246_v28  ;;  %v284_v45 = vmul.f32 %v3014_v1, %v245_v29 }
  0x16   : > { %402 = vst.msk [vmem:[#allocation2 + $0x150] sm:$0x1] %vm388_vm2, %v2915_v0  ;;  %403 = vst.msk [vmem:[#allocation2 + $0x168] sm:$0x1] %vm388_vm2, %v2915_v0  ;;  %v248_v34 = vld [vmem:[%s3021_s26 + $0x60] sm:$0xff]  ;;  %v247_v35 = vld [vmem:[%s3021_s26 + $0x58] sm:$0xff]  ;;  %v322_v40 = vadd.f32 %v3026_v2, %v283_v26 }
  0x17   : > { %404 = vst.msk [vmem:[#allocation2 + $0x180] sm:$0x1] %vm388_vm2, %v2915_v0  ;;  %406 = vst.msk [vmem:[#allocation2 + $0x41] sm:$0x1] %vm388_vm2, %v2915_v0  ;;  %v250_v36 = vld [vmem:[%s3021_s26 + $0x70] sm:$0xff]  ;;  %v350_v37 = vmax.f32 %v318_v23, 0.0  ;;  %v287_v48 = vmul.f32 %v3014_v1, %v248_v34  ;;  %v286_v49 = vmul.f32 %v3014_v1, %v247_v35  ;;  %v321_v51 = vadd.f32 %v3026_v2, %v282_v43 }
  0x18   : > { %407 = vst.msk [vmem:[#allocation2 + $0x59] sm:$0x1] %vm388_vm2, %v2915_v0  ;;  %408 = vst.msk [vmem:[#allocation2 + $0x71] sm:$0x1] %vm388_vm2, %v2915_v0  ;;  %v349_v38 = vmax.f32 %v317_v24, 0.0  ;;  %v352_v39 = vmax.f32 %v320_v25, 0.0  ;;  %583 = vrot.lane.b32.xlu0 %v518_v17, %s2916_s29  ;;  %v289_v50 = vmul.f32 %v3014_v1, %v250_v36  ;;  %v324_v52 = vadd.f32 %v3026_v2, %v285_v44 }
  0x19   : > { %409 = vst.msk [vmem:[#allocation2 + $0x89] sm:$0x1] %vm388_vm2, %v2915_v0  ;;  %410 = vst.msk [vmem:[#allocation2 + $0xa1] sm:$0x1] %vm388_vm2, %v2915_v0  ;;  %v249_v41 = vld [vmem:[%s3021_s26 + $0x68] sm:$0xff]  ;;  %v351_v42 = vmax.f32 %v319_v33, 0.0  ;;  %v323_v53 = vadd.f32 %v3026_v2, %v284_v45  ;;  %v326_v57 = vadd.f32 %v3026_v2, %v287_v48  ;;  %v325_v58 = vadd.f32 %v3026_v2, %v286_v49 }
  0x1a   : > { %411 = vst.msk [vmem:[#allocation2 + $0xb9] sm:$0x1] %vm388_vm2, %v2915_v0  ;;  %412 = vst.msk [vmem:[#allocation2 + $0xd1] sm:$0x1] %vm388_vm2, %v2915_v0  ;;  %v252_v46 = vld [vmem:[%s3021_s26 + $0x80] sm:$0xff]  ;;  %v354_v47 = vmax.f32 %v322_v40, 0.0  ;;  %v288_v54 = vmul.f32 %v3014_v1, %v249_v41  ;;  %v328_v59 = vadd.f32 %v3026_v2, %v289_v50 }
  0x1b   : > { %413 = vst.msk [vmem:[#allocation2 + $0xe9] sm:$0x1] %vm388_vm2, %v2915_v0  ;;  %414 = vst.msk [vmem:[#allocation2 + $0x101] sm:$0x1] %vm388_vm2, %v2915_v0  ;;  %v251_v55 = vld [vmem:[%s3021_s26 + $0x78] sm:$0xff]  ;;  %v254_v56 = vld [vmem:[%s3021_s26 + $0x90] sm:$0xff]  ;;  %v291_v60 = vmul.f32 %v3014_v1, %v252_v46 }
  0x1c   : > { %415 = vst.msk [vmem:[#allocation2 + $0x119] sm:$0x1] %vm388_vm2, %v2915_v0  ;;  %416 = vst.msk [vmem:[#allocation2 + $0x131] sm:$0x1] %vm388_vm2, %v2915_v0  ;;  %v253_v61 = vld [vmem:[%s3021_s26 + $0x88] sm:$0xff]  ;;  %v256_v62 = vld [vmem:[%s3021_s26 + $0xa0] sm:$0xff]  ;;  %v327_v5 = vadd.f32 %v3026_v2, %v288_v54  ;;  %v290_v14 = vmul.f32 %v3014_v1, %v251_v55  ;;  %v293_v15 = vmul.f32 %v3014_v1, %v254_v56 }
  0x1d   : > { %417 = vst.msk [vmem:[#allocation2 + $0x149] sm:$0x1] %vm388_vm2, %v2915_v0  ;;  %418 = vst.msk [vmem:[#allocation2 + $0x161] sm:$0x1] %vm388_vm2, %v2915_v0  ;;  %v255_v63 = vld [vmem:[%s3021_s26 + $0x98] sm:$0xff]  ;;  %v356_v3 = vmax.f32 %v324_v52, 0.0  ;;  %v330_v12 = vadd.f32 %v3026_v2, %v291_v60  ;;  %v292_v16 = vmul.f32 %v3014_v1, %v253_v61  ;;  %v295_v21 = vmul.f32 %v3014_v1, %v256_v62 }
  0x1e   : > { %419 = vst.msk [vmem:[#allocation2 + $0x179] sm:$0x1] %vm388_vm2, %v2915_v0  ;;  %420 = vst.msk [vmem:[#allocation2 + $0x191] sm:$0x1] %vm388_vm2, %v2915_v0  ;;  %v353_v0 = vmax.f32 %v321_v51, 0.0  ;;  %v355_v4 = vmax.f32 %v323_v53, 0.0  ;;  %v294_v22 = vmul.f32 %v3014_v1, %v255_v63  ;;  %v329_v25 = vadd.f32 %v3026_v2, %v290_v14 }
  0x1f   : > { %421 = vst.msk [vmem:[#allocation2 + $0x19] sm:$0xff] %vm378_vm0, %v346_v30  ;;  %423 = vst.msk [vmem:[#allocation2 + $0x31] sm:$0xff] %vm378_vm0, %v348_v31  ;;  %v258_v6 = vld [vmem:[%s3021_s26 + $0xb0] sm:$0xff]  ;;  %v453_v7 = vld [vmem:[#allocation2] sm:$0xff]  ;;  %v358_v9 = vmax.f32 %v326_v57, 0.0  ;;  %v357_v10 = vmax.f32 %v325_v58, 0.0  ;;  %v332_v26 = vadd.f32 %v3026_v2, %v293_v15  ;;  %v331_v27 = vadd.f32 %v3026_v2, %v292_v16 }
  0x20   : > { %422 = vst.msk [vmem:[#allocation2 + $0x21] sm:$0xff] %vm378_vm0, %v347_v32  ;;  %425 = vst.msk [vmem:[#allocation2 + $0x49] sm:$0xff] %vm378_vm0, %v350_v37  ;;  %v454_v8 = vld [vmem:[#allocation2 + $0x8] sm:$0xff]  ;;  %v360_v11 = vmax.f32 %v328_v59, 0.0  ;;  %v359_v13 = vmax.f32 %v327_v5, 0.0  ;;  %v362_v20 = vmax.f32 %v330_v12, 0.0  ;;  %v297_v23 = vmul.f32 %v3014_v1, %v258_v6 }
  0x21   : > { %424 = vst.msk [vmem:[#allocation2 + $0x39] sm:$0xff] %vm378_vm0, %v349_v38  ;;  %427 = vst.msk [vmem:[#allocation2 + $0x61] sm:$0xff] %vm378_vm0, %v352_v39  ;;  %v257_v17 = vld [vmem:[%s3021_s26 + $0xa8] sm:$0xff]  ;;  %v260_v24 = vld [vmem:[%s3021_s26 + $0xc0] sm:$0xff]  ;;  %v334_v31 = vadd.f32 %v3026_v2, %v295_v21  ;;  %v333_v32 = vadd.f32 %v3026_v2, %v294_v22  ;;  %v361_v36 = vmax.f32 %v329_v25, 0.0  ;;  %v364_v37 = vmax.f32 %v332_v26, 0.0 }
  0x22   : > { %426 = vst.msk [vmem:[#allocation2 + $0x51] sm:$0xff] %vm378_vm0, %v351_v42  ;;  %429 = vst.msk [vmem:[#allocation2 + $0x79] sm:$0xff] %vm378_vm0, %v354_v47  ;;  %v259_v28 = vld [vmem:[%s3021_s26 + $0xb8] sm:$0xff]  ;;  %v336_v33 = vadd.f32 %v3026_v2, %v297_v23  ;;  %v296_v34 = vmul.f32 %v3014_v1, %v257_v17  ;;  %v262_v35 = vld [vmem:[%s3021_s26 + $0xd0] sm:$0xff]  ;;  %v363_v38 = vmax.f32 %v331_v27, 0.0  ;;  %v299_v39 = vmul.f32 %v3014_v1, %v260_v24 }
  0x23   : > { %485 = vst.msk [vmem:[#allocation3] sm:$0xff] %vm378_vm0, %v453_v7  ;;  %486 = vst.msk [vmem:[#allocation3 + $0x8] sm:$0xff] %vm378_vm0, %v454_v8  ;;  %v261_v40 = vld [vmem:[%s3021_s26 + $0xc8] sm:$0xff]  ;;  %v264_v41 = vld [vmem:[%s3021_s26 + $0xe0] sm:$0xff]  ;;  %v366_v43 = vmax.f32 %v334_v31, 0.0  ;;  %v365_v44 = vmax.f32 %v333_v32, 0.0  ;;  %v298_v50 = vmul.f32 %v3014_v1, %v259_v28  ;;  %v301_v51 = vmul.f32 %v3014_v1, %v262_v35 }
  0x24   : > { %428 = vst.msk [vmem:[#allocation2 + $0x69] sm:$0xff] %vm378_vm0, %v353_v0  ;;  %431 = vst.msk [vmem:[#allocation2 + $0x91] sm:$0xff] %vm378_vm0, %v356_v3  ;;  %v263_v42 = vld [vmem:[%s3021_s26 + $0xd8] sm:$0xff]  ;;  %v368_v45 = vmax.f32 %v336_v33, 0.0  ;;  %v335_v46 = vadd.f32 %v3026_v2, %v296_v34  ;;  %v265_v47 = vld [vmem:[%s3021_s26 + $0xe8] sm:$0xff]  ;;  %v338_v49 = vadd.f32 %v3026_v2, %v299_v39  ;;  %v300_v58 = vmul.f32 %v3014_v1, %v261_v40 }
  0x25   : > { %430 = vst.msk [vmem:[#allocation2 + $0x81] sm:$0xff] %vm378_vm0, %v355_v4  ;;  %433 = vst.msk [vmem:[#allocation2 + $0xa9] sm:$0xff] %vm378_vm0, %v358_v9  ;;  %v303_v59 = vmul.f32 %v3014_v1, %v264_v41  ;;  %v302_v60 = vmul.f32 %v3014_v1, %v263_v42  ;;  %v337_v62 = vadd.f32 %v3026_v2, %v298_v50  ;;  %vm1256_vm6 = vcmask 326912  }
  0x26   : > { %v3101_v18 = vld [vmem:[#allocation2 + $0x19] sm:$0xff]  ;;  %v3103_v19 = vld [vmem:[#allocation2 + $0x31] sm:$0xff]  ;;  %432 = vst.msk [vmem:[#allocation2 + $0x99] sm:$0xff] %vm378_vm0, %v357_v10  ;;  %435 = vst.msk [vmem:[#allocation2 + $0xc1] sm:$0xff] %vm378_vm0, %v360_v11  ;;  %v367_v57 = vmax.f32 %v335_v46, 0.0  ;;  %v370_v61 = vmax.f32 %v338_v49, 0.0  ;;  %v340_v63 = vadd.f32 %v3026_v2, %v301_v51  ;;  %v304_v0 = vmul.f32 %v3014_v1, %v265_v47 }
  0x27   : > { %585 = vrot.lane.b32.xlu1 %v3101_v18, %s2916_s29  ;;  %589 = vrot.lane.b32.xlu0 %v3103_v19, %s2916_s29  ;;  %434 = vst.msk [vmem:[#allocation2 + $0xb1] sm:$0xff] %vm378_vm0, %v359_v13  ;;  %v3121_v29 = vld [vmem:[#allocation2 + $0x21] sm:$0xff]  ;;  %v3123_v30 = vld [vmem:[#allocation2 + $0x49] sm:$0xff]  ;;  %437 = vst.msk [vmem:[#allocation2 + $0xd9] sm:$0xff] %vm378_vm0, %v362_v20  ;;  %v339_v3 = vadd.f32 %v3026_v2, %v300_v58  ;;  %v342_v4 = vadd.f32 %v3026_v2, %v303_v59  ;;  %v369_v6 = vmax.f32 %v337_v62, 0.0  ;;  %vm1449_vm7 = vcmask 392512  }
  0x28   : > { %v3137_v48 = vld [vmem:[#allocation2 + $0x18] sm:$0xff]  ;;  %436 = vst.msk [vmem:[#allocation2 + $0xc9] sm:$0xff] %vm378_vm0, %v361_v36  ;;  %439 = vst.msk [vmem:[#allocation2 + $0xf1] sm:$0xff] %vm378_vm0, %v364_v37  ;;  %v3151_v52 = vld [vmem:[#allocation2 + $0x30] sm:$0xff]  ;;  %v341_v5 = vadd.f32 %v3026_v2, %v302_v60  ;;  %v372_v7 = vmax.f32 %v340_v63, 0.0  ;;  %v343_v8 = vadd.f32 %v3026_v2, %v304_v0  ;;  %vm1643_vm8 = vcmask 458112  }
  0x29   : > { %438 = vst.msk [vmem:[#allocation2 + $0xe1] sm:$0xff] %vm378_vm0, %v363_v38  ;;  %487 = vst.msk [vmem:[#allocation3 + $0x10] sm:$0xff] %vm378_vm0, %v3137_v48  ;;  %v3153_v53 = vld [vmem:[#allocation2 + $0x20] sm:$0xff]  ;;  %v3155_v54 = vld [vmem:[#allocation2 + $0x48] sm:$0xff]  ;;  %v371_v10 = vmax.f32 %v339_v3, 0.0  ;;  %v374_v11 = vmax.f32 %v342_v4, 0.0 }
  0x2a   : > { %v3157_v55 = vld [vmem:[#allocation2 + $0x39] sm:$0xff]  ;;  %v525_v56 = vld [vmem:[#allocation2 + $0x61] sm:$0xff]  ;;  %441 = vst.msk [vmem:[#allocation2 + $0x109] sm:$0xff] %vm378_vm0, %v366_v43  ;;  %440 = vst.msk [vmem:[#allocation2 + $0xf9] sm:$0xff] %vm378_vm0, %v365_v44  ;;  %v373_v12 = vmax.f32 %v341_v5, 0.0  ;;  %v375_v13 = vmax.f32 %v343_v8, 0.0 }
  0x2b   : > { %587 = vrot.lane.b32.xlu1 %v3121_v29, %s2916_s29  ;;  %593 = vrot.lane.b32.xlu0 %v3123_v30, %s2916_s29  ;;  %443 = vst.msk [vmem:[#allocation2 + $0x121] sm:$0xff] %vm378_vm0, %v368_v45  ;;  %489 = vst.msk [vmem:[#allocation3 + $0x20] sm:$0xff] %vm378_vm0, %v3151_v52  ;;  %v3183_v1 = vld [vmem:[#allocation2 + $0x51] sm:$0xff]  ;;  %v527_v9 = vld [vmem:[#allocation2 + $0x79] sm:$0xff]  ;;  %vm1836_vm9 = vcmask 523712   ;;  %vm2029_vm10 = vcmask 589312  }
  0x2c   : > { %488 = vst.msk [vmem:[#allocation3 + $0x18] sm:$0xff] %vm378_vm0, %v3153_v53  ;;  %491 = vst.msk [vmem:[#allocation3 + $0x30] sm:$0xff] %vm378_vm0, %v3155_v54  ;;  %v3187_v14 = vld [vmem:[#allocation2 + $0x38] sm:$0xff]  ;;  %v3189_v15 = vld [vmem:[#allocation2 + $0x60] sm:$0xff]  ;;  %vm2103_vm11 = vcmask 588800  }
  0x2d   : > { %442 = vst.msk [vmem:[#allocation2 + $0x111] sm:$0xff] %vm378_vm0, %v367_v57  ;;  %445 = vst.msk [vmem:[#allocation2 + $0x139] sm:$0xff] %vm378_vm0, %v370_v61  ;;  %v526_v2 = vld [vmem:[#allocation2 + $0x69] sm:$0xff]  ;;  %v529_v16 = vld [vmem:[#allocation2 + $0x91] sm:$0xff] }
  0x2e   : > { %444 = vst.msk [vmem:[#allocation2 + $0x129] sm:$0xff] %vm378_vm0, %v369_v6  ;;  %447 = vst.msk [vmem:[#allocation2 + $0x151] sm:$0xff] %vm378_vm0, %v372_v7  ;;  %v3204_v17 = vld [vmem:[#allocation2 + $0x50] sm:$0xff]  ;;  %v3206_v20 = vld [vmem:[#allocation2 + $0x78] sm:$0xff] }
  0x2f   : > { %591 = vrot.lane.b32.xlu1 %v3157_v55, %s2916_s29  ;;  %597 = vrot.lane.b32.xlu0 %v525_v56, %s2916_s29  ;;  %446 = vst.msk [vmem:[#allocation2 + $0x141] sm:$0xff] %vm378_vm0, %v371_v10  ;;  %449 = vst.msk [vmem:[#allocation2 + $0x169] sm:$0xff] %vm378_vm0, %v374_v11  ;;  %v528_v21 = vld [vmem:[#allocation2 + $0x81] sm:$0xff]  ;;  %v531_v22 = vld [vmem:[#allocation2 + $0xa9] sm:$0xff] }
  0x30   : > { %448 = vst.msk [vmem:[#allocation2 + $0x159] sm:$0xff] %vm378_vm0, %v373_v12  ;;  %490 = vst.msk [vmem:[#allocation3 + $0x28] sm:$0xff] %vm378_vm0, %v3187_v14  ;;  %v530_v23 = vld [vmem:[#allocation2 + $0x99] sm:$0xff]  ;;  %v533_v24 = vld [vmem:[#allocation2 + $0xc1] sm:$0xff] }
  0x31   : > { %493 = vst.msk [vmem:[#allocation3 + $0x40] sm:$0xff] %vm378_vm0, %v3189_v15  ;;  %450 = vst.msk [vmem:[#allocation2 + $0x171] sm:$0xff] %vm378_vm0, %v375_v13  ;;  %v3214_v25 = vld [vmem:[#allocation2 + $0x68] sm:$0xff]  ;;  %v3218_v26 = vld [vmem:[#allocation2 + $0x90] sm:$0xff] }
  0x32   : > { %492 = vst.msk [vmem:[#allocation3 + $0x38] sm:$0xff] %vm378_vm0, %v3204_v17  ;;  %495 = vst.msk [vmem:[#allocation3 + $0x50] sm:$0xff] %vm378_vm0, %v3206_v20  ;;  %v3220_v27 = vld [vmem:[#allocation2 + $0x80] sm:$0xff]  ;;  %v3222_v28 = vld [vmem:[#allocation2 + $0xa8] sm:$0xff] }
  0x33   : > { %595 = vrot.lane.b32.xlu1 %v3183_v1, %s2916_s29  ;;  %601 = vrot.lane.b32.xlu0 %v527_v9, %s2916_s29  ;;  %494 = vst.msk [vmem:[#allocation3 + $0x48] sm:$0xff] %vm378_vm0, %v3214_v25  ;;  %v532_v31 = vld [vmem:[#allocation2 + $0xb1] sm:$0xff]  ;;  %v535_v32 = vld [vmem:[#allocation2 + $0xd9] sm:$0xff]  ;;  %497 = vst.msk [vmem:[#allocation3 + $0x60] sm:$0xff] %vm378_vm0, %v3218_v26 }
  0x34   : > { %496 = vst.msk [vmem:[#allocation3 + $0x58] sm:$0xff] %vm378_vm0, %v3220_v27  ;;  %499 = vst.msk [vmem:[#allocation3 + $0x70] sm:$0xff] %vm378_vm0, %v3222_v28  ;;  %v3230_v33 = vld [vmem:[#allocation2 + $0x98] sm:$0xff]  ;;  %v3232_v34 = vld [vmem:[#allocation2 + $0xc0] sm:$0xff] }
  0x35   : > { %v3234_v35 = vld [vmem:[#allocation2 + $0xb0] sm:$0xff]  ;;  %498 = vst.msk [vmem:[#allocation3 + $0x68] sm:$0xff] %vm378_vm0, %v3230_v33  ;;  %501 = vst.msk [vmem:[#allocation3 + $0x80] sm:$0xff] %vm378_vm0, %v3232_v34  ;;  %v3244_v36 = vld [vmem:[#allocation2 + $0xd8] sm:$0xff] }
  0x36   : > { %500 = vst.msk [vmem:[#allocation3 + $0x78] sm:$0xff] %vm378_vm0, %v3234_v35  ;;  %v3246_v37 = vld [vmem:[#allocation2 + $0xc8] sm:$0xff]  ;;  %v3248_v38 = vld [vmem:[#allocation2 + $0xf0] sm:$0xff]  ;;  %503 = vst.msk [vmem:[#allocation3 + $0x90] sm:$0xff] %vm378_vm0, %v3244_v36 }
  0x37   : > { %599 = vrot.lane.b32.xlu1 %v526_v2, %s2916_s29  ;;  %605 = vrot.lane.b32.xlu0 %v529_v16, %s2916_s29  ;;  %502 = vst.msk [vmem:[#allocation3 + $0x88] sm:$0xff] %vm378_vm0, %v3246_v37  ;;  %505 = vst.msk [vmem:[#allocation3 + $0xa0] sm:$0xff] %vm378_vm0, %v3248_v38  ;;  %v3256_v39 = vld [vmem:[#allocation2 + $0xe0] sm:$0xff]  ;;  %v3258_v40 = vld [vmem:[#allocation2 + $0x108] sm:$0xff] }
  0x38   : > { %v3260_v41 = vld [vmem:[#allocation2 + $0xf8] sm:$0xff]  ;;  %504 = vst.msk [vmem:[#allocation3 + $0x98] sm:$0xff] %vm378_vm0, %v3256_v39  ;;  %507 = vst.msk [vmem:[#allocation3 + $0xb0] sm:$0xff] %vm378_vm0, %v3258_v40  ;;  %v3268_v42 = vld [vmem:[#allocation2 + $0x120] sm:$0xff] }
  0x39   : > { %506 = vst.msk [vmem:[#allocation3 + $0xa8] sm:$0xff] %vm378_vm0, %v3260_v41  ;;  %509 = vst.msk [vmem:[#allocation3 + $0xc0] sm:$0xff] %vm378_vm0, %v3268_v42  ;;  %v3274_v43 = vld [vmem:[#allocation2 + $0x110] sm:$0xff]  ;;  %v479_v46 = vld [vmem:[#allocation2 + $0x138] sm:$0xff] }
  0x3a   : > { %v534_v44 = vld [vmem:[#allocation2 + $0xc9] sm:$0xff]  ;;  %v537_v45 = vld [vmem:[#allocation2 + $0xf1] sm:$0xff]  ;;  %508 = vst.msk [vmem:[#allocation3 + $0xb8] sm:$0xff] %vm378_vm0, %v3274_v43  ;;  %511 = vst.msk [vmem:[#allocation3 + $0xd0] sm:$0xff] %vm378_vm0, %v479_v46 }
  0x3b   : > { %603 = vrot.lane.b32.xlu1 %v528_v21, %s2916_s29  ;;  %609 = vrot.lane.b32.xlu0 %v531_v22, %s2916_s29  ;;  %v3281_v47 = vld [vmem:[#allocation2 + $0x128] sm:$0xff]  ;;  %v481_v51 = vld [vmem:[#allocation2 + $0x150] sm:$0xff]  ;;  %v480_v56 = vld [vmem:[#allocation2 + $0x140] sm:$0xff] }
  0x3c   : > { %v536_v49 = vld [vmem:[#allocation2 + $0xe1] sm:$0xff]  ;;  %v539_v50 = vld [vmem:[#allocation2 + $0x109] sm:$0xff]  ;;  %510 = vst.msk [vmem:[#allocation3 + $0xc8] sm:$0xff] %vm378_vm0, %v3281_v47  ;;  %513 = vst.msk [vmem:[#allocation3 + $0xe0] sm:$0xff] %vm378_vm0, %v481_v51 }
  0x3d   : > { %v538_v57 = vld [vmem:[#allocation2 + $0xf9] sm:$0xff]  ;;  %v541_v58 = vld [vmem:[#allocation2 + $0x121] sm:$0xff]  ;;  %512 = vst.msk [vmem:[#allocation3 + $0xd8] sm:$0xff] %vm378_vm0, %v480_v56  ;;  %v540_v61 = vld [vmem:[#allocation2 + $0x111] sm:$0xff] }
  0x3e   : > { %v483_v59 = vld [vmem:[#allocation2 + $0x168] sm:$0xff]  ;;  %v482_v60 = vld [vmem:[#allocation2 + $0x158] sm:$0xff]  ;;  %v484_v63 = vld [vmem:[#allocation2 + $0x170] sm:$0xff] }
  0x3f   : > { %607 = vrot.lane.b32.xlu1 %v530_v23, %s2916_s29  ;;  %613 = vrot.lane.b32.xlu0 %v533_v24, %s2916_s29  ;;  %515 = vst.msk [vmem:[#allocation3 + $0xf0] sm:$0xff] %vm378_vm0, %v483_v59  ;;  %v543_v62 = vld [vmem:[#allocation2 + $0x139] sm:$0xff]  ;;  %514 = vst.msk [vmem:[#allocation3 + $0xe8] sm:$0xff] %vm378_vm0, %v482_v60  ;;  %v542_v0 = vld [vmem:[#allocation2 + $0x129] sm:$0xff] }
  0x40   : > { %v545_v3 = vld [vmem:[#allocation2 + $0x151] sm:$0xff]  ;;  %516 = vst.msk [vmem:[#allocation3 + $0xf8] sm:$0xff] %vm378_vm0, %v484_v63  ;;  %v544_v4 = vld [vmem:[#allocation2 + $0x141] sm:$0xff]  ;;  %v547_v5 = vld [vmem:[#allocation2 + $0x169] sm:$0xff] }
  0x41   : > { %v546_v6 = vld [vmem:[#allocation2 + $0x159] sm:$0xff]  ;;  %v710_v7 = vld [vmem:[#allocation2 + $0x2] sm:$0xff]  ;;  %v548_v8 = vld [vmem:[#allocation2 + $0x171] sm:$0xff] }
  0x42   : > { %v3302_v9 = vld [vmem:[#allocation2 + $0x1a] sm:$0xff]  ;;  %v711_v10 = vld [vmem:[#allocation2 + $0xa] sm:$0xff]  ;;  %v3307_v11 = vld [vmem:[#allocation2 + $0x32] sm:$0xff] }
  0x43   : > { %611 = vrot.lane.b32.xlu1 %v532_v31, %s2916_s29  ;;  %617 = vrot.lane.b32.xlu0 %v535_v32, %s2916_s29  ;;  %v3312_v12 = vld [vmem:[#allocation2 + $0x22] sm:$0xff]  ;;  %v3314_v13 = vld [vmem:[#allocation2 + $0x4a] sm:$0xff]  ;;  %v3320_v2 = vld [vmem:[#allocation2 + $0x3a] sm:$0xff] }
  0x44   : > { %v3322_v16 = vld [vmem:[#allocation2 + $0x62] sm:$0xff]  ;;  %v3328_v21 = vld [vmem:[#allocation2 + $0x52] sm:$0xff]  ;;  %v3330_v22 = vld [vmem:[#allocation2 + $0x7a] sm:$0xff] }
  0x45   : > { %v3336_v23 = vld [vmem:[#allocation2 + $0x6a] sm:$0xff]  ;;  %v3338_v24 = vld [vmem:[#allocation2 + $0x92] sm:$0xff]  ;;  %v3344_v31 = vld [vmem:[#allocation2 + $0x82] sm:$0xff] }
  0x46   : > { %v3346_v32 = vld [vmem:[#allocation2 + $0xaa] sm:$0xff]  ;;  %v3360_v46 = vld [vmem:[#allocation2 + $0xb2] sm:$0xff]  ;;  %v729_v56 = vld [vmem:[#allocation2 + $0xe2] sm:$0xff] }
  0x47   : > { %615 = vrot.lane.b32.xlu1 %v534_v44, %s2916_s29  ;;  %621 = vrot.lane.b32.xlu0 %v537_v45, %s2916_s29  ;;  %v3352_v44 = vld [vmem:[#allocation2 + $0x9a] sm:$0xff]  ;;  %v3354_v45 = vld [vmem:[#allocation2 + $0xc2] sm:$0xff]  ;;  %v730_v51 = vld [vmem:[#allocation2 + $0xf2] sm:$0xff] }
  0x48   : > { %v734_v59 = vld [vmem:[#allocation2 + $0x122] sm:$0xff] }
  0x4b   : > { %619 = vrot.lane.b32.xlu1 %v536_v49, %s2916_s29  ;;  %625 = vrot.lane.b32.xlu0 %v539_v50, %s2916_s29  ;;  %v728_v49 = vld [vmem:[#allocation2 + $0xda] sm:$0xff]  ;;  %v3365_v50 = vld [vmem:[#allocation2 + $0xca] sm:$0xff] }
  0x4f   : > { %623 = vrot.lane.b32.xlu1 %v538_v57, %s2916_s29  ;;  %629 = vrot.lane.b32.xlu0 %v541_v58, %s2916_s29  ;;  %v732_v57 = vld [vmem:[#allocation2 + $0x10a] sm:$0xff]  ;;  %v731_v58 = vld [vmem:[#allocation2 + $0xfa] sm:$0xff] }
  0x53   : > { %627 = vrot.lane.b32.xlu1 %v540_v61, %s2916_s29  ;;  %633 = vrot.lane.b32.xlu0 %v543_v62, %s2916_s29  ;;  %v733_v61 = vld [vmem:[#allocation2 + $0x112] sm:$0xff]  ;;  %v736_v62 = vld [vmem:[#allocation2 + $0x13a] sm:$0xff] }
  0x57   : > { %631 = vrot.lane.b32.xlu1 %v542_v0, %s2916_s29  ;;  %637 = vrot.lane.b32.xlu0 %v545_v3, %s2916_s29  ;;  %v735_v0 = vld [vmem:[#allocation2 + $0x12a] sm:$0xff]  ;;  %v738_v3 = vld [vmem:[#allocation2 + $0x152] sm:$0xff] }
  0x5b   : > { %635 = vrot.lane.b32.xlu1 %v544_v4, %s2916_s29  ;;  %641 = vrot.lane.b32.xlu0 %v547_v5, %s2916_s29  ;;  %v737_v4 = vld [vmem:[#allocation2 + $0x142] sm:$0xff]  ;;  %v740_v5 = vld [vmem:[#allocation2 + $0x16a] sm:$0xff] }
  0x5f   : > { %639 = vrot.lane.b32.xlu1 %v546_v6, %s2916_s29  ;;  %774 = vrot.lane.b32.xlu0 %v710_v7, %s2917_s30 }
  0x63   : > { %643 = vrot.lane.b32.xlu1 %v548_v8, %s2916_s29  ;;  %778 = vrot.lane.b32.xlu0 %v3302_v9, %s2917_s30  ;;  %v739_v8 = vld [vmem:[#allocation2 + $0x15a] sm:$0xff] }
  0x67   : > { %776 = vrot.lane.b32.xlu1 %v711_v10, %s2917_s30  ;;  %782 = vrot.lane.b32.xlu0 %v3307_v11, %s2917_s30 }
  0x6b   : > { %780 = vrot.lane.b32.xlu1 %v3312_v12, %s2917_s30  ;;  %786 = vrot.lane.b32.xlu0 %v3314_v13, %s2917_s30 }
  0x6f   : > { %784 = vrot.lane.b32.xlu1 %v3320_v2, %s2917_s30  ;;  %790 = vrot.lane.b32.xlu0 %v3322_v16, %s2917_s30 }
  0x73   : > { %788 = vrot.lane.b32.xlu1 %v3328_v21, %s2917_s30  ;;  %794 = vrot.lane.b32.xlu0 %v3330_v22, %s2917_s30 }
  0x77   : > { %792 = vrot.lane.b32.xlu1 %v3336_v23, %s2917_s30  ;;  %798 = vrot.lane.b32.xlu0 %v3338_v24, %s2917_s30 }
  0x7b   : > { %796 = vrot.lane.b32.xlu1 %v3344_v31, %s2917_s30  ;;  %802 = vrot.lane.b32.xlu0 %v3346_v32, %s2917_s30 }
  0x7f   : > { %800 = vrot.lane.b32.xlu1 %v3352_v44, %s2917_s30  ;;  %806 = vrot.lane.b32.xlu0 %v3354_v45, %s2917_s30 }
  0x83   : > { %804 = vrot.lane.b32.xlu1 %v3360_v46, %s2917_s30  ;;  %810 = vrot.lane.b32.xlu0 %v728_v49, %s2917_s30 }
  0x86   : > { %v582_v60 = vpop.permute.xlu0 %581 }
  0x87   : > { %808 = vrot.lane.b32.xlu1 %v3365_v50, %s2917_s30  ;;  %814 = vrot.lane.b32.xlu0 %v730_v51, %s2917_s30  ;;  %678 = vst.msk [vmem:[#allocation3] sm:$0xff] %vm677_vm3, %v582_v60  ;;  %v741_v51 = vld [vmem:[#allocation2 + $0x172] sm:$0xff] }
  0x8a   : > { %v584_v63 = vpop.permute.xlu0 %583 }
  0x8b   : > { %812 = vrot.lane.b32.xlu1 %v729_v56, %s2917_s30  ;;  %818 = vrot.lane.b32.xlu0 %v732_v57, %s2917_s30  ;;  %679 = vst.msk [vmem:[#allocation3 + $0x8] sm:$0xff] %vm677_vm3, %v584_v63 }
  0x8f   : > { %816 = vrot.lane.b32.xlu1 %v731_v58, %s2917_s30  ;;  %822 = vrot.lane.b32.xlu0 %v734_v59, %s2917_s30 }
  0x93   : > { %820 = vrot.lane.b32.xlu1 %v733_v61, %s2917_s30  ;;  %826 = vrot.lane.b32.xlu0 %v736_v62, %s2917_s30 }
  0x97   : > { %824 = vrot.lane.b32.xlu1 %v735_v0, %s2917_s30  ;;  %830 = vrot.lane.b32.xlu0 %v738_v3, %s2917_s30 }
  0x99   : > { %v586_v6 = vpop.permute.xlu1 %585  ;;  %v590_v7 = vpop.permute.xlu0 %589 }
  0x9a   : > { %680 = vst.msk [vmem:[#allocation3 + $0x10] sm:$0xff] %vm677_vm3, %v586_v6  ;;  %682 = vst.msk [vmem:[#allocation3 + $0x20] sm:$0xff] %vm677_vm3, %v590_v7 }
  0x9b   : > { %828 = vrot.lane.b32.xlu1 %v737_v4, %s2917_s30  ;;  %834 = vrot.lane.b32.xlu0 %v740_v5, %s2917_s30 }
  0x9d   : > { %v588_v10 = vpop.permute.xlu1 %587  ;;  %v594_v49 = vpop.permute.xlu0 %593 }
  0x9e   : > { %681 = vst.msk [vmem:[#allocation3 + $0x18] sm:$0xff] %vm677_vm3, %v588_v10  ;;  %684 = vst.msk [vmem:[#allocation3 + $0x30] sm:$0xff] %vm677_vm3, %v594_v49 }
  0x9f   : > { %832 = vrot.lane.b32.xlu1 %v739_v8, %s2917_s30  ;;  %967 = vrot.lane.b32.xlu0 %v3137_v48, %s2918_s6 }
  0xa1   : > { %v592_v56 = vpop.permute.xlu1 %591  ;;  %v598_v57 = vpop.permute.xlu0 %597 }
  0xa2   : > { %683 = vst.msk [vmem:[#allocation3 + $0x28] sm:$0xff] %vm677_vm3, %v592_v56  ;;  %686 = vst.msk [vmem:[#allocation3 + $0x40] sm:$0xff] %vm677_vm3, %v598_v57 }
  0xa3   : > { %836 = vrot.lane.b32.xlu1 %v741_v51, %s2917_s30  ;;  %971 = vrot.lane.b32.xlu0 %v3151_v52, %s2918_s6 }
  0xa5   : > { %v596_v58 = vpop.permute.xlu1 %595  ;;  %v602_v59 = vpop.permute.xlu0 %601 }
  0xa6   : > { %685 = vst.msk [vmem:[#allocation3 + $0x38] sm:$0xff] %vm677_vm3, %v596_v58  ;;  %688 = vst.msk [vmem:[#allocation3 + $0x50] sm:$0xff] %vm677_vm3, %v602_v59  ;;  %v2102_v58 = vld [vmem:[%s4128_s3 + $0x40] sm:$0xff] }
  0xa7   : > { %969 = vrot.lane.b32.xlu1 %v3153_v53, %s2918_s6  ;;  %975 = vrot.lane.b32.xlu0 %v3155_v54, %s2918_s6 }
  0xa8   : > { %2804 = vmatprep.subr.mxu0 %v2102_v58  ;;  %2870 = vmatprep.subr.mxu1 %v2102_v58 }
  0xa9   : > { %v600_v48 = vpop.permute.xlu1 %599  ;;  %v606_v60 = vpop.permute.xlu0 %605  ;;  %2805 = vmatpush3.msra.mxu0 %v2102_v58  ;;  %2879 = vmatpush3.msra.mxu1 %v2102_v58 }
  0xaa   : > { %687 = vst.msk [vmem:[#allocation3 + $0x48] sm:$0xff] %vm677_vm3, %v600_v48  ;;  %690 = vst.msk [vmem:[#allocation3 + $0x60] sm:$0xff] %vm677_vm3, %v606_v60  ;;  %v2101_v48 = vld [vmem:[%s4128_s3 + $0x38] sm:$0xff] }
  0xab   : > { %973 = vrot.lane.b32.xlu1 %v3187_v14, %s2918_s6  ;;  %979 = vrot.lane.b32.xlu0 %v3189_v15, %s2918_s6 }
  0xac   : > { %2806 = vmatprep.subr.mxu0 %v2101_v48  ;;  %2871 = vmatprep.subr.mxu1 %v2101_v48 }
  0xad   : > { %v604_v61 = vpop.permute.xlu1 %603  ;;  %v610_v62 = vpop.permute.xlu0 %609  ;;  %2807 = vmatpush3.msra.mxu0 %v2101_v48  ;;  %2880 = vmatpush3.msra.mxu1 %v2101_v48 }
  0xae   : > { %689 = vst.msk [vmem:[#allocation3 + $0x58] sm:$0xff] %vm677_vm3, %v604_v61  ;;  %692 = vst.msk [vmem:[#allocation3 + $0x70] sm:$0xff] %vm677_vm3, %v610_v62 }
  0xaf   : > { %977 = vrot.lane.b32.xlu1 %v3204_v17, %s2918_s6  ;;  %983 = vrot.lane.b32.xlu0 %v3206_v20, %s2918_s6 }
  0xb1   : > { %v608_v53 = vpop.permute.xlu1 %607  ;;  %v614_v63 = vpop.permute.xlu0 %613 }
  0xb2   : > { %691 = vst.msk [vmem:[#allocation3 + $0x68] sm:$0xff] %vm677_vm3, %v608_v53  ;;  %694 = vst.msk [vmem:[#allocation3 + $0x80] sm:$0xff] %vm677_vm3, %v614_v63  ;;  %v2098_v53 = vld [vmem:[%s4128_s3 + $0x20] sm:$0xff] }
  0xb3   : > { %981 = vrot.lane.b32.xlu1 %v3214_v25, %s2918_s6  ;;  %987 = vrot.lane.b32.xlu0 %v3218_v26, %s2918_s6 }
  0xb5   : > { %v612_v0 = vpop.permute.xlu1 %611  ;;  %v618_v3 = vpop.permute.xlu0 %617 }
  0xb6   : > { %693 = vst.msk [vmem:[#allocation3 + $0x78] sm:$0xff] %vm677_vm3, %v612_v0  ;;  %696 = vst.msk [vmem:[#allocation3 + $0x90] sm:$0xff] %vm677_vm3, %v618_v3 }
  0xb7   : > { %985 = vrot.lane.b32.xlu1 %v3220_v27, %s2918_s6  ;;  %991 = vrot.lane.b32.xlu0 %v3222_v28, %s2918_s6 }
  0xb9   : > { %v616_v4 = vpop.permute.xlu1 %615  ;;  %v622_v5 = vpop.permute.xlu0 %621 }
  0xba   : > { %695 = vst.msk [vmem:[#allocation3 + $0x88] sm:$0xff] %vm677_vm3, %v616_v4  ;;  %698 = vst.msk [vmem:[#allocation3 + $0xa0] sm:$0xff] %vm677_vm3, %v622_v5  ;;  %v2095_v5 = vld [vmem:[%s4128_s3 + $0x8] sm:$0xff] }
  0xbb   : > { %989 = vrot.lane.b32.xlu1 %v3230_v33, %s2918_s6  ;;  %995 = vrot.lane.b32.xlu0 %v3232_v34, %s2918_s6 }
  0xbd   : > { %v620_v6 = vpop.permute.xlu1 %619  ;;  %v626_v7 = vpop.permute.xlu0 %625 }
  0xbe   : > { %697 = vst.msk [vmem:[#allocation3 + $0x98] sm:$0xff] %vm677_vm3, %v620_v6  ;;  %700 = vst.msk [vmem:[#allocation3 + $0xb0] sm:$0xff] %vm677_vm3, %v626_v7 }
  0xbf   : > { %993 = vrot.lane.b32.xlu1 %v3234_v35, %s2918_s6  ;;  %999 = vrot.lane.b32.xlu0 %v3244_v36, %s2918_s6 }
  0xc1   : > { %v624_v8 = vpop.permute.xlu1 %623  ;;  %v630_v10 = vpop.permute.xlu0 %629 }
  0xc2   : > { %699 = vst.msk [vmem:[#allocation3 + $0xa8] sm:$0xff] %vm677_vm3, %v624_v8  ;;  %702 = vst.msk [vmem:[#allocation3 + $0xc0] sm:$0xff] %vm677_vm3, %v630_v10 }
  0xc3   : > { %997 = vrot.lane.b32.xlu1 %v3246_v37, %s2918_s6  ;;  %1003 = vrot.lane.b32.xlu0 %v3248_v38, %s2918_s6 }
  0xc5   : > { %v628_v49 = vpop.permute.xlu1 %627  ;;  %v634_v51 = vpop.permute.xlu0 %633 }
  0xc6   : > { %701 = vst.msk [vmem:[#allocation3 + $0xb8] sm:$0xff] %vm677_vm3, %v628_v49  ;;  %704 = vst.msk [vmem:[#allocation3 + $0xd0] sm:$0xff] %vm677_vm3, %v634_v51 }
  0xc7   : > { %1001 = vrot.lane.b32.xlu1 %v3256_v39, %s2918_s6  ;;  %1160 = vrot.lane.b32.xlu0 %v3101_v18, %s2919_s7 }
  0xc9   : > { %v632_v56 = vpop.permute.xlu1 %631  ;;  %v638_v57 = vpop.permute.xlu0 %637 }
  0xca   : > { %703 = vst.msk [vmem:[#allocation3 + $0xc8] sm:$0xff] %vm677_vm3, %v632_v56  ;;  %706 = vst.msk [vmem:[#allocation3 + $0xe0] sm:$0xff] %vm677_vm3, %v638_v57 }
  0xcb   : > { %1005 = vrot.lane.b32.xlu1 %v3260_v41, %s2918_s6  ;;  %1353 = vrot.lane.b32.xlu0 %v3302_v9, %s2920_s8  ;;  %v2100_v9 = vld [vmem:[%s4128_s3 + $0x30] sm:$0xff] }
  0xcc   : > { %2808 = vmatprep.subr.mxu0 %v2100_v9  ;;  %2872 = vmatprep.subr.mxu1 %v2100_v9 }
  0xcd   : > { %v636_v18 = vpop.permute.xlu1 %635  ;;  %v642_v59 = vpop.permute.xlu0 %641  ;;  %2809 = vmatpush3.msra.mxu0 %v2100_v9  ;;  %2881 = vmatpush3.msra.mxu1 %v2100_v9 }
  0xce   : > { %705 = vst.msk [vmem:[#allocation3 + $0xd8] sm:$0xff] %vm677_vm3, %v636_v18  ;;  %708 = vst.msk [vmem:[#allocation3 + $0xf0] sm:$0xff] %vm677_vm3, %v642_v59  ;;  %v1681_v18 = vld [vmem:[#allocation2 + $0x69] sm:$0xff] }
  0xcf   : > { %1162 = vrot.lane.b32.xlu1 %v3121_v29, %s2919_s7  ;;  %1547 = vrot.lane.b32.xlu0 %v3151_v52, %s2921_s13  ;;  %v2099_v29 = vld [vmem:[%s4128_s3 + $0x28] sm:$0xff] }
  0xd0   : > { %2810 = vmatprep.subr.mxu0 %v2099_v29  ;;  %2873 = vmatprep.subr.mxu1 %v2099_v29 }
  0xd1   : > { %v640_v60 = vpop.permute.xlu1 %639  ;;  %v775_v61 = vpop.permute.xlu0 %774  ;;  %2811 = vmatpush3.msra.mxu0 %v2099_v29  ;;  %2882 = vmatpush3.msra.mxu1 %v2099_v29 }
  0xd2   : > { %707 = vst.msk [vmem:[#allocation3 + $0xe8] sm:$0xff] %vm677_vm3, %v640_v60  ;;  %2812 = vmatprep.subr.mxu0 %v2098_v53  ;;  %2874 = vmatprep.subr.mxu1 %v2098_v53 }
  0xd3   : > { %871 = vst.msk [vmem:[#allocation3] sm:$0xff] %vm870_vm4, %v775_v61  ;;  %1355 = vrot.lane.b32.xlu1 %v3312_v12, %s2920_s8  ;;  %1740 = vrot.lane.b32.xlu0 %v3103_v19, %s2922_s20  ;;  %v2097_v12 = vld [vmem:[%s4128_s3 + $0x18] sm:$0xff] }
  0xd4   : > { %2813 = vmatpush3.msra.mxu0 %v2098_v53  ;;  %2883 = vmatpush3.msra.mxu1 %v2098_v53  ;;  %v1682_v61 = vld [vmem:[#allocation2 + $0x79] sm:$0xff] }
  0xd5   : > { %v644_v52 = vpop.permute.xlu1 %643  ;;  %v779_v62 = vpop.permute.xlu0 %778  ;;  %2814 = vmatprep.subr.mxu0 %v2097_v12  ;;  %2875 = vmatprep.subr.mxu1 %v2097_v12 }
  0xd6   : > { %709 = vst.msk [vmem:[#allocation3 + $0xf8] sm:$0xff] %vm677_vm3, %v644_v52  ;;  %2815 = vmatpush3.msra.mxu0 %v2097_v12  ;;  %2884 = vmatpush3.msra.mxu1 %v2097_v12 }
  0xd7   : > { %873 = vst.msk [vmem:[#allocation3 + $0x10] sm:$0xff] %vm870_vm4, %v779_v62  ;;  %1549 = vrot.lane.b32.xlu1 %v3187_v14, %s2921_s13  ;;  %1742 = vrot.lane.b32.xlu0 %v3157_v55, %s2922_s20  ;;  %v2096_v14 = vld [vmem:[%s4128_s3 + $0x10] sm:$0xff]  ;;  %v1683_v62 = vld [vmem:[#allocation2 + $0x81] sm:$0xff] }
  0xd8   : > { %2816 = vmatprep.subr.mxu0 %v2096_v14  ;;  %2876 = vmatprep.subr.mxu1 %v2096_v14 }
  0xd9   : > { %v777_v63 = vpop.permute.xlu1 %776  ;;  %v783_v0 = vpop.permute.xlu0 %782  ;;  %2817 = vmatpush3.msra.mxu0 %v2096_v14  ;;  %2885 = vmatpush3.msra.mxu1 %v2096_v14  ;;  %v1684_v14 = vld [vmem:[#allocation2 + $0x91] sm:$0xff] }
  0xda   : > { %872 = vst.msk [vmem:[#allocation3 + $0x8] sm:$0xff] %vm870_vm4, %v777_v63  ;;  %875 = vst.msk [vmem:[#allocation3 + $0x20] sm:$0xff] %vm870_vm4, %v783_v0  ;;  %2818 = vmatprep.subr.mxu0 %v2095_v5  ;;  %2877 = vmatprep.subr.mxu1 %v2095_v5 }
  0xdb   : > { %1164 = vrot.lane.b32.xlu1 %v3103_v19, %s2919_s7  ;;  %1166 = vrot.lane.b32.xlu0 %v3157_v55, %s2919_s7  ;;  %v2094_v19 = vld [vmem:[%s4128_s3] sm:$0xff] }
  0xdc   : > { %2819 = vmatpush3.msra.mxu0 %v2095_v5  ;;  %2886 = vmatpush3.msra.mxu1 %v2095_v5  ;;  %v1685_v5 = vld [vmem:[#allocation2 + $0x99] sm:$0xff] }
  0xdd   : > { %v781_v3 = vpop.permute.xlu1 %780  ;;  %v787_v4 = vpop.permute.xlu0 %786  ;;  %2820 = vmatprep.subr.mxu0 %v2094_v19  ;;  %2878 = vmatprep.subr.mxu1 %v2094_v19 }
  0xde   : > { %874 = vst.msk [vmem:[#allocation3 + $0x18] sm:$0xff] %vm870_vm4, %v781_v3  ;;  %877 = vst.msk [vmem:[#allocation3 + $0x30] sm:$0xff] %vm870_vm4, %v787_v4  ;;  %2821 = vmatpush3.msra.mxu0 %v2094_v19  ;;  %2887 = vmatpush3.msra.mxu1 %v2094_v19 }
  0xdf   : > { %1933 = vrot.lane.b32.xlu1 %v3307_v11, %s2923_s9  ;;  %1935 = vrot.lane.b32.xlu0 %v3320_v2, %s2923_s9 }
  0xe1   : > { %v785_v55 = vpop.permute.xlu1 %784  ;;  %v791_v6 = vpop.permute.xlu0 %790 }
  0xe2   : > { %876 = vst.msk [vmem:[#allocation3 + $0x28] sm:$0xff] %vm870_vm4, %v785_v55  ;;  %879 = vst.msk [vmem:[#allocation3 + $0x40] sm:$0xff] %vm870_vm4, %v791_v6 }
  0xe3   : > { %1357 = vrot.lane.b32.xlu1 %v3307_v11, %s2920_s8  ;;  %1551 = vrot.lane.b32.xlu0 %v3155_v54, %s2921_s13  ;;  %v1100_v54 = vld [vmem:[#allocation2 + $0x49] sm:$0xff] }
  0xe5   : > { %v789_v7 = vpop.permute.xlu1 %788  ;;  %v795_v8 = vpop.permute.xlu0 %794 }
  0xe6   : > { %878 = vst.msk [vmem:[#allocation3 + $0x38] sm:$0xff] %vm870_vm4, %v789_v7  ;;  %881 = vst.msk [vmem:[#allocation3 + $0x50] sm:$0xff] %vm870_vm4, %v795_v8  ;;  %v1686_v8 = vld [vmem:[#allocation2 + $0xa9] sm:$0xff] }
  0xe7   : > { %1359 = vrot.lane.b32.xlu1 %v3320_v2, %s2920_s8  ;;  %1744 = vrot.lane.b32.xlu0 %v3123_v30, %s2922_s20 }
  0xe9   : > { %v793_v10 = vpop.permute.xlu1 %792  ;;  %v799_v49 = vpop.permute.xlu0 %798 }
  0xea   : > { %880 = vst.msk [vmem:[#allocation3 + $0x48] sm:$0xff] %vm870_vm4, %v793_v10  ;;  %883 = vst.msk [vmem:[#allocation3 + $0x60] sm:$0xff] %vm870_vm4, %v799_v49 }
  0xeb   : > { %1553 = vrot.lane.b32.xlu1 %v3204_v17, %s2921_s13  ;;  %1746 = vrot.lane.b32.xlu0 %v3183_v1, %s2922_s20 }
  0xed   : > { %v797_v11 = vpop.permute.xlu1 %796  ;;  %v803_v51 = vpop.permute.xlu0 %802 }
  0xee   : > { %882 = vst.msk [vmem:[#allocation3 + $0x58] sm:$0xff] %vm870_vm4, %v797_v11  ;;  %885 = vst.msk [vmem:[#allocation3 + $0x70] sm:$0xff] %vm870_vm4, %v803_v51 }
  0xef   : > { %1168 = vrot.lane.b32.xlu1 %v1100_v54, %s2919_s7  ;;  %1170 = vrot.lane.b32.xlu0 %v3183_v1, %s2919_s7  ;;  %v1680_v1 = vld [vmem:[#allocation2 + $0x61] sm:$0xff]  ;;  %v1687_v54 = vld [vmem:[#allocation2 + $0xb1] sm:$0xff] }
  0xf1   : > { %v801_v30 = vpop.permute.xlu1 %800  ;;  %v807_v2 = vpop.permute.xlu0 %806 }
  0xf2   : > { %884 = vst.msk [vmem:[#allocation3 + $0x68] sm:$0xff] %vm870_vm4, %v801_v30  ;;  %887 = vst.msk [vmem:[#allocation3 + $0x80] sm:$0xff] %vm870_vm4, %v807_v2 }
  0xf3   : > { %1937 = vrot.lane.b32.xlu1 %v3314_v13, %s2923_s9  ;;  %1939 = vrot.lane.b32.xlu0 %v3328_v21, %s2923_s9 }
  0xf5   : > { %v805_v17 = vpop.permute.xlu1 %804  ;;  %v811_v56 = vpop.permute.xlu0 %810 }
  0xf6   : > { %886 = vst.msk [vmem:[#allocation3 + $0x78] sm:$0xff] %vm870_vm4, %v805_v17  ;;  %889 = vst.msk [vmem:[#allocation3 + $0x90] sm:$0xff] %vm870_vm4, %v811_v56  ;;  %v1688_v17 = vld [vmem:[#allocation2 + $0xc1] sm:$0xff] }
  0xf7   : > { %1361 = vrot.lane.b32.xlu1 %v3314_v13, %s2920_s8  ;;  %1555 = vrot.lane.b32.xlu0 %v3189_v15, %s2921_s13 }
  0xf9   : > { %v809_v57 = vpop.permute.xlu1 %808  ;;  %v815_v58 = vpop.permute.xlu0 %814 }
  0xfa   : > { %888 = vst.msk [vmem:[#allocation3 + $0x88] sm:$0xff] %vm870_vm4, %v809_v57  ;;  %891 = vst.msk [vmem:[#allocation3 + $0xa0] sm:$0xff] %vm870_vm4, %v815_v58  ;;  %v1689_v57 = vld [vmem:[#allocation2 + $0xc9] sm:$0xff] }
  0xfb   : > { %1363 = vrot.lane.b32.xlu1 %v3328_v21, %s2920_s8  ;;  %1748 = vrot.lane.b32.xlu0 %v1680_v1, %s2922_s20 }
  0xfd   : > { %v813_v59 = vpop.permute.xlu1 %812  ;;  %v819_v48 = vpop.permute.xlu0 %818 }
  0xfe   : > { %890 = vst.msk [vmem:[#allocation3 + $0x98] sm:$0xff] %vm870_vm4, %v813_v59  ;;  %893 = vst.msk [vmem:[#allocation3 + $0xb0] sm:$0xff] %vm870_vm4, %v819_v48 }
  0xff   : > { %1557 = vrot.lane.b32.xlu1 %v3214_v25, %s2921_s13  ;;  %1750 = vrot.lane.b32.xlu0 %v1681_v18, %s2922_s20 }
 0x101   : > { %v817_v15 = vpop.permute.xlu1 %816  ;;  %v823_v13 = vpop.permute.xlu0 %822 }
 0x102   : > { %892 = vst.msk [vmem:[#allocation3 + $0xa8] sm:$0xff] %vm870_vm4, %v817_v15  ;;  %895 = vst.msk [vmem:[#allocation3 + $0xc0] sm:$0xff] %vm870_vm4, %v823_v13 }
 0x103   : > { %1172 = vrot.lane.b32.xlu1 %v1680_v1, %s2919_s7  ;;  %1174 = vrot.lane.b32.xlu0 %v1681_v18, %s2919_s7 }
 0x105   : > { %v821_v21 = vpop.permute.xlu1 %820  ;;  %v827_v9 = vpop.permute.xlu0 %826 }
 0x106   : > { %894 = vst.msk [vmem:[#allocation3 + $0xb8] sm:$0xff] %vm870_vm4, %v821_v21  ;;  %897 = vst.msk [vmem:[#allocation3 + $0xd0] sm:$0xff] %vm870_vm4, %v827_v9 }
 0x107   : > { %1941 = vrot.lane.b32.xlu1 %v3322_v16, %s2923_s9  ;;  %1943 = vrot.lane.b32.xlu0 %v3336_v23, %s2923_s9 }
 0x109   : > { %v825_v25 = vpop.permute.xlu1 %824  ;;  %v831_v60 = vpop.permute.xlu0 %830 }
 0x10a   : > { %896 = vst.msk [vmem:[#allocation3 + $0xc8] sm:$0xff] %vm870_vm4, %v825_v25  ;;  %899 = vst.msk [vmem:[#allocation3 + $0xe0] sm:$0xff] %vm870_vm4, %v831_v60  ;;  %v1691_v60 = vld [vmem:[#allocation2 + $0xe1] sm:$0xff] }
 0x10b   : > { %1365 = vrot.lane.b32.xlu1 %v3322_v16, %s2920_s8  ;;  %1559 = vrot.lane.b32.xlu0 %v3206_v20, %s2921_s13 }
 0x10d   : > { %v829_v29 = vpop.permute.xlu1 %828  ;;  %v835_v52 = vpop.permute.xlu0 %834 }
 0x10e   : > { %898 = vst.msk [vmem:[#allocation3 + $0xd8] sm:$0xff] %vm870_vm4, %v829_v29  ;;  %901 = vst.msk [vmem:[#allocation3 + $0xf0] sm:$0xff] %vm870_vm4, %v835_v52 }
 0x10f   : > { %1367 = vrot.lane.b32.xlu1 %v3336_v23, %s2920_s8  ;;  %1752 = vrot.lane.b32.xlu0 %v1682_v61, %s2922_s20 }
 0x111   : > { %v833_v53 = vpop.permute.xlu1 %832  ;;  %v968_v12 = vpop.permute.xlu0 %967 }
 0x112   : > { %900 = vst.msk [vmem:[#allocation3 + $0xe8] sm:$0xff] %vm870_vm4, %v833_v53  ;;  %v1884_v53 = vld [vmem:[#allocation2 + $0xe2] sm:$0xff] }
 0x113   : > { %1064 = vst.msk [vmem:[#allocation3] sm:$0xff] %vm1063_vm5, %v968_v12  ;;  %1561 = vrot.lane.b32.xlu1 %v3220_v27, %s2921_s13  ;;  %1754 = vrot.lane.b32.xlu0 %v1683_v62, %s2922_s20 }
 0x115   : > { %v837_v20 = vpop.permute.xlu1 %836  ;;  %v972_v16 = vpop.permute.xlu0 %971 }
 0x116   : > { %902 = vst.msk [vmem:[#allocation3 + $0xf8] sm:$0xff] %vm870_vm4, %v837_v20 }
 0x117   : > { %1066 = vst.msk [vmem:[#allocation3 + $0x10] sm:$0xff] %vm1063_vm5, %v972_v16  ;;  %1176 = vrot.lane.b32.xlu1 %v1682_v61, %s2919_s7  ;;  %1178 = vrot.lane.b32.xlu0 %v1683_v62, %s2919_s7  ;;  %v1883_v62 = vld [vmem:[#allocation2 + $0xda] sm:$0xff] }
 0x119   : > { %v970_v23 = vpop.permute.xlu1 %969  ;;  %v976_v63 = vpop.permute.xlu0 %975 }
 0x11a   : > { %1065 = vst.msk [vmem:[#allocation3 + $0x8] sm:$0xff] %vm1063_vm5, %v970_v23  ;;  %1068 = vst.msk [vmem:[#allocation3 + $0x20] sm:$0xff] %vm1063_vm5, %v976_v63 }
 0x11b   : > { %1945 = vrot.lane.b32.xlu1 %v3330_v22, %s2923_s9  ;;  %1947 = vrot.lane.b32.xlu0 %v3344_v31, %s2923_s9 }
 0x11d   : > { %v974_v27 = vpop.permute.xlu1 %973  ;;  %v980_v0 = vpop.permute.xlu0 %979 }
 0x11e   : > { %1067 = vst.msk [vmem:[#allocation3 + $0x18] sm:$0xff] %vm1063_vm5, %v974_v27  ;;  %1070 = vst.msk [vmem:[#allocation3 + $0x30] sm:$0xff] %vm1063_vm5, %v980_v0  ;;  %v266_v27 = vld [vmem:[%s3021_s26 + $0xf0] sm:$0xff]  ;;  %v2905_v0 = vld [vmem:[%s4126_s1] ss:$0 sm:$0xff] }
 0x11f   : > { %1369 = vrot.lane.b32.xlu1 %v3330_v22, %s2920_s8  ;;  %1563 = vrot.lane.b32.xlu0 %v3218_v26, %s2921_s13 }
 0x121   : > { %v978_v3 = vpop.permute.xlu1 %977  ;;  %v984_v4 = vpop.permute.xlu0 %983 }
 0x122   : > { %1069 = vst.msk [vmem:[#allocation3 + $0x28] sm:$0xff] %vm1063_vm5, %v978_v3  ;;  %1072 = vst.msk [vmem:[#allocation3 + $0x40] sm:$0xff] %vm1063_vm5, %v984_v4  ;;  %v2906_v3 = vld [vmem:[%s4127_s2] ss:$0 sm:$0xff] }
 0x123   : > { %1371 = vrot.lane.b32.xlu1 %v3344_v31, %s2920_s8  ;;  %1756 = vrot.lane.b32.xlu0 %v1684_v14, %s2922_s20 }
 0x125   : > { %v982_v19 = vpop.permute.xlu1 %981  ;;  %v988_v55 = vpop.permute.xlu0 %987 }
 0x126   : > { %1071 = vst.msk [vmem:[#allocation3 + $0x38] sm:$0xff] %vm1063_vm5, %v982_v19  ;;  %1074 = vst.msk [vmem:[#allocation3 + $0x50] sm:$0xff] %vm1063_vm5, %v988_v55  ;;  %v1692_v55 = vld [vmem:[#allocation2 + $0xf1] sm:$0xff] }
 0x127   : > { %1565 = vrot.lane.b32.xlu1 %v3230_v33, %s2921_s13  ;;  %1758 = vrot.lane.b32.xlu0 %v1685_v5, %s2922_s20 }
 0x129   : > { %v986_v26 = vpop.permute.xlu1 %985  ;;  %v992_v22 = vpop.permute.xlu0 %991 }
 0x12a   : > { %1073 = vst.msk [vmem:[#allocation3 + $0x48] sm:$0xff] %vm1063_vm5, %v986_v26  ;;  %1076 = vst.msk [vmem:[#allocation3 + $0x60] sm:$0xff] %vm1063_vm5, %v992_v22  ;;  %v267_v26 = vld [vmem:[%s3021_s26 + $0xf8] sm:$0xff] }
 0x12b   : > { %1180 = vrot.lane.b32.xlu1 %v1684_v14, %s2919_s7  ;;  %1182 = vrot.lane.b32.xlu0 %v1685_v5, %s2919_s7  ;;  %v305_v14 = vmul.f32 %v2905_v0, %v266_v27 }
 0x12d   : > { %v990_v31 = vpop.permute.xlu1 %989  ;;  %v996_v6 = vpop.permute.xlu0 %995  ;;  %v344_v4 = vadd.f32 %v2906_v3, %v305_v14  ;;  %v1506_v14 = vld [vmem:[#allocation2 + $0x140] sm:$0xff] }
 0x12e   : > { %1075 = vst.msk [vmem:[#allocation3 + $0x58] sm:$0xff] %vm1063_vm5, %v990_v31  ;;  %1078 = vst.msk [vmem:[#allocation3 + $0x70] sm:$0xff] %vm1063_vm5, %v996_v6  ;;  %v306_v31 = vmul.f32 %v2905_v0, %v267_v26 }
 0x12f   : > { %1949 = vrot.lane.b32.xlu1 %v3338_v24, %s2923_s9  ;;  %1951 = vrot.lane.b32.xlu0 %v3352_v44, %s2923_s9  ;;  %v376_v22 = vmax.f32 %v344_v4, 0.0 }
 0x131   : > { %v994_v33 = vpop.permute.xlu1 %993  ;;  %v1000_v7 = vpop.permute.xlu0 %999  ;;  %451 = vst.msk [vmem:[#allocation2 + $0x181] sm:$0xff] %vm378_vm0, %v376_v22 }
 0x132   : > { %1077 = vst.msk [vmem:[#allocation3 + $0x68] sm:$0xff] %vm1063_vm5, %v994_v33  ;;  %1080 = vst.msk [vmem:[#allocation3 + $0x80] sm:$0xff] %vm1063_vm5, %v1000_v7  ;;  %v1693_v7 = vld [vmem:[#allocation2 + $0xf9] sm:$0xff] }
 0x133   : > { %1373 = vrot.lane.b32.xlu1 %v3338_v24, %s2920_s8  ;;  %1567 = vrot.lane.b32.xlu0 %v3222_v28, %s2921_s13 }
 0x135   : > { %v998_v10 = vpop.permute.xlu1 %997  ;;  %v1004_v49 = vpop.permute.xlu0 %1003 }
 0x136   : > { %1079 = vst.msk [vmem:[#allocation3 + $0x78] sm:$0xff] %vm1063_vm5, %v998_v10  ;;  %1082 = vst.msk [vmem:[#allocation3 + $0x90] sm:$0xff] %vm1063_vm5, %v1004_v49 }
 0x137   : > { %1375 = vrot.lane.b32.xlu1 %v3352_v44, %s2920_s8  ;;  %1760 = vrot.lane.b32.xlu0 %v1686_v8, %s2922_s20 }
 0x139   : > { %v1002_v11 = vpop.permute.xlu1 %1001  ;;  %v1161_v51 = vpop.permute.xlu0 %1160 }
 0x13a   : > { %1081 = vst.msk [vmem:[#allocation3 + $0x88] sm:$0xff] %vm1063_vm5, %v1002_v11 }
 0x13b   : > { %1257 = vst.msk [vmem:[#allocation3] sm:$0xff] %vm1256_vm6, %v1161_v51  ;;  %1569 = vrot.lane.b32.xlu1 %v3234_v35, %s2921_s13  ;;  %1762 = vrot.lane.b32.xlu0 %v1687_v54, %s2922_s20 }
 0x13d   : > { %v1006_v28 = vpop.permute.xlu1 %1005  ;;  %v1354_v24 = vpop.permute.xlu0 %1353 }
 0x13e   : > { %1083 = vst.msk [vmem:[#allocation3 + $0x98] sm:$0xff] %vm1063_vm5, %v1006_v28  ;;  %v1886_v28 = vld [vmem:[#allocation2 + $0xfa] sm:$0xff] }
 0x13f   : > { %1450 = vst.msk [vmem:[#allocation3] sm:$0xff] %vm1449_vm7, %v1354_v24  ;;  %1184 = vrot.lane.b32.xlu1 %v1686_v8, %s2919_s7  ;;  %1186 = vrot.lane.b32.xlu0 %v1687_v54, %s2919_s7  ;;  %v1885_v54 = vld [vmem:[#allocation2 + $0xf2] sm:$0xff] }
 0x141   : > { %v1163_v44 = vpop.permute.xlu1 %1162  ;;  %v1548_v30 = vpop.permute.xlu0 %1547 }
 0x142   : > { %1258 = vst.msk [vmem:[#allocation3 + $0x8] sm:$0xff] %vm1256_vm6, %v1163_v44 }
 0x143   : > { %1644 = vst.msk [vmem:[#allocation3] sm:$0xff] %vm1643_vm8, %v1548_v30  ;;  %1953 = vrot.lane.b32.xlu1 %v3346_v32, %s2923_s9  ;;  %1955 = vrot.lane.b32.xlu0 %v3360_v46, %s2923_s9 }
 0x145   : > { %v1356_v35 = vpop.permute.xlu1 %1355  ;;  %v1741_v2 = vpop.permute.xlu0 %1740 }
 0x146   : > { %1451 = vst.msk [vmem:[#allocation3 + $0x8] sm:$0xff] %vm1449_vm7, %v1356_v35 }
 0x147   : > { %1837 = vst.msk [vmem:[#allocation3] sm:$0xff] %vm1836_vm9, %v1741_v2  ;;  %1377 = vrot.lane.b32.xlu1 %v3346_v32, %s2920_s8  ;;  %1571 = vrot.lane.b32.xlu0 %v3232_v34, %s2921_s13 }
 0x149   : > { %v1550_v56 = vpop.permute.xlu1 %1549  ;;  %v1743_v1 = vpop.permute.xlu0 %1742 }
 0x14a   : > { %1645 = vst.msk [vmem:[#allocation3 + $0x8] sm:$0xff] %vm1643_vm8, %v1550_v56 }
 0x14b   : > { %1838 = vst.msk [vmem:[#allocation3 + $0x8] sm:$0xff] %vm1836_vm9, %v1743_v1  ;;  %1379 = vrot.lane.b32.xlu1 %v3360_v46, %s2920_s8  ;;  %1764 = vrot.lane.b32.xlu0 %v1688_v17, %s2922_s20  ;;  %v1694_v1 = vld [vmem:[#allocation2 + $0x109] sm:$0xff] }
 0x14d   : > { %v1165_v58 = vpop.permute.xlu1 %1164  ;;  %v1167_v18 = vpop.permute.xlu0 %1166 }
 0x14e   : > { %1259 = vst.msk [vmem:[#allocation3 + $0x10] sm:$0xff] %vm1256_vm6, %v1165_v58  ;;  %1260 = vst.msk [vmem:[#allocation3 + $0x18] sm:$0xff] %vm1256_vm6, %v1167_v18  ;;  %v1695_v18 = vld [vmem:[#allocation2 + $0x111] sm:$0xff] }
 0x14f   : > { %1573 = vrot.lane.b32.xlu1 %v3246_v37, %s2921_s13  ;;  %1766 = vrot.lane.b32.xlu0 %v1689_v57, %s2922_s20  ;;  %v1303_v37 = vld [vmem:[#allocation2 + $0xc2] sm:$0xff] }
 0x151   : > { %v1934_v34 = vpop.permute.xlu1 %1933  ;;  %v1936_v32 = vpop.permute.xlu0 %1935 }
 0x152   : > { %2030 = vst.msk [vmem:[#allocation3] sm:$0xff] %vm2029_vm10, %v1934_v34  ;;  %2031 = vst.msk [vmem:[#allocation3 + $0x8] sm:$0xff] %vm2029_vm10, %v1936_v32 }
 0x153   : > { %1188 = vrot.lane.b32.xlu1 %v1688_v17, %s2919_s7  ;;  %1190 = vrot.lane.b32.xlu0 %v1689_v57, %s2919_s7 }
 0x155   : > { %v1358_v46 = vpop.permute.xlu1 %1357  ;;  %v1552_v59 = vpop.permute.xlu0 %1551 }
 0x156   : > { %1452 = vst.msk [vmem:[#allocation3 + $0x10] sm:$0xff] %vm1449_vm7, %v1358_v46 }
 0x157   : > { %1646 = vst.msk [vmem:[#allocation3 + $0x10] sm:$0xff] %vm1643_vm8, %v1552_v59  ;;  %1957 = vrot.lane.b32.xlu1 %v3354_v45, %s2923_s9  ;;  %1959 = vrot.lane.b32.xlu0 %v3365_v50, %s2923_s9  ;;  %v1304_v45 = vld [vmem:[#allocation2 + $0xca] sm:$0xff]  ;;  %v1690_v50 = vld [vmem:[#allocation2 + $0xd9] sm:$0xff] }
 0x159   : > { %v1360_v48 = vpop.permute.xlu1 %1359  ;;  %v1745_v15 = vpop.permute.xlu0 %1744  ;;  %v2062_v13 = vld [vmem:[#allocation3] sm:$0xff]  ;;  %v2063_v21 = vld [vmem:[#allocation3 + $0x8] sm:$0xff] }
 0x15a   : > { %1453 = vst.msk [vmem:[#allocation3 + $0x18] sm:$0xff] %vm1449_vm7, %v1360_v48  ;;  %2822 = vmatprep.mubr.msk.f32.mxu0 %vm2103_vm11, %v2062_v13  ;;  %v1888_v48 = vld [vmem:[#allocation2 + $0x112] sm:$0xff] }
 0x15b   : > { %1839 = vst.msk [vmem:[#allocation3 + $0x10] sm:$0xff] %vm1836_vm9, %v1745_v15  ;;  %1381 = vrot.lane.b32.xlu1 %v1303_v37, %s2920_s8  ;;  %1575 = vrot.lane.b32.xlu0 %v3244_v36, %s2921_s13 }
 0x15c   : > { %2823 = vmatmul.mubr.msk.f32.vlgmr.msra.gmra.mxu0 %vm2103_vm11, %v2063_v21 }
 0x15d   : > { %v1554_v9 = vpop.permute.xlu1 %1553  ;;  %v1747_v25 = vpop.permute.xlu0 %1746 }
 0x15e   : > { %1647 = vst.msk [vmem:[#allocation3 + $0x18] sm:$0xff] %vm1643_vm8, %v1554_v9 }
 0x15f   : > { %1840 = vst.msk [vmem:[#allocation3 + $0x18] sm:$0xff] %vm1836_vm9, %v1747_v25  ;;  %1383 = vrot.lane.b32.xlu1 %v1304_v45, %s2920_s8  ;;  %1768 = vrot.lane.b32.xlu0 %v1690_v50, %s2922_s20 }
 0x161   : > { %v1169_v61 = vpop.permute.xlu1 %1168  ;;  %v1171_v29 = vpop.permute.xlu0 %1170 }
 0x162   : > { %1261 = vst.msk [vmem:[#allocation3 + $0x20] sm:$0xff] %vm1256_vm6, %v1169_v61  ;;  %1262 = vst.msk [vmem:[#allocation3 + $0x28] sm:$0xff] %vm1256_vm6, %v1171_v29  ;;  %v1697_v29 = vld [vmem:[#allocation2 + $0x129] sm:$0xff] }
 0x163   : > { %1577 = vrot.lane.b32.xlu1 %v3256_v39, %s2921_s13  ;;  %1770 = vrot.lane.b32.xlu0 %v1691_v60, %s2922_s20 }
 0x165   : > { %v1938_v36 = vpop.permute.xlu1 %1937  ;;  %v1940_v52 = vpop.permute.xlu0 %1939 }
 0x166   : > { %2032 = vst.msk [vmem:[#allocation3 + $0x10] sm:$0xff] %vm2029_vm10, %v1938_v36  ;;  %2033 = vst.msk [vmem:[#allocation3 + $0x18] sm:$0xff] %vm2029_vm10, %v1940_v52 }
 0x167   : > { %1192 = vrot.lane.b32.xlu1 %v1690_v50, %s2919_s7  ;;  %1194 = vrot.lane.b32.xlu0 %v1691_v60, %s2919_s7  ;;  %v925_v50 = vld [vmem:[#allocation2 + $0x120] sm:$0xff] }
 0x169   : > { %v1362_v12 = vpop.permute.xlu1 %1361  ;;  %v1556_v20 = vpop.permute.xlu0 %1555 }
 0x16a   : > { %1454 = vst.msk [vmem:[#allocation3 + $0x20] sm:$0xff] %vm1449_vm7, %v1362_v12 }
 0x16b   : > { %1648 = vst.msk [vmem:[#allocation3 + $0x20] sm:$0xff] %vm1643_vm8, %v1556_v20  ;;  %1961 = vrot.lane.b32.xlu1 %v1883_v62, %s2923_s9  ;;  %1963 = vrot.lane.b32.xlu0 %v1884_v53, %s2923_s9 }
 0x16d   : > { %v1364_v39 = vpop.permute.xlu1 %1363  ;;  %v1749_v16 = vpop.permute.xlu0 %1748  ;;  %v2064_v23 = vld [vmem:[#allocation3 + $0x10] sm:$0xff]  ;;  %v2065_v63 = vld [vmem:[#allocation3 + $0x18] sm:$0xff] }
 0x16e   : > { %1455 = vst.msk [vmem:[#allocation3 + $0x28] sm:$0xff] %vm1449_vm7, %v1364_v39  ;;  %2825 = vmatprep.mubr.msk.f32.mxu0 %vm2103_vm11, %v2064_v23  ;;  %v1890_v39 = vld [vmem:[#allocation2 + $0x12a] sm:$0xff] }
 0x16f   : > { %1841 = vst.msk [vmem:[#allocation3 + $0x20] sm:$0xff] %vm1836_vm9, %v1749_v16  ;;  %1385 = vrot.lane.b32.xlu1 %v1883_v62, %s2920_s8  ;;  %2826 = vmatmul.mubr.msk.f32.gmra.mxu0 %vm2103_vm11, %v2065_v63  ;;  %v1505_v63 = vld [vmem:[#allocation2 + $0x138] sm:$0xff] }
 0x170   : > { %1579 = vrot.lane.b32.xlu0 %v3248_v38, %s2921_s13  ;;  %v345_v38 = vadd.f32 %v2906_v3, %v306_v31  ;;  %v1699_v31 = vld [vmem:[#allocation2 + $0x141] sm:$0xff] }
 0x171   : > { %v1558_v5 = vpop.permute.xlu1 %1557  ;;  %v1751_v19 = vpop.permute.xlu0 %1750 }
 0x172   : > { %1649 = vst.msk [vmem:[#allocation3 + $0x28] sm:$0xff] %vm1643_vm8, %v1558_v5  ;;  %v377_v8 = vmax.f32 %v345_v38, 0.0  ;;  %v1698_v5 = vld [vmem:[#allocation2 + $0x139] sm:$0xff] }
 0x173   : > { %1842 = vst.msk [vmem:[#allocation3 + $0x28] sm:$0xff] %vm1836_vm9, %v1751_v19  ;;  %1387 = vrot.lane.b32.xlu1 %v1884_v53, %s2920_s8 }
 0x174   : > { %1772 = vrot.lane.b32.xlu0 %v1692_v55, %s2922_s20  ;;  %452 = vst.msk [vmem:[#allocation2 + $0x189] sm:$0xff] %vm378_vm0, %v377_v8 }
 0x175   : > { %v1173_v6 = vpop.permute.xlu1 %1172  ;;  %v1175_v33 = vpop.permute.xlu0 %1174 }
 0x176   : > { %1263 = vst.msk [vmem:[#allocation3 + $0x30] sm:$0xff] %vm1256_vm6, %v1173_v6  ;;  %1264 = vst.msk [vmem:[#allocation3 + $0x38] sm:$0xff] %vm1256_vm6, %v1175_v33  ;;  %v1891_v33 = vld [vmem:[#allocation2 + $0x13a] sm:$0xff] }
 0x177   : > { %1581 = vrot.lane.b32.xlu1 %v3260_v41, %s2921_s13 }
 0x178   : > { %1774 = vrot.lane.b32.xlu0 %v1693_v7, %s2922_s20 }
 0x179   : > { %v1942_v10 = vpop.permute.xlu1 %1941  ;;  %v1944_v49 = vpop.permute.xlu0 %1943 }
 0x17a   : > { %2034 = vst.msk [vmem:[#allocation3 + $0x20] sm:$0xff] %vm2029_vm10, %v1942_v10  ;;  %2035 = vst.msk [vmem:[#allocation3 + $0x28] sm:$0xff] %vm2029_vm10, %v1944_v49  ;;  %v1892_v10 = vld [vmem:[#allocation2 + $0x142] sm:$0xff] }
 0x17b   : > { %1196 = vrot.lane.b32.xlu1 %v1692_v55, %s2919_s7 }
 0x17c   : > { %1198 = vrot.lane.b32.xlu0 %v1693_v7, %s2919_s7 }
 0x17d   : > { %v1366_v11 = vpop.permute.xlu1 %1365  ;;  %v1560_v51 = vpop.permute.xlu0 %1559 }
 0x17e   : > { %1456 = vst.msk [vmem:[#allocation3 + $0x30] sm:$0xff] %vm1449_vm7, %v1366_v11  ;;  %v1507_v11 = vld [vmem:[#allocation2 + $0x150] sm:$0xff] }
 0x17f   : > { %1650 = vst.msk [vmem:[#allocation3 + $0x30] sm:$0xff] %vm1643_vm8, %v1560_v51  ;;  %1965 = vrot.lane.b32.xlu1 %v1885_v54, %s2923_s9 }
 0x180   : > { %1967 = vrot.lane.b32.xlu0 %v1886_v28, %s2923_s9 }
 0x181   : > { %v1368_v41 = vpop.permute.xlu1 %1367  ;;  %v1753_v24 = vpop.permute.xlu0 %1752  ;;  %v2066_v44 = vld [vmem:[#allocation3 + $0x20] sm:$0xff]  ;;  %v2067_v30 = vld [vmem:[#allocation3 + $0x28] sm:$0xff] }
 0x182   : > { %1457 = vst.msk [vmem:[#allocation3 + $0x38] sm:$0xff] %vm1449_vm7, %v1368_v41  ;;  %2828 = vmatprep.mubr.msk.f32.mxu0 %vm2103_vm11, %v2066_v44  ;;  %v1508_v41 = vld [vmem:[#allocation2 + $0x158] sm:$0xff] }
 0x183   : > { %1843 = vst.msk [vmem:[#allocation3 + $0x30] sm:$0xff] %vm1836_vm9, %v1753_v24  ;;  %1389 = vrot.lane.b32.xlu1 %v1885_v54, %s2920_s8  ;;  %2829 = vmatmul.mubr.msk.f32.gmra.mxu0 %vm2103_vm11, %v2067_v30 }
 0x184   : > { %1583 = vrot.lane.b32.xlu0 %v3258_v40, %s2921_s13 }
 0x185   : > { %v1562_v35 = vpop.permute.xlu1 %1561  ;;  %v1755_v2 = vpop.permute.xlu0 %1754 }
 0x186   : > { %1651 = vst.msk [vmem:[#allocation3 + $0x38] sm:$0xff] %vm1643_vm8, %v1562_v35 }
 0x187   : > { %1844 = vst.msk [vmem:[#allocation3 + $0x38] sm:$0xff] %vm1836_vm9, %v1755_v2  ;;  %1391 = vrot.lane.b32.xlu1 %v1886_v28, %s2920_s8  ;;  %v1700_v2 = vld [vmem:[#allocation2 + $0x151] sm:$0xff] }
 0x188   : > { %1585 = vrot.lane.b32.xlu0 %v3274_v43, %s2921_s13 }
 0x189   : > { %v1177_v17 = vpop.permute.xlu1 %1176  ;;  %v1179_v56 = vpop.permute.xlu0 %1178 }
 0x18a   : > { %1265 = vst.msk [vmem:[#allocation3 + $0x40] sm:$0xff] %vm1256_vm6, %v1177_v17  ;;  %1266 = vst.msk [vmem:[#allocation3 + $0x48] sm:$0xff] %vm1256_vm6, %v1179_v56 }
 0x18b   : > { %1007 = vrot.lane.b32.xlu1 %v3258_v40, %s2918_s6  ;;  %v1887_v40 = vld [vmem:[#allocation2 + $0x10a] sm:$0xff] }
 0x18c   : > { %1009 = vrot.lane.b32.xlu0 %v3274_v43, %s2918_s6 }
 0x18d   : > { %v1946_v57 = vpop.permute.xlu1 %1945  ;;  %v1948_v58 = vpop.permute.xlu0 %1947 }
 0x18e   : > { %2036 = vst.msk [vmem:[#allocation3 + $0x30] sm:$0xff] %vm2029_vm10, %v1946_v57  ;;  %2037 = vst.msk [vmem:[#allocation3 + $0x38] sm:$0xff] %vm2029_vm10, %v1948_v58 }
 0x18f   : > { %1776 = vrot.lane.b32.xlu1 %v1694_v1, %s2922_s20 }
 0x190   : > { %1778 = vrot.lane.b32.xlu0 %v1695_v18, %s2922_s20 }
 0x191   : > { %v1370_v34 = vpop.permute.xlu1 %1369  ;;  %v1564_v32 = vpop.permute.xlu0 %1563 }
 0x192   : > { %1458 = vst.msk [vmem:[#allocation3 + $0x40] sm:$0xff] %vm1449_vm7, %v1370_v34 }
 0x193   : > { %1652 = vst.msk [vmem:[#allocation3 + $0x40] sm:$0xff] %vm1643_vm8, %v1564_v32  ;;  %1200 = vrot.lane.b32.xlu1 %v1694_v1, %s2919_s7  ;;  %v1701_v1 = vld [vmem:[#allocation2 + $0x159] sm:$0xff] }
 0x194   : > { %1202 = vrot.lane.b32.xlu0 %v1695_v18, %s2919_s7  ;;  %v1893_v18 = vld [vmem:[#allocation2 + $0x152] sm:$0xff] }
 0x195   : > { %v1372_v43 = vpop.permute.xlu1 %1371  ;;  %v1757_v46 = vpop.permute.xlu0 %1756  ;;  %v2068_v59 = vld [vmem:[#allocation3 + $0x30] sm:$0xff]  ;;  %v2069_v37 = vld [vmem:[#allocation3 + $0x38] sm:$0xff] }
 0x196   : > { %1459 = vst.msk [vmem:[#allocation3 + $0x48] sm:$0xff] %vm1449_vm7, %v1372_v43  ;;  %2831 = vmatprep.mubr.msk.f32.mxu0 %vm2103_vm11, %v2068_v59 }
 0x197   : > { %1845 = vst.msk [vmem:[#allocation3 + $0x40] sm:$0xff] %vm1836_vm9, %v1757_v46  ;;  %1969 = vrot.lane.b32.xlu1 %v1887_v40, %s2923_s9  ;;  %2832 = vmatmul.mubr.msk.f32.gmra.mxu0 %vm2103_vm11, %v2069_v37  ;;  %v1509_v46 = vld [vmem:[#allocation2 + $0x168] sm:$0xff] }
 0x198   : > { %1971 = vrot.lane.b32.xlu0 %v1888_v48, %s2923_s9 }
 0x199   : > { %v1566_v15 = vpop.permute.xlu1 %1565  ;;  %v1759_v13 = vpop.permute.xlu0 %1758 }
 0x19a   : > { %1653 = vst.msk [vmem:[#allocation3 + $0x48] sm:$0xff] %vm1643_vm8, %v1566_v15 }
 0x19b   : > { %1846 = vst.msk [vmem:[#allocation3 + $0x48] sm:$0xff] %vm1836_vm9, %v1759_v13  ;;  %1393 = vrot.lane.b32.xlu1 %v1887_v40, %s2920_s8  ;;  %v1894_v40 = vld [vmem:[#allocation2 + $0x15a] sm:$0xff]  ;;  %v1510_v13 = vld [vmem:[#allocation2 + $0x170] sm:$0xff] }
 0x19c   : > { %1587 = vrot.lane.b32.xlu0 %v3268_v42, %s2921_s13  ;;  %v1696_v42 = vld [vmem:[#allocation2 + $0x121] sm:$0xff] }
 0x19d   : > { %v1181_v21 = vpop.permute.xlu1 %1180  ;;  %v1183_v45 = vpop.permute.xlu0 %1182 }
 0x19e   : > { %1267 = vst.msk [vmem:[#allocation3 + $0x50] sm:$0xff] %vm1256_vm6, %v1181_v21  ;;  %1268 = vst.msk [vmem:[#allocation3 + $0x58] sm:$0xff] %vm1256_vm6, %v1183_v45 }
 0x19f   : > { %1395 = vrot.lane.b32.xlu1 %v1888_v48, %s2920_s8 }
 0x1a0   : > { %1589 = vrot.lane.b32.xlu0 %v3281_v47, %s2921_s13 }
 0x1a1   : > { %v1950_v9 = vpop.permute.xlu1 %1949  ;;  %v1952_v25 = vpop.permute.xlu0 %1951 }
 0x1a2   : > { %2038 = vst.msk [vmem:[#allocation3 + $0x40] sm:$0xff] %vm2029_vm10, %v1950_v9  ;;  %2039 = vst.msk [vmem:[#allocation3 + $0x48] sm:$0xff] %vm2029_vm10, %v1952_v25  ;;  %v1702_v9 = vld [vmem:[#allocation2 + $0x169] sm:$0xff] }
 0x1a3   : > { %1011 = vrot.lane.b32.xlu1 %v925_v50, %s2918_s6 }
 0x1a4   : > { %1013 = vrot.lane.b32.xlu0 %v3281_v47, %s2918_s6  ;;  %v1889_v47 = vld [vmem:[#allocation2 + $0x122] sm:$0xff] }
 0x1a5   : > { %v1374_v60 = vpop.permute.xlu1 %1373  ;;  %v1568_v61 = vpop.permute.xlu0 %1567 }
 0x1a6   : > { %1460 = vst.msk [vmem:[#allocation3 + $0x50] sm:$0xff] %vm1449_vm7, %v1374_v60 }
 0x1a7   : > { %1654 = vst.msk [vmem:[#allocation3 + $0x50] sm:$0xff] %vm1643_vm8, %v1568_v61  ;;  %1780 = vrot.lane.b32.xlu1 %v1696_v42, %s2922_s20 }
 0x1a8   : > { %1782 = vrot.lane.b32.xlu0 %v1697_v29, %s2922_s20 }
 0x1a9   : > { %v1376_v36 = vpop.permute.xlu1 %1375  ;;  %v1761_v52 = vpop.permute.xlu0 %1760  ;;  %v2070_v62 = vld [vmem:[#allocation3 + $0x40] sm:$0xff]  ;;  %v2071_v53 = vld [vmem:[#allocation3 + $0x48] sm:$0xff] }
 0x1aa   : > { %1461 = vst.msk [vmem:[#allocation3 + $0x58] sm:$0xff] %vm1449_vm7, %v1376_v36  ;;  %2834 = vmatprep.mubr.msk.f32.mxu0 %vm2103_vm11, %v2070_v62  ;;  %v1895_v36 = vld [vmem:[#allocation2 + $0x16a] sm:$0xff]  ;;  %v1896_v62 = vld [vmem:[#allocation2 + $0x172] sm:$0xff] }
 0x1ab   : > { %1847 = vst.msk [vmem:[#allocation3 + $0x50] sm:$0xff] %vm1836_vm9, %v1761_v52  ;;  %1204 = vrot.lane.b32.xlu1 %v1696_v42, %s2919_s7  ;;  %2835 = vmatmul.mubr.msk.f32.gmra.mxu0 %vm2103_vm11, %v2071_v53  ;;  %v1703_v42 = vld [vmem:[#allocation2 + $0x171] sm:$0xff] }
 0x1ac   : > { %1206 = vrot.lane.b32.xlu0 %v1697_v29, %s2919_s7 }
 0x1ad   : > { %v1570_v12 = vpop.permute.xlu1 %1569  ;;  %v1763_v20 = vpop.permute.xlu0 %1762 }
 0x1ae   : > { %1655 = vst.msk [vmem:[#allocation3 + $0x58] sm:$0xff] %vm1643_vm8, %v1570_v12 }
 0x1af   : > { %1848 = vst.msk [vmem:[#allocation3 + $0x58] sm:$0xff] %vm1836_vm9, %v1763_v20  ;;  %1973 = vrot.lane.b32.xlu1 %v1889_v47, %s2923_s9  ;;  %v1511_v20 = vld [vmem:[#allocation2 + $0x180] sm:$0xff] }
 0x1b0   : > { %1975 = vrot.lane.b32.xlu0 %v1890_v39, %s2923_s9 }
 0x1b1   : > { %v1185_v16 = vpop.permute.xlu1 %1184  ;;  %v1187_v23 = vpop.permute.xlu0 %1186 }
 0x1b2   : > { %1269 = vst.msk [vmem:[#allocation3 + $0x60] sm:$0xff] %vm1256_vm6, %v1185_v16  ;;  %1270 = vst.msk [vmem:[#allocation3 + $0x68] sm:$0xff] %vm1256_vm6, %v1187_v23 }
 0x1b3   : > { %1397 = vrot.lane.b32.xlu1 %v1889_v47, %s2920_s8 }
 0x1b4   : > { %1591 = vrot.lane.b32.xlu0 %v1505_v63, %s2921_s13 }
 0x1b5   : > { %v1954_v27 = vpop.permute.xlu1 %1953  ;;  %v1956_v0 = vpop.permute.xlu0 %1955 }
 0x1b6   : > { %2040 = vst.msk [vmem:[#allocation3 + $0x50] sm:$0xff] %vm2029_vm10, %v1954_v27  ;;  %2041 = vst.msk [vmem:[#allocation3 + $0x58] sm:$0xff] %vm2029_vm10, %v1956_v0 }
 0x1b7   : > { %1399 = vrot.lane.b32.xlu1 %v1890_v39, %s2920_s8 }
 0x1b8   : > { %1593 = vrot.lane.b32.xlu0 %v1506_v14, %s2921_s13 }
 0x1b9   : > { %v1378_v3 = vpop.permute.xlu1 %1377  ;;  %v1572_v4 = vpop.permute.xlu0 %1571 }
 0x1ba   : > { %1462 = vst.msk [vmem:[#allocation3 + $0x60] sm:$0xff] %vm1449_vm7, %v1378_v3  ;;  %v1704_v3 = vld [vmem:[#allocation2 + $0x181] sm:$0xff] }
 0x1bb   : > { %1656 = vst.msk [vmem:[#allocation3 + $0x60] sm:$0xff] %vm1643_vm8, %v1572_v4  ;;  %1015 = vrot.lane.b32.xlu1 %v1505_v63, %s2918_s6  ;;  %v1512_v63 = vld [vmem:[#allocation2 + $0x188] sm:$0xff] }
 0x1bc   : > { %1017 = vrot.lane.b32.xlu0 %v1506_v14, %s2918_s6 }
 0x1bd   : > { %v1380_v19 = vpop.permute.xlu1 %1379  ;;  %v1765_v55 = vpop.permute.xlu0 %1764  ;;  %v2072_v26 = vld [vmem:[#allocation3 + $0x50] sm:$0xff]  ;;  %v2073_v22 = vld [vmem:[#allocation3 + $0x58] sm:$0xff] }
 0x1be   : > { %1463 = vst.msk [vmem:[#allocation3 + $0x68] sm:$0xff] %vm1449_vm7, %v1380_v19  ;;  %2837 = vmatprep.mubr.msk.f32.mxu0 %vm2103_vm11, %v2072_v26 }
 0x1bf   : > { %1849 = vst.msk [vmem:[#allocation3 + $0x60] sm:$0xff] %vm1836_vm9, %v1765_v55  ;;  %1784 = vrot.lane.b32.xlu1 %v1698_v5, %s2922_s20  ;;  %2838 = vmatmul.mubr.msk.f32.gmra.mxu0 %vm2103_vm11, %v2073_v22  ;;  %v1897_v22 = vld [vmem:[#allocation2 + $0x182] sm:$0xff] }
 0x1c0   : > { %1786 = vrot.lane.b32.xlu0 %v1699_v31, %s2922_s20 }
 0x1c1   : > { %v1574_v38 = vpop.permute.xlu1 %1573  ;;  %v1767_v6 = vpop.permute.xlu0 %1766 }
 0x1c2   : > { %1657 = vst.msk [vmem:[#allocation3 + $0x68] sm:$0xff] %vm1643_vm8, %v1574_v38  ;;  %v1898_v38 = vld [vmem:[#allocation2 + $0x18a] sm:$0xff] }
 0x1c3   : > { %1850 = vst.msk [vmem:[#allocation3 + $0x68] sm:$0xff] %vm1836_vm9, %v1767_v6  ;;  %1208 = vrot.lane.b32.xlu1 %v1698_v5, %s2919_s7  ;;  %v1705_v5 = vld [vmem:[#allocation2 + $0x189] sm:$0xff] }
 0x1c4   : > { %1210 = vrot.lane.b32.xlu0 %v1699_v31, %s2919_s7 }
 0x1c5   : > { %v1189_v7 = vpop.permute.xlu1 %1188  ;;  %v1191_v8 = vpop.permute.xlu0 %1190 }
 0x1c6   : > { %1271 = vst.msk [vmem:[#allocation3 + $0x70] sm:$0xff] %vm1256_vm6, %v1189_v7  ;;  %1272 = vst.msk [vmem:[#allocation3 + $0x78] sm:$0xff] %vm1256_vm6, %v1191_v8  ;;  %v1513_v8 = vld [vmem:[#allocation2 + $0x198] sm:$0xff] }
 0x1c7   : > { %1977 = vrot.lane.b32.xlu1 %v1891_v33, %s2923_s9 }
 0x1c8   : > { %1979 = vrot.lane.b32.xlu0 %v1892_v10, %s2923_s9 }
 0x1c9   : > { %v1958_v49 = vpop.permute.xlu1 %1957  ;;  %v1960_v54 = vpop.permute.xlu0 %1959 }
 0x1ca   : > { %2042 = vst.msk [vmem:[#allocation3 + $0x60] sm:$0xff] %vm2029_vm10, %v1958_v49  ;;  %2043 = vst.msk [vmem:[#allocation3 + $0x68] sm:$0xff] %vm2029_vm10, %v1960_v54 }
 0x1cb   : > { %1401 = vrot.lane.b32.xlu1 %v1891_v33, %s2920_s8 }
 0x1cc   : > { %1595 = vrot.lane.b32.xlu0 %v1507_v11, %s2921_s13 }
 0x1cd   : > { %v1382_v51 = vpop.permute.xlu1 %1381  ;;  %v1576_v28 = vpop.permute.xlu0 %1575 }
 0x1ce   : > { %1464 = vst.msk [vmem:[#allocation3 + $0x70] sm:$0xff] %vm1449_vm7, %v1382_v51 }
 0x1cf   : > { %1658 = vst.msk [vmem:[#allocation3 + $0x70] sm:$0xff] %vm1643_vm8, %v1576_v28  ;;  %1403 = vrot.lane.b32.xlu1 %v1892_v10, %s2920_s8  ;;  %v1514_v28 = vld [vmem:[#allocation2 + $0x1a0] sm:$0xff] }
 0x1d0   : > { %1597 = vrot.lane.b32.xlu0 %v1508_v41, %s2921_s13 }
 0x1d1   : > { %v1384_v24 = vpop.permute.xlu1 %1383  ;;  %v1769_v44 = vpop.permute.xlu0 %1768  ;;  %v2074_v30 = vld [vmem:[#allocation3 + $0x60] sm:$0xff]  ;;  %v2075_v35 = vld [vmem:[#allocation3 + $0x68] sm:$0xff] }
 0x1d2   : > { %1465 = vst.msk [vmem:[#allocation3 + $0x78] sm:$0xff] %vm1449_vm7, %v1384_v24  ;;  %2840 = vmatprep.mubr.msk.f32.mxu0 %vm2103_vm11, %v2074_v30  ;;  %v1899_v24 = vld [vmem:[#allocation2 + $0x19a] sm:$0xff] }
 0x1d3   : > { %1851 = vst.msk [vmem:[#allocation3 + $0x70] sm:$0xff] %vm1836_vm9, %v1769_v44  ;;  %1019 = vrot.lane.b32.xlu1 %v1507_v11, %s2918_s6  ;;  %2841 = vmatmul.mubr.msk.f32.gmra.mxu0 %vm2103_vm11, %v2075_v35  ;;  %v1706_v11 = vld [vmem:[#allocation2 + $0x199] sm:$0xff]  ;;  %v1707_v35 = vld [vmem:[#allocation2 + $0x1a1] sm:$0xff] }
 0x1d4   : > { %1021 = vrot.lane.b32.xlu0 %v1508_v41, %s2918_s6 }
 0x1d5   : > { %v1578_v17 = vpop.permute.xlu1 %1577  ;;  %v1771_v56 = vpop.permute.xlu0 %1770 }
 0x1d6   : > { %1659 = vst.msk [vmem:[#allocation3 + $0x78] sm:$0xff] %vm1643_vm8, %v1578_v17 }
 0x1d7   : > { %1852 = vst.msk [vmem:[#allocation3 + $0x78] sm:$0xff] %vm1836_vm9, %v1771_v56  ;;  %1788 = vrot.lane.b32.xlu1 %v1700_v2, %s2922_s20 }
 0x1d8   : > { %1790 = vrot.lane.b32.xlu0 %v1701_v1, %s2922_s20 }
 0x1d9   : > { %v1193_v57 = vpop.permute.xlu1 %1192  ;;  %v1195_v58 = vpop.permute.xlu0 %1194 }
 0x1da   : > { %1273 = vst.msk [vmem:[#allocation3 + $0x80] sm:$0xff] %vm1256_vm6, %v1193_v57  ;;  %1274 = vst.msk [vmem:[#allocation3 + $0x88] sm:$0xff] %vm1256_vm6, %v1195_v58 }
 0x1db   : > { %1212 = vrot.lane.b32.xlu1 %v1700_v2, %s2919_s7 }
 0x1dc   : > { %1214 = vrot.lane.b32.xlu0 %v1701_v1, %s2919_s7 }
 0x1dd   : > { %v1962_v34 = vpop.permute.xlu1 %1961  ;;  %v1964_v32 = vpop.permute.xlu0 %1963 }
 0x1de   : > { %2044 = vst.msk [vmem:[#allocation3 + $0x70] sm:$0xff] %vm2029_vm10, %v1962_v34  ;;  %2045 = vst.msk [vmem:[#allocation3 + $0x78] sm:$0xff] %vm2029_vm10, %v1964_v32 }
 0x1df   : > { %1981 = vrot.lane.b32.xlu1 %v1893_v18, %s2923_s9 }
 0x1e0   : > { %1983 = vrot.lane.b32.xlu0 %v1894_v40, %s2923_s9 }
 0x1e1   : > { %v1386_v43 = vpop.permute.xlu1 %1385 }
 0x1e2   : > { %1466 = vst.msk [vmem:[#allocation3 + $0x80] sm:$0xff] %vm1449_vm7, %v1386_v43  ;;  %v1580_v59 = vpop.permute.xlu0 %1579 }
 0x1e3   : > { %1660 = vst.msk [vmem:[#allocation3 + $0x80] sm:$0xff] %vm1643_vm8, %v1580_v59  ;;  %1405 = vrot.lane.b32.xlu1 %v1893_v18, %s2920_s8 }
 0x1e4   : > { %1599 = vrot.lane.b32.xlu0 %v1509_v46, %s2921_s13 }
 0x1e5   : > { %v1388_v37 = vpop.permute.xlu1 %1387  ;;  %v2076_v48 = vld [vmem:[#allocation3 + $0x70] sm:$0xff]  ;;  %v2077_v15 = vld [vmem:[#allocation3 + $0x78] sm:$0xff] }
 0x1e6   : > { %1467 = vst.msk [vmem:[#allocation3 + $0x88] sm:$0xff] %vm1449_vm7, %v1388_v37  ;;  %v1773_v21 = vpop.permute.xlu0 %1772  ;;  %2843 = vmatprep.mubr.msk.f32.mxu0 %vm2103_vm11, %v2076_v48 }
 0x1e7   : > { %1853 = vst.msk [vmem:[#allocation3 + $0x80] sm:$0xff] %vm1836_vm9, %v1773_v21  ;;  %1407 = vrot.lane.b32.xlu1 %v1894_v40, %s2920_s8  ;;  %2844 = vmatmul.mubr.msk.f32.gmra.mxu0 %vm2103_vm11, %v2077_v15  ;;  %v1900_v40 = vld [vmem:[#allocation2 + $0x1a2] sm:$0xff] }
 0x1e8   : > { %1601 = vrot.lane.b32.xlu0 %v1510_v13, %s2921_s13 }
 0x1e9   : > { %v1582_v45 = vpop.permute.xlu1 %1581 }
 0x1ea   : > { %1661 = vst.msk [vmem:[#allocation3 + $0x88] sm:$0xff] %vm1643_vm8, %v1582_v45  ;;  %v1775_v50 = vpop.permute.xlu0 %1774 }
 0x1eb   : > { %1854 = vst.msk [vmem:[#allocation3 + $0x88] sm:$0xff] %vm1836_vm9, %v1775_v50  ;;  %1023 = vrot.lane.b32.xlu1 %v1509_v46, %s2918_s6 }
 0x1ec   : > { %1025 = vrot.lane.b32.xlu0 %v1510_v13, %s2918_s6 }
 0x1ed   : > { %v1197_v25 = vpop.permute.xlu1 %1196 }
 0x1ee   : > { %1275 = vst.msk [vmem:[#allocation3 + $0x90] sm:$0xff] %vm1256_vm6, %v1197_v25  ;;  %v1199_v60 = vpop.permute.xlu0 %1198 }
 0x1ef   : > { %1276 = vst.msk [vmem:[#allocation3 + $0x98] sm:$0xff] %vm1256_vm6, %v1199_v60  ;;  %1792 = vrot.lane.b32.xlu1 %v1702_v9, %s2922_s20 }
 0x1f0   : > { %1794 = vrot.lane.b32.xlu0 %v1703_v42, %s2922_s20 }
 0x1f1   : > { %v1966_v61 = vpop.permute.xlu1 %1965 }
 0x1f2   : > { %2046 = vst.msk [vmem:[#allocation3 + $0x80] sm:$0xff] %vm2029_vm10, %v1966_v61  ;;  %v1968_v29 = vpop.permute.xlu0 %1967 }
 0x1f3   : > { %2047 = vst.msk [vmem:[#allocation3 + $0x88] sm:$0xff] %vm2029_vm10, %v1968_v29  ;;  %1216 = vrot.lane.b32.xlu1 %v1702_v9, %s2919_s7 }
 0x1f4   : > { %1218 = vrot.lane.b32.xlu0 %v1703_v42, %s2919_s7 }
 0x1f5   : > { %v1390_v52 = vpop.permute.xlu1 %1389 }
 0x1f6   : > { %1468 = vst.msk [vmem:[#allocation3 + $0x90] sm:$0xff] %vm1449_vm7, %v1390_v52  ;;  %v1584_v53 = vpop.permute.xlu0 %1583 }
 0x1f7   : > { %1662 = vst.msk [vmem:[#allocation3 + $0x90] sm:$0xff] %vm1643_vm8, %v1584_v53  ;;  %1985 = vrot.lane.b32.xlu1 %v1895_v36, %s2923_s9 }
 0x1f8   : > { %1987 = vrot.lane.b32.xlu0 %v1896_v62, %s2923_s9 }
 0x1f9   : > { %v1392_v47 = vpop.permute.xlu1 %1391  ;;  %v2078_v12 = vld [vmem:[#allocation3 + $0x80] sm:$0xff] }
 0x1fa   : > { %1469 = vst.msk [vmem:[#allocation3 + $0x98] sm:$0xff] %vm1449_vm7, %v1392_v47  ;;  %v1586_v39 = vpop.permute.xlu0 %1585  ;;  %2846 = vmatprep.mubr.msk.f32.mxu1 %vm2103_vm11, %v2078_v12  ;;  %v2079_v16 = vld [vmem:[#allocation3 + $0x88] sm:$0xff] }
 0x1fb   : > { %1663 = vst.msk [vmem:[#allocation3 + $0x98] sm:$0xff] %vm1643_vm8, %v1586_v39  ;;  %1409 = vrot.lane.b32.xlu1 %v1895_v36, %s2920_s8  ;;  %2847 = vmatmul.mubr.msk.f32.vlgmr.msra.gmra.mxu1 %vm2103_vm11, %v2079_v16 }
 0x1fc   : > { %1603 = vrot.lane.b32.xlu0 %v1511_v20, %s2921_s13 }
 0x1fd   : > { %v1008_v23 = vpop.permute.xlu1 %1007 }
 0x1fe   : > { %1084 = vst.msk [vmem:[#allocation3 + $0xa0] sm:$0xff] %vm1063_vm5, %v1008_v23  ;;  %v1010_v27 = vpop.permute.xlu0 %1009 }
 0x1ff   : > { %1085 = vst.msk [vmem:[#allocation3 + $0xa8] sm:$0xff] %vm1063_vm5, %v1010_v27  ;;  %1411 = vrot.lane.b32.xlu1 %v1896_v62, %s2920_s8 }
 0x200   : > { %1605 = vrot.lane.b32.xlu0 %v1512_v63, %s2921_s13 }
 0x201   : > { %v1777_v0 = vpop.permute.xlu1 %1776 }
 0x202   : > { %1855 = vst.msk [vmem:[#allocation3 + $0x90] sm:$0xff] %vm1836_vm9, %v1777_v0  ;;  %v1779_v14 = vpop.permute.xlu0 %1778 }
 0x203   : > { %1856 = vst.msk [vmem:[#allocation3 + $0x98] sm:$0xff] %vm1836_vm9, %v1779_v14  ;;  %1027 = vrot.lane.b32.xlu1 %v1511_v20, %s2918_s6 }
 0x204   : > { %1029 = vrot.lane.b32.xlu0 %v1512_v63, %s2918_s6 }
 0x205   : > { %v1201_v4 = vpop.permute.xlu1 %1200 }
 0x206   : > { %1277 = vst.msk [vmem:[#allocation3 + $0xa0] sm:$0xff] %vm1256_vm6, %v1201_v4  ;;  %v1203_v19 = vpop.permute.xlu0 %1202 }
 0x207   : > { %1278 = vst.msk [vmem:[#allocation3 + $0xa8] sm:$0xff] %vm1256_vm6, %v1203_v19  ;;  %1796 = vrot.lane.b32.xlu1 %v1704_v3, %s2922_s20 }
 0x208   : > { %1798 = vrot.lane.b32.xlu0 %v1705_v5, %s2922_s20 }
 0x209   : > { %v1970_v55 = vpop.permute.xlu1 %1969 }
 0x20a   : > { %2048 = vst.msk [vmem:[#allocation3 + $0x90] sm:$0xff] %vm2029_vm10, %v1970_v55  ;;  %v1972_v26 = vpop.permute.xlu0 %1971 }
 0x20b   : > { %2049 = vst.msk [vmem:[#allocation3 + $0x98] sm:$0xff] %vm2029_vm10, %v1972_v26  ;;  %1220 = vrot.lane.b32.xlu1 %v1704_v3, %s2919_s7 }
 0x20c   : > { %1222 = vrot.lane.b32.xlu0 %v1705_v5, %s2919_s7  ;;  %s3909_s7 = scalar_lea.vmem %s4129_s4, %s2761_s21  ;;  %s2724_s21 = sshll.u32 %s4133_s19, 1 }
 0x20d   : > { %v1394_v31 = vpop.permute.xlu1 %1393  ;;  %s235_s17 = scalar_lea.vmem %s4130_s5, %s2724_s21 }
 0x20e   : > { %1470 = vst.msk [vmem:[#allocation3 + $0xa0] sm:$0xff] %vm1449_vm7, %v1394_v31  ;;  %v1588_v6 = vpop.permute.xlu0 %1587 }
 0x20f   : > { %1664 = vst.msk [vmem:[#allocation3 + $0xa0] sm:$0xff] %vm1643_vm8, %v1588_v6  ;;  %1989 = vrot.lane.b32.xlu1 %v1897_v22, %s2923_s9 }
 0x210   : > { %1991 = vrot.lane.b32.xlu0 %v1898_v38, %s2923_s9 }
 0x211   : > { %v1396_v33 = vpop.permute.xlu1 %1395  ;;  %v2080_v7 = vld [vmem:[#allocation3 + $0x90] sm:$0xff] }
 0x212   : > { %1471 = vst.msk [vmem:[#allocation3 + $0xa8] sm:$0xff] %vm1449_vm7, %v1396_v33  ;;  %v1590_v10 = vpop.permute.xlu0 %1589  ;;  %2849 = vmatprep.mubr.msk.f32.mxu1 %vm2103_vm11, %v2080_v7  ;;  %v2081_v49 = vld [vmem:[#allocation3 + $0x98] sm:$0xff] }
 0x213   : > { %1665 = vst.msk [vmem:[#allocation3 + $0xa8] sm:$0xff] %vm1643_vm8, %v1590_v10  ;;  %1413 = vrot.lane.b32.xlu1 %v1897_v22, %s2920_s8  ;;  %2850 = vmatmul.mubr.msk.f32.gmra.mxu1 %vm2103_vm11, %v2081_v49 }
 0x214   : > { %1607 = vrot.lane.b32.xlu0 %v1513_v8, %s2921_s13 }
 0x215   : > { %v1012_v54 = vpop.permute.xlu1 %1011 }
 0x216   : > { %1086 = vst.msk [vmem:[#allocation3 + $0xb0] sm:$0xff] %vm1063_vm5, %v1012_v54  ;;  %v1014_v51 = vpop.permute.xlu0 %1013 }
 0x217   : > { %1087 = vst.msk [vmem:[#allocation3 + $0xb8] sm:$0xff] %vm1063_vm5, %v1014_v51  ;;  %1415 = vrot.lane.b32.xlu1 %v1898_v38, %s2920_s8 }
 0x218   : > { %1800 = vrot.lane.b32.xlu0 %v1706_v11, %s2922_s20 }
 0x219   : > { %v1781_v41 = vpop.permute.xlu1 %1780 }
 0x21a   : > { %1857 = vst.msk [vmem:[#allocation3 + $0xa0] sm:$0xff] %vm1836_vm9, %v1781_v41  ;;  %v1783_v44 = vpop.permute.xlu0 %1782 }
 0x21b   : > { %1858 = vst.msk [vmem:[#allocation3 + $0xa8] sm:$0xff] %vm1836_vm9, %v1783_v44  ;;  %1609 = vrot.lane.b32.xlu1 %v1514_v28, %s2921_s13 }
 0x21c   : > { %v2824_v30 = vpop.f32.mrf.mxu0  ;;  %1993 = vrot.lane.b32.xlu0 %v1899_v24, %s2923_s9 }
 0x21d   : > { %v1205_v2 = vpop.permute.xlu1 %1204  ;;  %v2426_v17 = vsel %vm378_vm0, %v2824_v30, 0.0  ;;  %v2496_v56 = vmul.f32 %v2824_v30, %v2824_v30  ;;  %2598 = vst.msk [vmem:[%s3909_s7 + $0x8] sm:$0xff] %vm378_vm0, %v2824_v30 }
 0x21e   : > { %1279 = vst.msk [vmem:[#allocation3 + $0xb0] sm:$0xff] %vm1256_vm6, %v1205_v2  ;;  %v1207_v1 = vpop.permute.xlu0 %1206  ;;  %v2266_v57 = vpop.f32.mrf.mxu0 }
 0x21f   : > { %1280 = vst.msk [vmem:[#allocation3 + $0xb8] sm:$0xff] %vm1256_vm6, %v1207_v1  ;;  %v2528_v58 = vsel %vm378_vm0, %v2496_v56, 0.0  ;;  %1802 = vrot.lane.b32.xlu1 %v1707_v35, %s2922_s20  ;;  %v2425_v18 = vsel %vm378_vm0, %v2266_v57, 0.0  ;;  %v2495_v34 = vmul.f32 %v2266_v57, %v2266_v57 }
 0x220   : > { %2597 = vst.msk [vmem:[%s3909_s7] sm:$0xff] %vm378_vm0, %v2266_v57  ;;  %v2427_v32 = vadd.f32 %v2426_v17, %v2425_v18 }
 0x221   : > { %v2527_v43 = vsel %vm378_vm0, %v2495_v34, 0.0  ;;  %v1974_v46 = vpop.permute.xlu1 %1973 }
 0x222   : > { %v2529_v59 = vadd.f32 %v2528_v58, %v2527_v43  ;;  %2050 = vst.msk [vmem:[#allocation3 + $0xa0] sm:$0xff] %vm2029_vm10, %v1974_v46  ;;  %v1976_v37 = vpop.permute.xlu0 %1975 }
 0x223   : > { %2051 = vst.msk [vmem:[#allocation3 + $0xa8] sm:$0xff] %vm2029_vm10, %v1976_v37  ;;  %1995 = vrot.lane.b32.xlu1 %v1900_v40, %s2923_s9 }
 0x225   : > { %v1398_v48 = vpop.permute.xlu1 %1397 }
 0x226   : > { %1472 = vst.msk [vmem:[#allocation3 + $0xb0] sm:$0xff] %vm1449_vm7, %v1398_v48  ;;  %v1592_v15 = vpop.permute.xlu0 %1591 }
 0x227   : > { %1666 = vst.msk [vmem:[#allocation3 + $0xb0] sm:$0xff] %vm1643_vm8, %v1592_v15 }
 0x229   : > { %v1400_v13 = vpop.permute.xlu1 %1399  ;;  %v2082_v21 = vld [vmem:[#allocation3 + $0xa0] sm:$0xff] }
 0x22a   : > { %1473 = vst.msk [vmem:[#allocation3 + $0xb8] sm:$0xff] %vm1449_vm7, %v1400_v13  ;;  %v1594_v45 = vpop.permute.xlu0 %1593  ;;  %2852 = vmatprep.mubr.msk.f32.mxu1 %vm2103_vm11, %v2082_v21  ;;  %v2083_v50 = vld [vmem:[#allocation3 + $0xa8] sm:$0xff] }
 0x22b   : > { %1667 = vst.msk [vmem:[#allocation3 + $0xb8] sm:$0xff] %vm1643_vm8, %v1594_v45  ;;  %2853 = vmatmul.mubr.msk.f32.gmra.mxu1 %vm2103_vm11, %v2083_v50 }
 0x22d   : > { %v1016_v9 = vpop.permute.xlu1 %1015 }
 0x22e   : > { %1088 = vst.msk [vmem:[#allocation3 + $0xc0] sm:$0xff] %vm1063_vm5, %v1016_v9  ;;  %v1018_v25 = vpop.permute.xlu0 %1017 }
 0x22f   : > { %1089 = vst.msk [vmem:[#allocation3 + $0xc8] sm:$0xff] %vm1063_vm5, %v1018_v25  ;;  %v2827_v42 = vpop.f32.mrf.mxu0 }
 0x230   : > { %v2498_v60 = vmul.f32 %v2827_v42, %v2827_v42  ;;  %2600 = vst.msk [vmem:[%s3909_s7 + $0x18] sm:$0xff] %vm378_vm0, %v2827_v42  ;;  %v2430_v36 = vsel %vm378_vm0, %v2827_v42, 0.0 }
 0x231   : > { %v1785_v61 = vpop.permute.xlu1 %1784  ;;  %v2276_v29 = vpop.f32.mrf.mxu0 }
 0x232   : > { %1859 = vst.msk [vmem:[#allocation3 + $0xb0] sm:$0xff] %vm1836_vm9, %v1785_v61  ;;  %v2428_v52 = vsel %vm378_vm0, %v2276_v29, 0.0  ;;  %v2497_v62 = vmul.f32 %v2276_v29, %v2276_v29  ;;  %v1787_v53 = vpop.permute.xlu0 %1786  ;;  %v2532_v12 = vsel %vm378_vm0, %v2498_v60, 0.0 }
 0x233   : > { %2599 = vst.msk [vmem:[%s3909_s7 + $0x10] sm:$0xff] %vm378_vm0, %v2276_v29  ;;  %v2429_v47 = vadd.f32 %v2428_v52, %v2427_v32 }
 0x234   : > { %1860 = vst.msk [vmem:[#allocation3 + $0xb8] sm:$0xff] %vm1836_vm9, %v1787_v53  ;;  %v2530_v20 = vsel %vm378_vm0, %v2497_v62, 0.0 }
 0x235   : > { %v2531_v39 = vadd.f32 %v2530_v20, %v2529_v59  ;;  %v1209_v16 = vpop.permute.xlu1 %1208  ;;  %v2431_v23 = vadd.f32 %v2430_v36, %v2429_v47 }
 0x236   : > { %1281 = vst.msk [vmem:[#allocation3 + $0xc0] sm:$0xff] %vm1256_vm6, %v1209_v16  ;;  %v1211_v63 = vpop.permute.xlu0 %1210 }
 0x237   : > { %1282 = vst.msk [vmem:[#allocation3 + $0xc8] sm:$0xff] %vm1256_vm6, %v1211_v63  ;;  %v2533_v27 = vadd.f32 %v2532_v12, %v2531_v39 }
 0x239   : > { %v1978_v0 = vpop.permute.xlu1 %1977 }
 0x23a   : > { %2052 = vst.msk [vmem:[#allocation3 + $0xb0] sm:$0xff] %vm2029_vm10, %v1978_v0  ;;  %v1980_v14 = vpop.permute.xlu0 %1979 }
 0x23b   : > { %2053 = vst.msk [vmem:[#allocation3 + $0xb8] sm:$0xff] %vm2029_vm10, %v1980_v14 }
 0x23d   : > { %v1402_v3 = vpop.permute.xlu1 %1401 }
 0x23e   : > { %1474 = vst.msk [vmem:[#allocation3 + $0xc0] sm:$0xff] %vm1449_vm7, %v1402_v3  ;;  %v1596_v4 = vpop.permute.xlu0 %1595 }
 0x23f   : > { %1668 = vst.msk [vmem:[#allocation3 + $0xc0] sm:$0xff] %vm1643_vm8, %v1596_v4 }
 0x241   : > { %v1404_v5 = vpop.permute.xlu1 %1403  ;;  %v2084_v19 = vld [vmem:[#allocation3 + $0xb0] sm:$0xff] }
 0x242   : > { %1475 = vst.msk [vmem:[#allocation3 + $0xc8] sm:$0xff] %vm1449_vm7, %v1404_v5  ;;  %v1598_v55 = vpop.permute.xlu0 %1597  ;;  %2855 = vmatprep.mubr.msk.f32.mxu1 %vm2103_vm11, %v2084_v19  ;;  %v2085_v26 = vld [vmem:[#allocation3 + $0xb8] sm:$0xff] }
 0x243   : > { %1669 = vst.msk [vmem:[#allocation3 + $0xc8] sm:$0xff] %vm1643_vm8, %v1598_v55  ;;  %v2830_v22 = vpop.f32.mrf.mxu0  ;;  %2856 = vmatmul.mubr.msk.f32.gmra.mxu1 %vm2103_vm11, %v2085_v26 }
 0x244   : > { %v2500_v31 = vmul.f32 %v2830_v22, %v2830_v22  ;;  %2602 = vst.msk [vmem:[%s3909_s7 + $0x28] sm:$0xff] %vm378_vm0, %v2830_v22  ;;  %v2434_v33 = vsel %vm378_vm0, %v2830_v22, 0.0 }
 0x245   : > { %v1020_v38 = vpop.permute.xlu1 %1019  ;;  %v2286_v6 = vpop.f32.mrf.mxu0 }
 0x246   : > { %1090 = vst.msk [vmem:[#allocation3 + $0xd0] sm:$0xff] %vm1063_vm5, %v1020_v38  ;;  %v2432_v7 = vsel %vm378_vm0, %v2286_v6, 0.0  ;;  %v2499_v8 = vmul.f32 %v2286_v6, %v2286_v6  ;;  %v1022_v10 = vpop.permute.xlu0 %1021  ;;  %v2536_v54 = vsel %vm378_vm0, %v2500_v31, 0.0 }
 0x247   : > { %2601 = vst.msk [vmem:[%s3909_s7 + $0x20] sm:$0xff] %vm378_vm0, %v2286_v6  ;;  %v2433_v49 = vadd.f32 %v2432_v7, %v2431_v23 }
 0x248   : > { %1091 = vst.msk [vmem:[#allocation3 + $0xd8] sm:$0xff] %vm1063_vm5, %v1022_v10  ;;  %v2534_v11 = vsel %vm378_vm0, %v2499_v8, 0.0 }
 0x249   : > { %v2535_v51 = vadd.f32 %v2534_v11, %v2533_v27  ;;  %v1789_v28 = vpop.permute.xlu1 %1788  ;;  %v2435_v41 = vadd.f32 %v2434_v33, %v2433_v49 }
 0x24a   : > { %1861 = vst.msk [vmem:[#allocation3 + $0xc0] sm:$0xff] %vm1836_vm9, %v1789_v28  ;;  %v1791_v24 = vpop.permute.xlu0 %1790 }
 0x24b   : > { %1862 = vst.msk [vmem:[#allocation3 + $0xc8] sm:$0xff] %vm1836_vm9, %v1791_v24  ;;  %v2537_v44 = vadd.f32 %v2536_v54, %v2535_v51 }
 0x24d   : > { %v1213_v30 = vpop.permute.xlu1 %1212 }
 0x24e   : > { %1283 = vst.msk [vmem:[#allocation3 + $0xd0] sm:$0xff] %vm1256_vm6, %v1213_v30  ;;  %v1215_v35 = vpop.permute.xlu0 %1214 }
 0x24f   : > { %1284 = vst.msk [vmem:[#allocation3 + $0xd8] sm:$0xff] %vm1256_vm6, %v1215_v35 }
 0x251   : > { %v1982_v2 = vpop.permute.xlu1 %1981 }
 0x252   : > { %2054 = vst.msk [vmem:[#allocation3 + $0xc0] sm:$0xff] %vm2029_vm10, %v1982_v2  ;;  %v1984_v17 = vpop.permute.xlu0 %1983 }
 0x253   : > { %2055 = vst.msk [vmem:[#allocation3 + $0xc8] sm:$0xff] %vm2029_vm10, %v1984_v17 }
 0x255   : > { %v1406_v56 = vpop.permute.xlu1 %1405 }
 0x256   : > { %1476 = vst.msk [vmem:[#allocation3 + $0xd0] sm:$0xff] %vm1449_vm7, %v1406_v56  ;;  %v1600_v1 = vpop.permute.xlu0 %1599 }
 0x257   : > { %1670 = vst.msk [vmem:[#allocation3 + $0xd0] sm:$0xff] %vm1643_vm8, %v1600_v1  ;;  %v2833_v57 = vpop.f32.mrf.mxu0 }
 0x258   : > { %v2502_v58 = vmul.f32 %v2833_v57, %v2833_v57  ;;  %2604 = vst.msk [vmem:[%s3909_s7 + $0x38] sm:$0xff] %vm378_vm0, %v2833_v57  ;;  %v2438_v40 = vsel %vm378_vm0, %v2833_v57, 0.0 }
 0x259   : > { %v1408_v18 = vpop.permute.xlu1 %1407  ;;  %v2296_v34 = vpop.f32.mrf.mxu0  ;;  %v2086_v32 = vld [vmem:[#allocation3 + $0xc0] sm:$0xff] }
 0x25a   : > { %1477 = vst.msk [vmem:[#allocation3 + $0xd8] sm:$0xff] %vm1449_vm7, %v1408_v18  ;;  %v2436_v43 = vsel %vm378_vm0, %v2296_v34, 0.0  ;;  %v2501_v46 = vmul.f32 %v2296_v34, %v2296_v34  ;;  %v1602_v59 = vpop.permute.xlu0 %1601  ;;  %2858 = vmatprep.mubr.msk.f32.mxu1 %vm2103_vm11, %v2086_v32  ;;  %v2087_v37 = vld [vmem:[#allocation3 + $0xc8] sm:$0xff]  ;;  %v2540_v15 = vsel %vm378_vm0, %v2502_v58, 0.0 }
 0x25b   : > { %2603 = vst.msk [vmem:[%s3909_s7 + $0x30] sm:$0xff] %vm378_vm0, %v2296_v34  ;;  %v2437_v48 = vadd.f32 %v2436_v43, %v2435_v41  ;;  %2859 = vmatmul.mubr.msk.f32.gmra.mxu1 %vm2103_vm11, %v2087_v37 }
 0x25c   : > { %1671 = vst.msk [vmem:[#allocation3 + $0xd8] sm:$0xff] %vm1643_vm8, %v1602_v59  ;;  %v2538_v13 = vsel %vm378_vm0, %v2501_v46, 0.0 }
 0x25d   : > { %v2539_v21 = vadd.f32 %v2538_v13, %v2537_v44  ;;  %v1024_v45 = vpop.permute.xlu1 %1023  ;;  %v2439_v50 = vadd.f32 %v2438_v40, %v2437_v48 }
 0x25e   : > { %1092 = vst.msk [vmem:[#allocation3 + $0xe0] sm:$0xff] %vm1063_vm5, %v1024_v45  ;;  %v1026_v9 = vpop.permute.xlu0 %1025 }
 0x25f   : > { %1093 = vst.msk [vmem:[#allocation3 + $0xe8] sm:$0xff] %vm1063_vm5, %v1026_v9  ;;  %v2541_v25 = vadd.f32 %v2540_v15, %v2539_v21 }
 0x261   : > { %v1793_v42 = vpop.permute.xlu1 %1792 }
 0x262   : > { %1863 = vst.msk [vmem:[#allocation3 + $0xd0] sm:$0xff] %vm1836_vm9, %v1793_v42  ;;  %v1795_v60 = vpop.permute.xlu0 %1794 }
 0x263   : > { %1864 = vst.msk [vmem:[#allocation3 + $0xd8] sm:$0xff] %vm1836_vm9, %v1795_v60 }
 0x265   : > { %v1217_v61 = vpop.permute.xlu1 %1216 }
 0x266   : > { %1285 = vst.msk [vmem:[#allocation3 + $0xe0] sm:$0xff] %vm1256_vm6, %v1217_v61  ;;  %v1219_v29 = vpop.permute.xlu0 %1218 }
 0x267   : > { %1286 = vst.msk [vmem:[#allocation3 + $0xe8] sm:$0xff] %vm1256_vm6, %v1219_v29 }
 0x269   : > { %v1986_v36 = vpop.permute.xlu1 %1985 }
 0x26a   : > { %2056 = vst.msk [vmem:[#allocation3 + $0xd0] sm:$0xff] %vm2029_vm10, %v1986_v36  ;;  %v1988_v52 = vpop.permute.xlu0 %1987 }
 0x26b   : > { %2057 = vst.msk [vmem:[#allocation3 + $0xd8] sm:$0xff] %vm2029_vm10, %v1988_v52  ;;  %v2836_v62 = vpop.f32.mrf.mxu0 }
 0x26c   : > { %v2504_v53 = vmul.f32 %v2836_v62, %v2836_v62  ;;  %2606 = vst.msk [vmem:[%s3909_s7 + $0x48] sm:$0xff] %vm378_vm0, %v2836_v62  ;;  %v2442_v20 = vsel %vm378_vm0, %v2836_v62, 0.0 }
 0x26d   : > { %v1410_v47 = vpop.permute.xlu1 %1409  ;;  %v2306_v12 = vpop.f32.mrf.mxu0 }
 0x26e   : > { %1478 = vst.msk [vmem:[#allocation3 + $0xe0] sm:$0xff] %vm1449_vm7, %v1410_v47  ;;  %v2440_v39 = vsel %vm378_vm0, %v2306_v12, 0.0  ;;  %v2503_v16 = vmul.f32 %v2306_v12, %v2306_v12  ;;  %v1604_v23 = vpop.permute.xlu0 %1603  ;;  %v2544_v27 = vsel %vm378_vm0, %v2504_v53, 0.0 }
 0x26f   : > { %2605 = vst.msk [vmem:[%s3909_s7 + $0x40] sm:$0xff] %vm378_vm0, %v2306_v12  ;;  %v2441_v63 = vadd.f32 %v2440_v39, %v2439_v50 }
 0x270   : > { %1672 = vst.msk [vmem:[#allocation3 + $0xe0] sm:$0xff] %vm1643_vm8, %v1604_v23  ;;  %v2542_v0 = vsel %vm378_vm0, %v2503_v16, 0.0 }
 0x271   : > { %v2543_v14 = vadd.f32 %v2542_v0, %v2541_v25  ;;  %v1412_v3 = vpop.permute.xlu1 %1411  ;;  %v2088_v4 = vld [vmem:[#allocation3 + $0xd0] sm:$0xff]  ;;  %v2443_v5 = vadd.f32 %v2442_v20, %v2441_v63 }
 0x272   : > { %1479 = vst.msk [vmem:[#allocation3 + $0xe8] sm:$0xff] %vm1449_vm7, %v1412_v3  ;;  %v1606_v19 = vpop.permute.xlu0 %1605  ;;  %2861 = vmatprep.mubr.msk.f32.mxu1 %vm2103_vm11, %v2088_v4  ;;  %v2089_v55 = vld [vmem:[#allocation3 + $0xd8] sm:$0xff] }
 0x273   : > { %1673 = vst.msk [vmem:[#allocation3 + $0xe8] sm:$0xff] %vm1643_vm8, %v1606_v19  ;;  %2862 = vmatmul.mubr.msk.f32.gmra.mxu1 %vm2103_vm11, %v2089_v55  ;;  %v2545_v26 = vadd.f32 %v2544_v27, %v2543_v14 }
 0x275   : > { %v1028_v22 = vpop.permute.xlu1 %1027 }
 0x276   : > { %1094 = vst.msk [vmem:[#allocation3 + $0xf0] sm:$0xff] %vm1063_vm5, %v1028_v22  ;;  %v1030_v31 = vpop.permute.xlu0 %1029 }
 0x277   : > { %1095 = vst.msk [vmem:[#allocation3 + $0xf8] sm:$0xff] %vm1063_vm5, %v1030_v31 }
 0x279   : > { %v1797_v38 = vpop.permute.xlu1 %1796 }
 0x27a   : > { %1865 = vst.msk [vmem:[#allocation3 + $0xe0] sm:$0xff] %vm1836_vm9, %v1797_v38  ;;  %v1799_v6 = vpop.permute.xlu0 %1798 }
 0x27b   : > { %1866 = vst.msk [vmem:[#allocation3 + $0xe8] sm:$0xff] %vm1836_vm9, %v1799_v6 }
 0x27d   : > { %v1221_v33 = vpop.permute.xlu1 %1220 }
 0x27e   : > { %1287 = vst.msk [vmem:[#allocation3 + $0xf0] sm:$0xff] %vm1256_vm6, %v1221_v33  ;;  %v1223_v7 = vpop.permute.xlu0 %1222 }
 0x27f   : > { %1288 = vst.msk [vmem:[#allocation3 + $0xf8] sm:$0xff] %vm1256_vm6, %v1223_v7  ;;  %v2839_v8 = vpop.f32.mrf.mxu0 }
 0x280   : > { %v2506_v10 = vmul.f32 %v2839_v8, %v2839_v8  ;;  %2608 = vst.msk [vmem:[%s3909_s7 + $0x58] sm:$0xff] %vm378_vm0, %v2839_v8  ;;  %v2446_v11 = vsel %vm378_vm0, %v2839_v8, 0.0 }
 0x281   : > { %v1990_v49 = vpop.permute.xlu1 %1989  ;;  %v2316_v54 = vpop.f32.mrf.mxu0 }
 0x282   : > { %2058 = vst.msk [vmem:[#allocation3 + $0xe0] sm:$0xff] %vm2029_vm10, %v1990_v49  ;;  %v2444_v51 = vsel %vm378_vm0, %v2316_v54, 0.0  ;;  %v2505_v28 = vmul.f32 %v2316_v54, %v2316_v54  ;;  %v1992_v41 = vpop.permute.xlu0 %1991  ;;  %v2548_v44 = vsel %vm378_vm0, %v2506_v10, 0.0 }
 0x283   : > { %2607 = vst.msk [vmem:[%s3909_s7 + $0x50] sm:$0xff] %vm378_vm0, %v2316_v54  ;;  %v2445_v24 = vadd.f32 %v2444_v51, %v2443_v5 }
 0x284   : > { %2059 = vst.msk [vmem:[#allocation3 + $0xe8] sm:$0xff] %vm2029_vm10, %v1992_v41  ;;  %v2546_v30 = vsel %vm378_vm0, %v2505_v28, 0.0 }
 0x285   : > { %v2547_v35 = vadd.f32 %v2546_v30, %v2545_v26  ;;  %v1414_v2 = vpop.permute.xlu1 %1413  ;;  %v2447_v17 = vadd.f32 %v2446_v11, %v2445_v24 }
 0x286   : > { %1480 = vst.msk [vmem:[#allocation3 + $0xf0] sm:$0xff] %vm1449_vm7, %v1414_v2  ;;  %v1608_v56 = vpop.permute.xlu0 %1607 }
 0x287   : > { %1674 = vst.msk [vmem:[#allocation3 + $0xf0] sm:$0xff] %vm1643_vm8, %v1608_v56  ;;  %v2549_v1 = vadd.f32 %v2548_v44, %v2547_v35 }
 0x289   : > { %v1416_v57 = vpop.permute.xlu1 %1415  ;;  %v2090_v58 = vld [vmem:[#allocation3 + $0xe0] sm:$0xff] }
 0x28a   : > { %1481 = vst.msk [vmem:[#allocation3 + $0xf8] sm:$0xff] %vm1449_vm7, %v1416_v57  ;;  %2864 = vmatprep.mubr.msk.f32.mxu1 %vm2103_vm11, %v2090_v58  ;;  %v1801_v34 = vpop.permute.xlu0 %1800 }
 0x28b   : > { %v2091_v18 = vld [vmem:[#allocation3 + $0xe8] sm:$0xff]  ;;  %1867 = vst.msk [vmem:[#allocation3 + $0xf0] sm:$0xff] %vm1836_vm9, %v1801_v34 }
 0x28c   : > { %2865 = vmatmul.mubr.msk.f32.gmra.mxu1 %vm2103_vm11, %v2091_v18 }
 0x28d   : > { %v1610_v32 = vpop.permute.xlu1 %1609 }
 0x28e   : > { %1675 = vst.msk [vmem:[#allocation3 + $0xf8] sm:$0xff] %vm1643_vm8, %v1610_v32  ;;  %v1994_v40 = vpop.permute.xlu0 %1993 }
 0x28f   : > { %2060 = vst.msk [vmem:[#allocation3 + $0xf0] sm:$0xff] %vm2029_vm10, %v1994_v40 }
 0x291   : > { %v1803_v43 = vpop.permute.xlu1 %1802 }
 0x292   : > { %1868 = vst.msk [vmem:[#allocation3 + $0xf8] sm:$0xff] %vm1836_vm9, %v1803_v43 }
 0x293   : > { %v2842_v46 = vpop.f32.mrf.mxu0 }
 0x294   : > { %v2508_v59 = vmul.f32 %v2842_v46, %v2842_v46  ;;  %2610 = vst.msk [vmem:[%s3909_s7 + $0x68] sm:$0xff] %vm378_vm0, %v2842_v46  ;;  %v2450_v15 = vsel %vm378_vm0, %v2842_v46, 0.0 }
 0x295   : > { %v1996_v37 = vpop.permute.xlu1 %1995  ;;  %v2326_v48 = vpop.f32.mrf.mxu0 }
 0x296   : > { %2061 = vst.msk [vmem:[#allocation3 + $0xf8] sm:$0xff] %vm2029_vm10, %v1996_v37  ;;  %v2448_v13 = vsel %vm378_vm0, %v2326_v48, 0.0  ;;  %v2507_v21 = vmul.f32 %v2326_v48, %v2326_v48  ;;  %v2092_v45 = vld [vmem:[#allocation3 + $0xf0] sm:$0xff]  ;;  %v2552_v9 = vsel %vm378_vm0, %v2508_v59, 0.0 }
 0x297   : > { %2609 = vst.msk [vmem:[%s3909_s7 + $0x60] sm:$0xff] %vm378_vm0, %v2326_v48  ;;  %v2449_v50 = vadd.f32 %v2448_v13, %v2447_v17  ;;  %2867 = vmatprep.mubr.msk.f32.mxu1 %vm2103_vm11, %v2092_v45 }
 0x298   : > { %v2550_v25 = vsel %vm378_vm0, %v2507_v21, 0.0 }
 0x299   : > { %v2551_v42 = vadd.f32 %v2550_v25, %v2549_v1  ;;  %v2451_v60 = vadd.f32 %v2450_v15, %v2449_v50 }
 0x29b   : > { %v2553_v61 = vadd.f32 %v2552_v9, %v2551_v42 }
 0x29d   : > { %v2093_v29 = vld [vmem:[#allocation3 + $0xf8] sm:$0xff] }
 0x29e   : > { %2868 = vmatmul.mubr.msk.f32.gmra.mxu1 %vm2103_vm11, %v2093_v29 }
 0x2a7   : > { %v2845_v36 = vpop.f32.mrf.mxu0 }
 0x2a8   : > { %v2510_v52 = vmul.f32 %v2845_v36, %v2845_v36  ;;  %2612 = vst.msk [vmem:[%s3909_s7 + $0x78] sm:$0xff] %vm378_vm0, %v2845_v36  ;;  %v2454_v53 = vsel %vm378_vm0, %v2845_v36, 0.0 }
 0x2a9   : > { %v2336_v62 = vpop.f32.mrf.mxu0 }
 0x2aa   : > { %v2452_v47 = vsel %vm378_vm0, %v2336_v62, 0.0  ;;  %v2509_v12 = vmul.f32 %v2336_v62, %v2336_v62  ;;  %2611 = vst.msk [vmem:[%s3909_s7 + $0x70] sm:$0xff] %vm378_vm0, %v2336_v62  ;;  %v2556_v39 = vsel %vm378_vm0, %v2510_v52, 0.0 }
 0x2ab   : > { %v2453_v20 = vadd.f32 %v2452_v47, %v2451_v60 }
 0x2ac   : > { %v2554_v16 = vsel %vm378_vm0, %v2509_v12, 0.0 }
 0x2ad   : > { %v2455_v23 = vadd.f32 %v2454_v53, %v2453_v20  ;;  %v2555_v63 = vadd.f32 %v2554_v16, %v2553_v61 }
 0x2af   : > { %v2557_v27 = vadd.f32 %v2556_v39, %v2555_v63 }
 0x2bb   : > { %v2848_v0 = vpop.f32.mrf.mxu1 }
 0x2bc   : > { %v2512_v14 = vmul.f32 %v2848_v0, %v2848_v0  ;;  %2614 = vst.msk [vmem:[%s3909_s7 + $0x88] sm:$0xff] %vm378_vm0, %v2848_v0  ;;  %v2458_v4 = vsel %vm378_vm0, %v2848_v0, 0.0 }
 0x2bd   : > { %v2346_v3 = vpop.f32.mrf.mxu1 }
 0x2be   : > { %v2456_v5 = vsel %vm378_vm0, %v2346_v3, 0.0  ;;  %v2511_v19 = vmul.f32 %v2346_v3, %v2346_v3  ;;  %2613 = vst.msk [vmem:[%s3909_s7 + $0x80] sm:$0xff] %vm378_vm0, %v2346_v3  ;;  %v2560_v26 = vsel %vm378_vm0, %v2512_v14, 0.0 }
 0x2bf   : > { %v2457_v55 = vadd.f32 %v2456_v5, %v2455_v23 }
 0x2c0   : > { %v2558_v22 = vsel %vm378_vm0, %v2511_v19, 0.0 }
 0x2c1   : > { %v2559_v31 = vadd.f32 %v2558_v22, %v2557_v27  ;;  %v2459_v38 = vadd.f32 %v2458_v4, %v2457_v55 }
 0x2c3   : > { %v2561_v6 = vadd.f32 %v2560_v26, %v2559_v31 }
 0x2d3   : > { %v2851_v33 = vpop.f32.mrf.mxu1 }
 0x2d4   : > { %v2514_v7 = vmul.f32 %v2851_v33, %v2851_v33  ;;  %2616 = vst.msk [vmem:[%s3909_s7 + $0x98] sm:$0xff] %vm378_vm0, %v2851_v33  ;;  %v2462_v10 = vsel %vm378_vm0, %v2851_v33, 0.0 }
 0x2d5   : > { %v2356_v8 = vpop.f32.mrf.mxu1 }
 0x2d6   : > { %v2460_v49 = vsel %vm378_vm0, %v2356_v8, 0.0  ;;  %v2513_v54 = vmul.f32 %v2356_v8, %v2356_v8  ;;  %2615 = vst.msk [vmem:[%s3909_s7 + $0x90] sm:$0xff] %vm378_vm0, %v2356_v8  ;;  %v2564_v51 = vsel %vm378_vm0, %v2514_v7, 0.0 }
 0x2d7   : > { %v2461_v11 = vadd.f32 %v2460_v49, %v2459_v38 }
 0x2d8   : > { %v2562_v28 = vsel %vm378_vm0, %v2513_v54, 0.0 }
 0x2d9   : > { %v2563_v41 = vadd.f32 %v2562_v28, %v2561_v6  ;;  %v2463_v24 = vadd.f32 %v2462_v10, %v2461_v11 }
 0x2db   : > { %v2565_v44 = vadd.f32 %v2564_v51, %v2563_v41 }
 0x2eb   : > { %v2854_v30 = vpop.f32.mrf.mxu1 }
 0x2ec   : > { %v2516_v35 = vmul.f32 %v2854_v30, %v2854_v30  ;;  %2618 = vst.msk [vmem:[%s3909_s7 + $0xa8] sm:$0xff] %vm378_vm0, %v2854_v30  ;;  %v2466_v17 = vsel %vm378_vm0, %v2854_v30, 0.0 }
 0x2ed   : > { %v2366_v2 = vpop.f32.mrf.mxu1 }
 0x2ee   : > { %v2464_v56 = vsel %vm378_vm0, %v2366_v2, 0.0  ;;  %v2515_v1 = vmul.f32 %v2366_v2, %v2366_v2  ;;  %2617 = vst.msk [vmem:[%s3909_s7 + $0xa0] sm:$0xff] %vm378_vm0, %v2366_v2  ;;  %v2568_v58 = vsel %vm378_vm0, %v2516_v35, 0.0 }
 0x2ef   : > { %v2465_v57 = vadd.f32 %v2464_v56, %v2463_v24 }
 0x2f0   : > { %v2566_v18 = vsel %vm378_vm0, %v2515_v1, 0.0 }
 0x2f1   : > { %v2567_v34 = vadd.f32 %v2566_v18, %v2565_v44  ;;  %v2467_v32 = vadd.f32 %v2466_v17, %v2465_v57 }
 0x2f3   : > { %v2569_v40 = vadd.f32 %v2568_v58, %v2567_v34 }
 0x303   : > { %v2857_v43 = vpop.f32.mrf.mxu1 }
 0x304   : > { %v2518_v46 = vmul.f32 %v2857_v43, %v2857_v43  ;;  %2620 = vst.msk [vmem:[%s3909_s7 + $0xb8] sm:$0xff] %vm378_vm0, %v2857_v43  ;;  %v2470_v37 = vsel %vm378_vm0, %v2857_v43, 0.0 }
 0x305   : > { %v2376_v59 = vpop.f32.mrf.mxu1 }
 0x306   : > { %v2468_v48 = vsel %vm378_vm0, %v2376_v59, 0.0  ;;  %v2517_v15 = vmul.f32 %v2376_v59, %v2376_v59  ;;  %2619 = vst.msk [vmem:[%s3909_s7 + $0xb0] sm:$0xff] %vm378_vm0, %v2376_v59  ;;  %v2572_v21 = vsel %vm378_vm0, %v2518_v46, 0.0 }
 0x307   : > { %v2469_v13 = vadd.f32 %v2468_v48, %v2467_v32 }
 0x308   : > { %v2570_v45 = vsel %vm378_vm0, %v2517_v15, 0.0 }
 0x309   : > { %v2571_v50 = vadd.f32 %v2570_v45, %v2569_v40  ;;  %v2471_v9 = vadd.f32 %v2470_v37, %v2469_v13 }
 0x30b   : > { %v2573_v25 = vadd.f32 %v2572_v21, %v2571_v50 }
 0x31b   : > { %v2860_v42 = vpop.f32.mrf.mxu1 }
 0x31c   : > { %2622 = vst.msk [vmem:[%s3909_s7 + $0xc8] sm:$0xff] %vm378_vm0, %v2860_v42  ;;  %v2520_v47 = vmul.f32 %v2860_v42, %v2860_v42  ;;  %v2474_v39 = vsel %vm378_vm0, %v2860_v42, 0.0 }
 0x31d   : > { %v2386_v60 = vpop.f32.mrf.mxu1 }
 0x31e   : > { %2621 = vst.msk [vmem:[%s3909_s7 + $0xc0] sm:$0xff] %vm378_vm0, %v2386_v60  ;;  %v2519_v36 = vmul.f32 %v2386_v60, %v2386_v60  ;;  %v2472_v62 = vsel %vm378_vm0, %v2386_v60, 0.0  ;;  %v2576_v63 = vsel %vm378_vm0, %v2520_v47, 0.0 }
 0x31f   : > { %v2473_v20 = vadd.f32 %v2472_v62, %v2471_v9 }
 0x320   : > { %v2574_v12 = vsel %vm378_vm0, %v2519_v36, 0.0 }
 0x321   : > { %v2575_v23 = vadd.f32 %v2574_v12, %v2573_v25  ;;  %v2475_v0 = vadd.f32 %v2474_v39, %v2473_v20 }
 0x323   : > { %v2577_v5 = vadd.f32 %v2576_v63, %v2575_v23 }
 0x333   : > { %v2863_v61 = vpop.f32.mrf.mxu1 }
 0x334   : > { %2624 = vst.msk [vmem:[%s3909_s7 + $0xd8] sm:$0xff] %vm378_vm0, %v2863_v61  ;;  %v2522_v14 = vmul.f32 %v2863_v61, %v2863_v61  ;;  %v2478_v19 = vsel %vm378_vm0, %v2863_v61, 0.0 }
 0x335   : > { %v2396_v29 = vpop.f32.mrf.mxu1 }
 0x336   : > { %2623 = vst.msk [vmem:[%s3909_s7 + $0xd0] sm:$0xff] %vm378_vm0, %v2396_v29  ;;  %v2521_v16 = vmul.f32 %v2396_v29, %v2396_v29  ;;  %v2476_v27 = vsel %vm378_vm0, %v2396_v29, 0.0  ;;  %v2580_v22 = vsel %vm378_vm0, %v2522_v14, 0.0 }
 0x337   : > { %v2477_v4 = vadd.f32 %v2476_v27, %v2475_v0 }
 0x338   : > { %v2578_v3 = vsel %vm378_vm0, %v2521_v16, 0.0 }
 0x339   : > { %v2579_v26 = vadd.f32 %v2578_v3, %v2577_v5  ;;  %v2479_v38 = vadd.f32 %v2478_v19, %v2477_v4 }
 0x33b   : > { %v2581_v8 = vadd.f32 %v2580_v22, %v2579_v26 }
 0x34c   : > { %v2866_v52 = vpop.f32.mrf.mxu1 }
 0x34d   : > { %2626 = vst.msk [vmem:[%s3909_s7 + $0xe8] sm:$0xff] %vm378_vm0, %v2866_v52  ;;  %v2524_v6 = vmul.f32 %v2866_v52, %v2866_v52  ;;  %v2482_v10 = vsel %vm378_vm0, %v2866_v52, 0.0 }
 0x34e   : > { %v2406_v53 = vpop.f32.mrf.mxu1 }
 0x34f   : > { %2625 = vst.msk [vmem:[%s3909_s7 + $0xe0] sm:$0xff] %vm378_vm0, %v2406_v53  ;;  %v2523_v55 = vmul.f32 %v2406_v53, %v2406_v53  ;;  %v2480_v31 = vsel %vm378_vm0, %v2406_v53, 0.0  ;;  %v2584_v11 = vsel %vm378_vm0, %v2524_v6, 0.0 }
 0x350   : > { %v2481_v7 = vadd.f32 %v2480_v31, %v2479_v38 }
 0x351   : > { %v2582_v33 = vsel %vm378_vm0, %v2523_v55, 0.0 }
 0x352   : > { %v2583_v49 = vadd.f32 %v2582_v33, %v2581_v8  ;;  %v2483_v28 = vadd.f32 %v2482_v10, %v2481_v7 }
 0x354   : > { %v2585_v35 = vadd.f32 %v2584_v11, %v2583_v49 }
 0x35e   : > { %v2869_v54 = vpop.f32.mrf.mxu1 }
 0x35f   : > { %2628 = vst.msk [vmem:[%s3909_s7 + $0xf8] sm:$0xff] %vm378_vm0, %v2869_v54  ;;  %v2526_v41 = vmul.f32 %v2869_v54, %v2869_v54  ;;  %v2486_v2 = vsel %vm378_vm0, %v2869_v54, 0.0 }
 0x360   : > { %v2416_v51 = vpop.f32.mrf.mxu1 }
 0x361   : > { %v2484_v24 = vsel %vm378_vm0, %v2416_v51, 0.0  ;;  %v2525_v44 = vmul.f32 %v2416_v51, %v2416_v51  ;;  %2627 = vst.msk [vmem:[%s3909_s7 + $0xf0] sm:$0xff] %vm378_vm0, %v2416_v51  ;;  %v2588_v57 = vsel %vm378_vm0, %v2526_v41, 0.0 }
 0x362   : > { %v2485_v30 = vadd.f32 %v2484_v24, %v2483_v28 }
 0x363   : > { %v2586_v17 = vsel %vm378_vm0, %v2525_v44, 0.0 }
 0x364   : > { %v2487_v56 = vadd.f32 %v2486_v2, %v2485_v30  ;;  %v2587_v1 = vadd.f32 %v2586_v17, %v2585_v35 }
 0x366   : > { %v2488_v58 = vrot.slane %v2487_v56, 4  ;;  %v2589_v18 = vadd.f32 %v2588_v57, %v2587_v1 }
 0x368   : > { %v2489_v34 = vadd.f32 %v2488_v58, %v2487_v56  ;;  %v2590_v32 = vrot.slane %v2589_v18, 4 }
 0x36a   : > { %v2490_v40 = vrot.slane %v2489_v34, 2  ;;  %v2591_v43 = vadd.f32 %v2590_v32, %v2589_v18 }
 0x36c   : > { %v2491_v46 = vadd.f32 %v2490_v40, %v2489_v34  ;;  %v2592_v59 = vrot.slane %v2591_v43, 2 }
 0x36e   : > { %v2492_v37 = vrot.slane %v2491_v46, 1  ;;  %v2593_v48 = vadd.f32 %v2592_v59, %v2591_v43 }
 0x370   : > { %v2493_v15 = vadd.f32 %v2492_v37, %v2491_v46  ;;  %v2594_v13 = vrot.slane %v2593_v48, 1 }
 0x372   : > { %2494 = vst.msk [vmem:[%s235_s17] sm:$0x1] %vm388_vm2, %v2493_v15  ;;  %v2595_v21 = vadd.f32 %v2594_v13, %v2593_v48 }
 0x374   : > { %2596 = vst.msk [vmem:[%s235_s17 + $0x1] sm:$0x1] %vm388_vm2, %v2595_v21 }
 0x375 PF: > { %s16_s18 = sadd.s32 1, %s2913_s18  }
 0x376   : > { %p13_p4 = scmp.ge.s32.totalorder %s16_s18, 4  }
 0x378   :  { %15 = sbr.rel (!%p13_p4) target bundleno = 1 (0x1), region = 81 }

</bundles_post_ra>
